<compile_context>
chip_gen: v5e
topology: v5e:2x2
jax: 0.10.0
libtpu: 0.0.40
codegen_flags: <defaults>
</compile_context>

<pallas_src>
import functools

import jax
import jax.numpy as jnp
from jax.experimental import pallas as pl
from jax.experimental.pallas import tpu as pltpu

LANE = 128      # feature dims are padded to multiples of the 128-wide lane axis
_SMALL_K = 8    # contraction dims at or below this use the VPU path, not the MXU


def _round_up(x, m):
    return (x + m - 1) // m * m


def _sublane_multiple(dtype):
    # minimum second-minor block multiple for the (8,128)/(16,128)/(32,128) tiling rule
    return {4: 8, 2: 16, 1: 32}.get(jnp.dtype(dtype).itemsize, 8)


def _apply_act(h, act):
    if act == "relu":
        return jnp.maximum(h, 0.0)
    if act == "tanh":
        return jnp.tanh(h)   # EUP slot: effectively free next to the matmuls
    if act == "exp":
        return jnp.exp(h)    # EUP slot
    raise ValueError(f"unsupported activation: {act}")


def _mlp_kernel(n_layers, act, x_ref, *refs):
    """refs = (w_0, b_0, ..., w_{L-1}, b_{L-1}, o_ref); last layer has no activation."""
    o_ref = refs[-1]
    h = x_ref[...]
    for i in range(n_layers):
        w_ref = refs[2 * i]
        b = refs[2 * i + 1][...]               # (1, N): loaded/broadcast once per layer
        k_dim, n_dim = w_ref.shape
        if k_dim <= _SMALL_K:
            # Tiny contraction dim: K broadcast multiply-adds on the VPU beat an MXU
            # pass that is almost entirely pipeline fill/drain. Accumulate in f32.
            w = w_ref[...]
            acc = jnp.broadcast_to(b.astype(jnp.float32), (h.shape[0], n_dim))
            for k in range(k_dim):
                acc = acc + (h[:, k:k + 1].astype(jnp.float32)
                             * w[k:k + 1, :].astype(jnp.float32))
            h = acc
        else:
            # MXU path: operands stay in their stored dtype (bf16-native MXU on
            # v6e/v7x); accumulation forced to f32 via preferred_element_type.
            h = jnp.dot(h, w_ref[...], preferred_element_type=jnp.float32) + b
        if i < n_layers - 1:
            # Store hidden activations in the weights' dtype so a bf16 model keeps
            # feeding the bf16 MXU path (no-op for f32 models).
            h = _apply_act(h, act).astype(w_ref.dtype)
    o_ref[...] = h.astype(o_ref.dtype)


def _const_spec(shape, single_buffer):
    # Weight/bias blocks never change across the grid; one VMEM buffer is enough.
    if single_buffer:
        return pl.BlockSpec(shape, lambda i: (0, 0), pipeline_mode=pl.Buffered(1))
    return pl.BlockSpec(shape, lambda i: (0, 0))


def mlp_forward(x, weights, biases, *, act="relu", block_batch=None):
    """Fused MLP forward.

    x:       (B, in_features)
    weights: list of (in_i, out_i) arrays (transposed vs. torch Linear weight)
    biases:  list of (out_i,) arrays
    act:     'relu' | 'tanh' | 'exp' (static; mirrors Model.set_act_func_type)
    """
    B, in_features = x.shape
    n_layers = len(weights)
    out_features = weights[-1].shape[1]
    sub = _sublane_multiple(x.dtype)

    # ---- lane-dense zero padding of feature dims (hidden/out -> multiple of 128) ----
    if in_features <= _SMALL_K:
        in_pad = in_features                    # first layer runs on the VPU path
        x_in = x
    else:
        in_pad = _round_up(in_features, LANE)
        x_in = x if in_pad == in_features else (
            jnp.zeros((B, in_pad), x.dtype).at[:, :in_features].set(x))
    padded = [in_pad] + [_round_up(w.shape[1], LANE) for w in weights]

    w_p, b_p, params = [], [], []
    for i, (w, b) in enumerate(zip(weights, biases)):
        kp, np_ = padded[i], padded[i + 1]
        wp = w if w.shape == (kp, np_) else (
            jnp.zeros((kp, np_), w.dtype).at[:w.shape[0], :w.shape[1]].set(w))
        bp = jnp.zeros((1, np_), b.dtype).at[0, :b.shape[0]].set(b)
        w_p.append(wp)
        b_p.append(bp)
        params.extend([wp, bp])

    # ---- batch tiling: >=2 grid steps when possible (v7x megacore), tile size a
    # multiple of the sublane count so the (8,128) BlockSpec rule holds ----
    if block_batch is None:
        block_batch = min(512, _round_up(pl.cdiv(B, 2), sub))
    if block_batch >= B:
        block_batch = B
    else:
        block_batch = max(sub, _round_up(block_batch, sub))
    grid = (pl.cdiv(B, block_batch),)

    # ---- VMEM budget, sized against v7x's 64 MiB physical / 32 MiB scoped default ----
    itemsize = jnp.dtype(x.dtype).itemsize
    weight_bytes = sum(int(a.size) * a.dtype.itemsize for a in params)
    act_block_bytes = 2 * block_batch * (padded[0] + padded[-1]) * itemsize  # double-buffered x/out tiles
    live_bytes = block_batch * max(padded) * 4                               # widest f32 intermediate
    vmem_est = act_block_bytes + 2 * weight_bytes + live_bytes
    vmem_limit = int(min(max(2 * vmem_est, 32 * 2 ** 20), 64 * 2 ** 20))

    out_shape = jax.ShapeDtypeStruct((B, padded[-1]), x.dtype)
    x_spec = pl.BlockSpec((block_batch, padded[0]), lambda i: (i, 0))
    out_spec = pl.BlockSpec((block_batch, padded[-1]), lambda i: (i, 0))
    kernel = functools.partial(_mlp_kernel, n_layers, act)

    def _call(single_buffer_weights):
        in_specs = [x_spec]
        for wp, bp in zip(w_p, b_p):
            in_specs.append(_const_spec(wp.shape, single_buffer_weights))
            in_specs.append(_const_spec(bp.shape, single_buffer_weights))
        return pl.pallas_call(
            kernel,
            out_shape=out_shape,
            grid_spec=pltpu.PrefetchScalarGridSpec(
                num_scalar_prefetch=0,
                grid=grid,
                in_specs=in_specs,
                out_specs=out_spec,
            ),
            compiler_params=pltpu.CompilerParams(
                dimension_semantics=("parallel",),
                vmem_limit_bytes=vmem_limit,
            ),
        )(x_in, *params)

    try:
        out_padded = _call(True)
    except Exception:
        # pipeline_mode/Buffered not supported at top-level pallas_call on this JAX
        # version -> default double buffering (semantics identical).
        out_padded = _call(False)

    return out_padded[:, :out_features]


def _reference_mlp(x, weights, biases, act="relu"):
    f = {"relu": jax.nn.relu, "tanh": jnp.tanh, "exp": jnp.exp}[act]
    h = x
    for i, (w, b) in enumerate(zip(weights, biases)):
        h = h @ w + b
        if i < len(weights) - 1:
            h = f(h)
    return h


if __name__ == "__main__":
    # Model(in_features=4, depths=[32, 16], out_features=2); batch tiled 2 x 256.
    in_features, depths, out_features = 4, [32, 16], 2
    batch = 512

    key = jax.random.PRNGKey(0)
    dims = [in_features] + depths + [out_features]
    weights, biases = [], []
    for li in range(len(dims) - 1):
        key, kw, kb = jax.random.split(key, 3)
        fan_in, fan_out = dims[li], dims[li + 1]
        bound = 1.0 / (fan_in ** 0.5)
        # torch.nn.Linear weight is (out, in); store transposed (in, out) for h @ W.
        weights.append(jax.random.uniform(kw, (fan_in, fan_out), jnp.float32, -bound, bound))
        biases.append(jax.random.uniform(kb, (fan_out,), jnp.float32, -bound, bound))

    key, kx = jax.random.split(key)
    x = jax.random.normal(kx, (batch, in_features), jnp.float32)

    out = jax.block_until_ready(mlp_forward(x, weights, biases))
    ref = _reference_mlp(x, weights, biases)
    assert out.shape == (batch, out_features)
    assert jnp.allclose(out, ref, atol=2e-5, rtol=2e-5), "relu mismatch vs reference"

    # Also exercise the TANH branch of set_act_func_type.
    out_t = jax.block_until_ready(mlp_forward(x, weights, biases, act="tanh"))
    ref_t = _reference_mlp(x, weights, biases, act="tanh")
    assert jnp.allclose(out_t, ref_t, atol=2e-5, rtol=2e-5), "tanh mismatch vs reference"

    print("KERNEL_OK")
</pallas_src>

<mosaic_0001>
module attributes {stable_mosaic.version = 11 : i64} {
  func.func @_mlp_kernel(%arg0: i32, %arg1: memref<256x4xf32, #tpu.memory_space<vmem>>, %arg2: memref<4x128xf32, #tpu.memory_space<vmem>>, %arg3: memref<1x128xf32, #tpu.memory_space<vmem>>, %arg4: memref<128x128xf32, #tpu.memory_space<vmem>>, %arg5: memref<1x128xf32, #tpu.memory_space<vmem>>, %arg6: memref<128x128xf32, #tpu.memory_space<vmem>>, %arg7: memref<1x128xf32, #tpu.memory_space<vmem>>, %arg8: memref<256x128xf32, #tpu.memory_space<vmem>>) attributes {dimension_semantics = [#tpu.dimension_semantics<parallel>], iteration_bounds = array<i64: 2>, scalar_prefetch = 0 : i64, scratch_operands = 0 : i64, tpu.core_type = #tpu.core_type<tc>, window_params = [{transform_indices = @transform_0, window_bounds = array<i64: 256, 4>}, {pipeline_mode = #tpu.pipeline_mode<synchronous>, transform_indices = @transform_1, window_bounds = array<i64: 4, 128>}, {pipeline_mode = #tpu.pipeline_mode<synchronous>, transform_indices = @transform_2, window_bounds = array<i64: 1, 128>}, {pipeline_mode = #tpu.pipeline_mode<synchronous>, transform_indices = @transform_3, window_bounds = array<i64: 128, 128>}, {pipeline_mode = #tpu.pipeline_mode<synchronous>, transform_indices = @transform_4, window_bounds = array<i64: 1, 128>}, {pipeline_mode = #tpu.pipeline_mode<synchronous>, transform_indices = @transform_5, window_bounds = array<i64: 128, 128>}, {pipeline_mode = #tpu.pipeline_mode<synchronous>, transform_indices = @transform_6, window_bounds = array<i64: 1, 128>}, {transform_indices = @transform_7, window_bounds = array<i64: 256, 128>}]} {
    %c0 = arith.constant 0 : index
    %c0_0 = arith.constant 0 : index
    %0 = vector.load %arg1[%c0, %c0_0] : memref<256x4xf32, #tpu.memory_space<vmem>>, vector<256x4xf32>
    %c0_1 = arith.constant 0 : index
    %c0_2 = arith.constant 0 : index
    %1 = vector.load %arg3[%c0_1, %c0_2] : memref<1x128xf32, #tpu.memory_space<vmem>>, vector<1x128xf32>
    %c0_3 = arith.constant 0 : index
    %c0_4 = arith.constant 0 : index
    %2 = vector.load %arg2[%c0_3, %c0_4] : memref<4x128xf32, #tpu.memory_space<vmem>>, vector<4x128xf32>
    %3 = vector.shape_cast %1 : vector<1x128xf32> to vector<1x128xf32>
    %4 = vector.broadcast %3 : vector<1x128xf32> to vector<256x128xf32>
    %5 = vector.extract_strided_slice %0 {offsets = [0, 0], sizes = [256, 1], strides = [1, 1]} : vector<256x4xf32> to vector<256x1xf32>
    %6 = vector.extract_strided_slice %2 {offsets = [0, 0], sizes = [1, 128], strides = [1, 1]} : vector<4x128xf32> to vector<1x128xf32>
    %7 = vector.broadcast %5 : vector<256x1xf32> to vector<256x128xf32>
    %8 = vector.broadcast %6 : vector<1x128xf32> to vector<256x128xf32>
    %9 = arith.mulf %7, %8 : vector<256x128xf32>
    %10 = arith.addf %4, %9 : vector<256x128xf32>
    %11 = vector.extract_strided_slice %0 {offsets = [0, 1], sizes = [256, 1], strides = [1, 1]} : vector<256x4xf32> to vector<256x1xf32>
    %12 = vector.extract_strided_slice %2 {offsets = [1, 0], sizes = [1, 128], strides = [1, 1]} : vector<4x128xf32> to vector<1x128xf32>
    %13 = vector.broadcast %11 : vector<256x1xf32> to vector<256x128xf32>
    %14 = vector.broadcast %12 : vector<1x128xf32> to vector<256x128xf32>
    %15 = arith.mulf %13, %14 : vector<256x128xf32>
    %16 = arith.addf %10, %15 : vector<256x128xf32>
    %17 = vector.extract_strided_slice %0 {offsets = [0, 2], sizes = [256, 1], strides = [1, 1]} : vector<256x4xf32> to vector<256x1xf32>
    %18 = vector.extract_strided_slice %2 {offsets = [2, 0], sizes = [1, 128], strides = [1, 1]} : vector<4x128xf32> to vector<1x128xf32>
    %19 = vector.broadcast %17 : vector<256x1xf32> to vector<256x128xf32>
    %20 = vector.broadcast %18 : vector<1x128xf32> to vector<256x128xf32>
    %21 = arith.mulf %19, %20 : vector<256x128xf32>
    %22 = arith.addf %16, %21 : vector<256x128xf32>
    %23 = vector.extract_strided_slice %0 {offsets = [0, 3], sizes = [256, 1], strides = [1, 1]} : vector<256x4xf32> to vector<256x1xf32>
    %24 = vector.extract_strided_slice %2 {offsets = [3, 0], sizes = [1, 128], strides = [1, 1]} : vector<4x128xf32> to vector<1x128xf32>
    %25 = vector.broadcast %23 : vector<256x1xf32> to vector<256x128xf32>
    %26 = vector.broadcast %24 : vector<1x128xf32> to vector<256x128xf32>
    %27 = arith.mulf %25, %26 : vector<256x128xf32>
    %28 = arith.addf %22, %27 : vector<256x128xf32>
    %cst = arith.constant 0.000000e+00 : f32
    %29 = vector.broadcast %cst : f32 to vector<256x128xf32>
    %30 = arith.maximumf %28, %29 : vector<256x128xf32>
    %c0_5 = arith.constant 0 : index
    %c0_6 = arith.constant 0 : index
    %31 = vector.load %arg5[%c0_5, %c0_6] : memref<1x128xf32, #tpu.memory_space<vmem>>, vector<1x128xf32>
    %c0_7 = arith.constant 0 : index
    %c0_8 = arith.constant 0 : index
    %32 = vector.load %arg4[%c0_7, %c0_8] : memref<128x128xf32, #tpu.memory_space<vmem>>, vector<128x128xf32>
    %cst_9 = arith.constant dense<0.000000e+00> : vector<256x128xf32>
    %33 = tpu.matmul %30, %32, %cst_9 {dimension_numbers = #tpu.dot_dimension_numbers<[1], [0], [0], [1], [0, 0, 1, 1], [], []>} : vector<256x128xf32>, vector<128x128xf32>, vector<256x128xf32> -> vector<256x128xf32>
    %34 = vector.broadcast %31 : vector<1x128xf32> to vector<256x128xf32>
    %35 = arith.addf %33, %34 : vector<256x128xf32>
    %cst_10 = arith.constant 0.000000e+00 : f32
    %36 = vector.broadcast %cst_10 : f32 to vector<256x128xf32>
    %37 = arith.maximumf %35, %36 : vector<256x128xf32>
    %c0_11 = arith.constant 0 : index
    %c0_12 = arith.constant 0 : index
    %38 = vector.load %arg7[%c0_11, %c0_12] : memref<1x128xf32, #tpu.memory_space<vmem>>, vector<1x128xf32>
    %c0_13 = arith.constant 0 : index
    %c0_14 = arith.constant 0 : index
    %39 = vector.load %arg6[%c0_13, %c0_14] : memref<128x128xf32, #tpu.memory_space<vmem>>, vector<128x128xf32>
    %cst_15 = arith.constant dense<0.000000e+00> : vector<256x128xf32>
    %40 = tpu.matmul %37, %39, %cst_15 {dimension_numbers = #tpu.dot_dimension_numbers<[1], [0], [0], [1], [0, 0, 1, 1], [], []>} : vector<256x128xf32>, vector<128x128xf32>, vector<256x128xf32> -> vector<256x128xf32>
    %41 = vector.broadcast %38 : vector<1x128xf32> to vector<256x128xf32>
    %42 = arith.addf %40, %41 : vector<256x128xf32>
    %c0_16 = arith.constant 0 : index
    %c0_17 = arith.constant 0 : index
    %43 = vector.load %arg8[%c0_16, %c0_17] : memref<256x128xf32, #tpu.memory_space<vmem>>, vector<256x128xf32>
    tpu.vector_store %arg8[%c0_16, %c0_17], %42 {strides = array<i32>} : memref<256x128xf32, #tpu.memory_space<vmem>>, vector<256x128xf32>,
    return
  }
  func.func @transform_0(%arg0: i32) -> (i32, i32) {
    %c0_i32 = arith.constant 0 : i32
    %c0_i32_0 = arith.constant 0 : i32
    return %arg0, %c0_i32 : i32, i32
  }
  func.func @transform_1(%arg0: i32) -> (i32, i32) {
    %c0_i32 = arith.constant 0 : i32
    %c0_i32_0 = arith.constant 0 : i32
    %c0_i32_1 = arith.constant 0 : i32
    return %c0_i32, %c0_i32_0 : i32, i32
  }
  func.func @transform_2(%arg0: i32) -> (i32, i32) {
    %c0_i32 = arith.constant 0 : i32
    %c0_i32_0 = arith.constant 0 : i32
    %c0_i32_1 = arith.constant 0 : i32
    return %c0_i32, %c0_i32_0 : i32, i32
  }
  func.func @transform_3(%arg0: i32) -> (i32, i32) {
    %c0_i32 = arith.constant 0 : i32
    %c0_i32_0 = arith.constant 0 : i32
    %c0_i32_1 = arith.constant 0 : i32
    return %c0_i32, %c0_i32_0 : i32, i32
  }
  func.func @transform_4(%arg0: i32) -> (i32, i32) {
    %c0_i32 = arith.constant 0 : i32
    %c0_i32_0 = arith.constant 0 : i32
    %c0_i32_1 = arith.constant 0 : i32
    return %c0_i32, %c0_i32_0 : i32, i32
  }
  func.func @transform_5(%arg0: i32) -> (i32, i32) {
    %c0_i32 = arith.constant 0 : i32
    %c0_i32_0 = arith.constant 0 : i32
    %c0_i32_1 = arith.constant 0 : i32
    return %c0_i32, %c0_i32_0 : i32, i32
  }
  func.func @transform_6(%arg0: i32) -> (i32, i32) {
    %c0_i32 = arith.constant 0 : i32
    %c0_i32_0 = arith.constant 0 : i32
    %c0_i32_1 = arith.constant 0 : i32
    return %c0_i32, %c0_i32_0 : i32, i32
  }
  func.func @transform_7(%arg0: i32) -> (i32, i32) {
    %c0_i32 = arith.constant 0 : i32
    %c0_i32_0 = arith.constant 0 : i32
    return %arg0, %c0_i32 : i32, i32
  }
}

module attributes {stable_mosaic.version = 11 : i64} {
  func.func @_mlp_kernel(%arg0: i32, %arg1: memref<256x4xf32, #tpu.memory_space<vmem>>, %arg2: memref<4x128xf32, #tpu.memory_space<vmem>>, %arg3: memref<1x128xf32, #tpu.memory_space<vmem>>, %arg4: memref<128x128xf32, #tpu.memory_space<vmem>>, %arg5: memref<1x128xf32, #tpu.memory_space<vmem>>, %arg6: memref<128x128xf32, #tpu.memory_space<vmem>>, %arg7: memref<1x128xf32, #tpu.memory_space<vmem>>, %arg8: memref<256x128xf32, #tpu.memory_space<vmem>>) attributes {dimension_semantics = [#tpu.dimension_semantics<parallel>], iteration_bounds = array<i64: 2>, scalar_prefetch = 0 : i64, scratch_operands = 0 : i64, tpu.core_type = #tpu.core_type<tc>, window_params = [{transform_indices = @transform_0, window_bounds = array<i64: 256, 4>}, {pipeline_mode = #tpu.pipeline_mode<synchronous>, transform_indices = @transform_1, window_bounds = array<i64: 4, 128>}, {pipeline_mode = #tpu.pipeline_mode<synchronous>, transform_indices = @transform_2, window_bounds = array<i64: 1, 128>}, {pipeline_mode = #tpu.pipeline_mode<synchronous>, transform_indices = @transform_3, window_bounds = array<i64: 128, 128>}, {pipeline_mode = #tpu.pipeline_mode<synchronous>, transform_indices = @transform_4, window_bounds = array<i64: 1, 128>}, {pipeline_mode = #tpu.pipeline_mode<synchronous>, transform_indices = @transform_5, window_bounds = array<i64: 128, 128>}, {pipeline_mode = #tpu.pipeline_mode<synchronous>, transform_indices = @transform_6, window_bounds = array<i64: 1, 128>}, {transform_indices = @transform_7, window_bounds = array<i64: 256, 128>}]} {
    %c0 = arith.constant 0 : index
    %c0_0 = arith.constant 0 : index
    %0 = vector.load %arg1[%c0, %c0_0] : memref<256x4xf32, #tpu.memory_space<vmem>>, vector<256x4xf32>
    %c0_1 = arith.constant 0 : index
    %c0_2 = arith.constant 0 : index
    %1 = vector.load %arg3[%c0_1, %c0_2] : memref<1x128xf32, #tpu.memory_space<vmem>>, vector<1x128xf32>
    %c0_3 = arith.constant 0 : index
    %c0_4 = arith.constant 0 : index
    %2 = vector.load %arg2[%c0_3, %c0_4] : memref<4x128xf32, #tpu.memory_space<vmem>>, vector<4x128xf32>
    %3 = vector.shape_cast %1 : vector<1x128xf32> to vector<1x128xf32>
    %4 = vector.broadcast %3 : vector<1x128xf32> to vector<256x128xf32>
    %5 = vector.extract_strided_slice %0 {offsets = [0, 0], sizes = [256, 1], strides = [1, 1]} : vector<256x4xf32> to vector<256x1xf32>
    %6 = vector.extract_strided_slice %2 {offsets = [0, 0], sizes = [1, 128], strides = [1, 1]} : vector<4x128xf32> to vector<1x128xf32>
    %7 = vector.broadcast %5 : vector<256x1xf32> to vector<256x128xf32>
    %8 = vector.broadcast %6 : vector<1x128xf32> to vector<256x128xf32>
    %9 = arith.mulf %7, %8 : vector<256x128xf32>
    %10 = arith.addf %4, %9 : vector<256x128xf32>
    %11 = vector.extract_strided_slice %0 {offsets = [0, 1], sizes = [256, 1], strides = [1, 1]} : vector<256x4xf32> to vector<256x1xf32>
    %12 = vector.extract_strided_slice %2 {offsets = [1, 0], sizes = [1, 128], strides = [1, 1]} : vector<4x128xf32> to vector<1x128xf32>
    %13 = vector.broadcast %11 : vector<256x1xf32> to vector<256x128xf32>
    %14 = vector.broadcast %12 : vector<1x128xf32> to vector<256x128xf32>
    %15 = arith.mulf %13, %14 : vector<256x128xf32>
    %16 = arith.addf %10, %15 : vector<256x128xf32>
    %17 = vector.extract_strided_slice %0 {offsets = [0, 2], sizes = [256, 1], strides = [1, 1]} : vector<256x4xf32> to vector<256x1xf32>
    %18 = vector.extract_strided_slice %2 {offsets = [2, 0], sizes = [1, 128], strides = [1, 1]} : vector<4x128xf32> to vector<1x128xf32>
    %19 = vector.broadcast %17 : vector<256x1xf32> to vector<256x128xf32>
    %20 = vector.broadcast %18 : vector<1x128xf32> to vector<256x128xf32>
    %21 = arith.mulf %19, %20 : vector<256x128xf32>
    %22 = arith.addf %16, %21 : vector<256x128xf32>
    %23 = vector.extract_strided_slice %0 {offsets = [0, 3], sizes = [256, 1], strides = [1, 1]} : vector<256x4xf32> to vector<256x1xf32>
    %24 = vector.extract_strided_slice %2 {offsets = [3, 0], sizes = [1, 128], strides = [1, 1]} : vector<4x128xf32> to vector<1x128xf32>
    %25 = vector.broadcast %23 : vector<256x1xf32> to vector<256x128xf32>
    %26 = vector.broadcast %24 : vector<1x128xf32> to vector<256x128xf32>
    %27 = arith.mulf %25, %26 : vector<256x128xf32>
    %28 = arith.addf %22, %27 : vector<256x128xf32>
    %cst = arith.constant 0.000000e+00 : f32
    %29 = vector.broadcast %cst : f32 to vector<256x128xf32>
    %30 = arith.maximumf %28, %29 : vector<256x128xf32>
    %c0_5 = arith.constant 0 : index
    %c0_6 = arith.constant 0 : index
    %31 = vector.load %arg5[%c0_5, %c0_6] : memref<1x128xf32, #tpu.memory_space<vmem>>, vector<1x128xf32>
    %c0_7 = arith.constant 0 : index
    %c0_8 = arith.constant 0 : index
    %32 = vector.load %arg4[%c0_7, %c0_8] : memref<128x128xf32, #tpu.memory_space<vmem>>, vector<128x128xf32>
    %cst_9 = arith.constant dense<0.000000e+00> : vector<256x128xf32>
    %33 = tpu.matmul %30, %32, %cst_9 {dimension_numbers = #tpu.dot_dimension_numbers<[1], [0], [0], [1], [0, 0, 1, 1], [], []>} : vector<256x128xf32>, vector<128x128xf32>, vector<256x128xf32> -> vector<256x128xf32>
    %34 = vector.broadcast %31 : vector<1x128xf32> to vector<256x128xf32>
    %35 = arith.addf %33, %34 : vector<256x128xf32>
    %cst_10 = arith.constant 0.000000e+00 : f32
    %36 = vector.broadcast %cst_10 : f32 to vector<256x128xf32>
    %37 = arith.maximumf %35, %36 : vector<256x128xf32>
    %c0_11 = arith.constant 0 : index
    %c0_12 = arith.constant 0 : index
    %38 = vector.load %arg7[%c0_11, %c0_12] : memref<1x128xf32, #tpu.memory_space<vmem>>, vector<1x128xf32>
    %c0_13 = arith.constant 0 : index
    %c0_14 = arith.constant 0 : index
    %39 = vector.load %arg6[%c0_13, %c0_14] : memref<128x128xf32, #tpu.memory_space<vmem>>, vector<128x128xf32>
    %cst_15 = arith.constant dense<0.000000e+00> : vector<256x128xf32>
    %40 = tpu.matmul %37, %39, %cst_15 {dimension_numbers = #tpu.dot_dimension_numbers<[1], [0], [0], [1], [0, 0, 1, 1], [], []>} : vector<256x128xf32>, vector<128x128xf32>, vector<256x128xf32> -> vector<256x128xf32>
    %41 = vector.broadcast %38 : vector<1x128xf32> to vector<256x128xf32>
    %42 = arith.addf %40, %41 : vector<256x128xf32>
    %c0_16 = arith.constant 0 : index
    %c0_17 = arith.constant 0 : index
    %43 = vector.load %arg8[%c0_16, %c0_17] : memref<256x128xf32, #tpu.memory_space<vmem>>, vector<256x128xf32>
    tpu.vector_store %arg8[%c0_16, %c0_17], %42 {strides = array<i32>} : memref<256x128xf32, #tpu.memory_space<vmem>>, vector<256x128xf32>,
    return
  }
  func.func @transform_0(%arg0: i32) -> (i32, i32) {
    %c0_i32 = arith.constant 0 : i32
    %c0_i32_0 = arith.constant 0 : i32
    return %arg0, %c0_i32 : i32, i32
  }
  func.func @transform_1(%arg0: i32) -> (i32, i32) {
    %c0_i32 = arith.constant 0 : i32
    %c0_i32_0 = arith.constant 0 : i32
    %c0_i32_1 = arith.constant 0 : i32
    return %c0_i32, %c0_i32_0 : i32, i32
  }
  func.func @transform_2(%arg0: i32) -> (i32, i32) {
    %c0_i32 = arith.constant 0 : i32
    %c0_i32_0 = arith.constant 0 : i32
    %c0_i32_1 = arith.constant 0 : i32
    return %c0_i32, %c0_i32_0 : i32, i32
  }
  func.func @transform_3(%arg0: i32) -> (i32, i32) {
    %c0_i32 = arith.constant 0 : i32
    %c0_i32_0 = arith.constant 0 : i32
    %c0_i32_1 = arith.constant 0 : i32
    return %c0_i32, %c0_i32_0 : i32, i32
  }
  func.func @transform_4(%arg0: i32) -> (i32, i32) {
    %c0_i32 = arith.constant 0 : i32
    %c0_i32_0 = arith.constant 0 : i32
    %c0_i32_1 = arith.constant 0 : i32
    return %c0_i32, %c0_i32_0 : i32, i32
  }
  func.func @transform_5(%arg0: i32) -> (i32, i32) {
    %c0_i32 = arith.constant 0 : i32
    %c0_i32_0 = arith.constant 0 : i32
    %c0_i32_1 = arith.constant 0 : i32
    return %c0_i32, %c0_i32_0 : i32, i32
  }
  func.func @transform_6(%arg0: i32) -> (i32, i32) {
    %c0_i32 = arith.constant 0 : i32
    %c0_i32_0 = arith.constant 0 : i32
    %c0_i32_1 = arith.constant 0 : i32
    return %c0_i32, %c0_i32_0 : i32, i32
  }
  func.func @transform_7(%arg0: i32) -> (i32, i32) {
    %c0_i32 = arith.constant 0 : i32
    %c0_i32_0 = arith.constant 0 : i32
    return %arg0, %c0_i32 : i32, i32
  }
}

</mosaic_0001>

<bundles_post_ra>
// kernel: tpu_custom_call.1
= control target key start
LH: loop header
LB: loop body
LE: loop exit
PB: predicated region body
PF: predicated region fallthrough
CT: control target
= control target key end

     0   :  { %12 = vsyncpa [#allocation3], 0  ;;  %s2742_s0 = inlined_call_operand.vmem [shape: f32[512,4], index: 0, kind: input, shape index: {}]   ;;  %s2743_s1 = inlined_call_operand.vmem [shape: f32[4,128], index: 1, kind: input, shape index: {}]   ;;  %s2744_s2 = inlined_call_operand.vmem [shape: f32[1,128], index: 2, kind: input, shape index: {}]   ;;  %s2745_s3 = inlined_call_operand.vmem [shape: f32[128,128], index: 3, kind: input, shape index: {}]   ;;  %s2746_s4 = inlined_call_operand.vmem [shape: f32[1,128], index: 4, kind: input, shape index: {}]   ;;  %s2747_s5 = inlined_call_operand.vmem [shape: f32[128,128], index: 5, kind: input, shape index: {}]   ;;  %s2748_s6 = inlined_call_operand.vmem [shape: f32[1,128], index: 6, kind: input, shape index: {}]   ;;  %s2749_s7 = inlined_call_operand.hbm [shape: f32[512,128], index: 7, kind: output, shape index: {}]  }
   0x1   :  { %14 = vsyncpa [#allocation3 + $0x1], 0  ;;  %s1812_s24 = smov 0   ;;  %s1814_s25 = smov 0  }
   0x2   :  { %s1816_s26 = smov 0   ;;  %s1818_s27 = smov 0  }
   0x3 LB: > { %s1833_s28 = sadd.s32 4294967295, %s1764_s27   ;;  %s1561_s29 = sadd.s32 4294967294, %s1764_s27   ;;  %s1764_s27 = sphi %s1818_s27, %s2790_s27   ;;  %s1760_s26 = sphi %s1816_s26, %s2789_s26   ;;  %s1756_s25 = sphi %s1814_s25, %s2788_s25   ;;  %s1752_s24 = sphi %s1812_s24, %s2787_s24  }
   0x4   : > { %s1837_s30 = sadd.s32 1, %s1764_s27   ;;  %s179_s8 = sadd.s32 1, %s1760_s26 }
   0x5   : > { %s176_s9 = ssub.s32 %s1764_s27, %s1837_s30  ;;  %p189_p0 = scmp.ne.s32.totalorder %s1760_s26, %s1756_s25 }
   0x6   : > { %p177_p1 = scmp.eq.s32.totalorder %s176_s9, 0  ;;  %p190_p2 = scmp.eq.s32.totalorder %s1833_s28, 1 }
   0x7   : > { %p195_p3 = scmp.ne.s32.totalorder %s1756_s25, %s1752_s24  ;;  %p196_p4 = scmp.eq.s32.totalorder %s1561_s29, 1 }
   0x8   : > { %s1848_s10 = scalar_select %p177_p1, %s1760_s26, %s179_s8  }
   0x9   : > { %p1850_p5 = por %p190_p2, %p189_p0  ;;  %p1854_p6 = por %p196_p4, %p195_p3 }
   0xa   : > { %p1564_p7 = scmp.ge.s32.totalorder %s1764_s27, 1  ;;  %p241_p8 = scmp.lt.s32.totalorder %s1764_s27, 3 }
   0xc   : > { %p242_p9 = pnand %p1564_p7, %p241_p8 }
   0xe   : > { %245 = sbr.rel (%p242_p9) target bundleno = 790 (0x316), region = 48 }
  0x13   : > { %s1566_s13 = sshll.u32 %s1833_s28, 5  ;;  %v1766_v0 = vmov 0   ;;  %v2750_v33 = vmov 1   ;;  %v2752_v34 = vmov 3   ;;  %v2756_v37 = vmov 2   ;;  %s270_s29 = sand.u32 1, %s1756_s25  }
  0x14   : > { %1653 = vset.pattern.permute.xlu2 %v1766_v0  ;;  %1652 = vset.pattern.permute.xlu1 %v1766_v0  ;;  %p274_p10 = scmp.lt.s32.totalorder %s1566_s13, 63  ;;  %v2071_v57 = vld [vmem:[%s2743_s1] sm:$0xf]  ;;  %s1565_s8 = sshll.u32 %s270_s29, 8 }
  0x15   : > { %1651 = vset.pattern.permute.xlu0 %v1766_v0  ;;  %v2081_v61 = vperm.slane %v2071_v57, 0  ;;  %v2089_v63 = vld [vmem:[%s2744_s2] ss:$0 sm:$0xff]  ;;  %s1573_s15 = sshll.u32 %s1833_s28, 8  ;;  %s1484_s22 = scalar_lea.sflag [#allocation3], %s270_s29 }
  0x16   : > { %s2792_s13 = smov (!%p274_p10, %s1566_s13), 63  ;;  %s1495_s19 = scalar_lea.hbm %s2749_s7, %s1573_s15 }
  0x17   : > { %s1567_s14 = sshll.u32 %s2792_s13, 3  ;;  %s1498_s21 = sshll.u32 %s1495_s19, 4  ;;  %s1499_s21 = int_to_ptr.hbm [resolvable:$true] %s1498_s21 }
  0x18   : > { %s1864_s17 = scalar_lea.vmem %s2742_s0, %s1567_s14  ;;  %s2628_s14 = scalar_lea.vmem [#allocation2], %s1565_s8 }
  0x19   : > { %v1867_v1 = vld [vmem:[%s1864_s17 + $0x20] sm:$0xff]  ;;  %v1870_v2 = vld [vmem:[%s1864_s17 + $0x10] sm:$0xff]  ;;  %v1879_v4 = vld [vmem:[%s1864_s17 + $0x28] sm:$0xff]  ;;  %s1496_s20 = sshll.u32 %s2628_s14, 4  ;;  %s1716_s28 = sshra.s32 %s1499_s21, 4  ;;  %s1497_s20 = int_to_ptr.vmem [resolvable:$true] %s1496_s20  ;;  %s1717_s28 = int_to_ptr.hbm [resolvable:$true] %s1716_s28 }
  0x1a   : > { %v1873_v3 = vld [vmem:[%s1864_s17] sm:$0xff]  ;;  %339 = vperm.xlu2 %1653, %v1867_v1   ;;  %329 = vperm.xlu1 %1652, %v1870_v2   ;;  %v1882_v5 = vld [vmem:[%s1864_s17 + $0x18] sm:$0xff]  ;;  %v1885_v6 = vld [vmem:[%s1864_s17 + $0x8] sm:$0xff]  ;;  %s1722_s9 = scalar_lea.hbm %s2749_s7, 512  ;;  %p1723_p0 = scmp.lt.s32.totalorder %s1717_s28, %s2749_s7 }
  0x1b   : > { %319 = vperm.xlu0 %1651, %v1873_v3   ;;  %v1891_v7 = vld [vmem:[%s1864_s17 + $0x40] sm:$0xff]  ;;  %v1894_v8 = vld [vmem:[%s1864_s17 + $0x38] sm:$0xff]  ;;  %v1897_v9 = vld [vmem:[%s1864_s17 + $0x30] sm:$0xff] }
  0x1c   : > { %v1903_v10 = vld [vmem:[%s1864_s17 + $0x58] sm:$0xff]  ;;  %v1906_v11 = vld [vmem:[%s1864_s17 + $0x50] sm:$0xff]  ;;  %v1909_v12 = vld [vmem:[%s1864_s17 + $0x48] sm:$0xff] }
  0x1d   : > { %v1915_v13 = vld [vmem:[%s1864_s17 + $0x70] sm:$0xff]  ;;  %v1918_v14 = vld [vmem:[%s1864_s17 + $0x68] sm:$0xff]  ;;  %v1921_v15 = vld [vmem:[%s1864_s17 + $0x60] sm:$0xff] }
  0x1e   : > { %v1927_v16 = vld [vmem:[%s1864_s17 + $0x88] sm:$0xff]  ;;  %v1930_v17 = vld [vmem:[%s1864_s17 + $0x80] sm:$0xff]  ;;  %v1933_v18 = vld [vmem:[%s1864_s17 + $0x78] sm:$0xff] }
  0x1f   : > { %v1939_v19 = vld [vmem:[%s1864_s17 + $0xa0] sm:$0xff]  ;;  %v1942_v20 = vld [vmem:[%s1864_s17 + $0x98] sm:$0xff]  ;;  %v1945_v21 = vld [vmem:[%s1864_s17 + $0x90] sm:$0xff] }
  0x20   : > { %v1951_v22 = vld [vmem:[%s1864_s17 + $0xb8] sm:$0xff]  ;;  %v1954_v23 = vld [vmem:[%s1864_s17 + $0xb0] sm:$0xff]  ;;  %v1957_v24 = vld [vmem:[%s1864_s17 + $0xa8] sm:$0xff] }
  0x21   : > { %v1963_v25 = vld [vmem:[%s1864_s17 + $0xd0] sm:$0xff]  ;;  %v1966_v26 = vld [vmem:[%s1864_s17 + $0xc8] sm:$0xff]  ;;  %v1969_v27 = vld [vmem:[%s1864_s17 + $0xc0] sm:$0xff] }
  0x22   : > { %344 = vperm.xlu2 %1653, %v1879_v4   ;;  %334 = vperm.xlu1 %1652, %v1882_v5   ;;  %v1975_v28 = vld [vmem:[%s1864_s17 + $0xe8] sm:$0xff]  ;;  %v1978_v29 = vld [vmem:[%s1864_s17 + $0xe0] sm:$0xff]  ;;  %v1981_v30 = vld [vmem:[%s1864_s17 + $0xd8] sm:$0xff] }
  0x23   : > { %324 = vperm.xlu0 %1651, %v1885_v6   ;;  %2762 = vst [vmem:[#allocation5_spill] sm:$0xff] %v1975_v28  ;;  %v1987_v31 = vld [vmem:[%s1864_s17 + $0xf8] sm:$0xff]  ;;  %v1990_v32 = vld [vmem:[%s1864_s17 + $0xf0] sm:$0xff] }
  0x24   : > { %2763 = vst [vmem:[#allocation6_spill] sm:$0xff] %v1990_v32 }
  0x2a   : > { %359 = vperm.xlu2 %1653, %v1891_v7   ;;  %354 = vperm.xlu1 %1652, %v1894_v8  }
  0x2b   : > { %349 = vperm.xlu0 %1651, %v1897_v9  }
  0x32   : > { %374 = vperm.xlu2 %1653, %v1903_v10   ;;  %369 = vperm.xlu1 %1652, %v1906_v11  }
  0x33   : > { %364 = vperm.xlu0 %1651, %v1909_v12  }
  0x3a   : > { %389 = vperm.xlu2 %1653, %v1915_v13   ;;  %384 = vperm.xlu1 %1652, %v1918_v14  }
  0x3b   : > { %379 = vperm.xlu0 %1651, %v1921_v15  }
  0x42   : > { %404 = vperm.xlu2 %1653, %v1927_v16   ;;  %399 = vperm.xlu1 %1652, %v1930_v17  }
  0x43   : > { %394 = vperm.xlu0 %1651, %v1933_v18  }
  0x4a   : > { %419 = vperm.xlu2 %1653, %v1939_v19   ;;  %414 = vperm.xlu1 %1652, %v1942_v20  }
  0x4b   : > { %409 = vperm.xlu0 %1651, %v1945_v21  }
  0x52   : > { %434 = vperm.xlu2 %1653, %v1951_v22   ;;  %429 = vperm.xlu1 %1652, %v1954_v23  }
  0x53   : > { %424 = vperm.xlu0 %1651, %v1957_v24  }
  0x5a   : > { %449 = vperm.xlu2 %1653, %v1963_v25   ;;  %444 = vperm.xlu1 %1652, %v1966_v26  }
  0x5b   : > { %439 = vperm.xlu0 %1651, %v1969_v27  }
  0x62   : > { %464 = vperm.xlu2 %1653, %v1975_v28   ;;  %459 = vperm.xlu1 %1652, %v1978_v29  }
  0x63   : > { %454 = vperm.xlu0 %1651, %v1981_v30  }
  0x6a   : > { %1654 = vset.pattern.permute.xlu2 %v2750_v33  ;;  %474 = vperm.xlu1 %1652, %v1987_v31  }
  0x6b   : > { %469 = vperm.xlu0 %1651, %v1990_v32   ;;  %543 = vperm.xlu2 %1654, %v1873_v3  }
  0x72   : > { %1655 = vset.pattern.permute.xlu1 %v2750_v33 }
  0x73   : > { %1657 = vset.pattern.permute.xlu0 %v2752_v34  ;;  %551 = vperm.xlu1 %1655, %v1870_v2  }
  0x74   : > { %555 = vperm.xlu2 %1654, %v1882_v5   ;;  %993 = vperm.xlu0 %1657, %v1930_v17   ;;  %v2001_v35 = vpop.permute.xlu2 %339 }
  0x7b   : > { %559 = vperm.xlu1 %1655, %v1867_v1  }
  0x7c   : > { %563 = vperm.xlu2 %1654, %v1879_v4   ;;  %1005 = vperm.xlu0 %1657, %v1942_v20   ;;  %v2006_v36 = vpop.permute.xlu2 %344 }
  0x83   : > { %571 = vperm.xlu1 %1655, %v1894_v8  }
  0x84   : > { %575 = vperm.xlu2 %1654, %v1891_v7   ;;  %1662 = vset.pattern.permute.xlu0 %v2756_v37  ;;  %v2011_v38 = vpop.permute.xlu2 %359 }
  0x85   : > { %808 = vperm.xlu0 %1662, %v1945_v21  }
  0x8b   : > { %583 = vperm.xlu1 %1655, %v1906_v11  }
  0x8c   : > { %587 = vperm.xlu2 %1654, %v1903_v10   ;;  %v2016_v39 = vpop.permute.xlu2 %374  ;;  %v2018_v40 = vpop.permute.xlu1 %329 }
  0x8d   : > { %748 = vperm.xlu0 %1662, %v1882_v5   ;;  %v320_v41 = vpop.permute.xlu0 %319 }
  0x8e   : > { %v478_v62 = vmul.f32 %v2081_v61, %v320_v41 }
  0x90   : > { %v510_v0 = vadd.f32 %v2089_v63, %v478_v62 }
  0x93   : > { %595 = vperm.xlu1 %1655, %v1918_v14  }
  0x94   : > { %599 = vperm.xlu2 %1654, %v1915_v13   ;;  %v2023_v42 = vpop.permute.xlu2 %389  ;;  %v335_v43 = vpop.permute.xlu1 %334 }
  0x95   : > { %760 = vperm.xlu0 %1662, %v1897_v9   ;;  %v2026_v44 = vpop.permute.xlu0 %324 }
  0x9b   : > { %607 = vperm.xlu1 %1655, %v1930_v17  }
  0x9c   : > { %611 = vperm.xlu2 %1654, %v1927_v16   ;;  %v2030_v45 = vpop.permute.xlu2 %404  ;;  %v2032_v46 = vpop.permute.xlu1 %354 }
  0x9d   : > { %764 = vperm.xlu0 %1662, %v1894_v8   ;;  %v2035_v47 = vpop.permute.xlu0 %349 }
  0xa3   : > { %619 = vperm.xlu1 %1655, %v1942_v20  }
  0xa4   : > { %623 = vperm.xlu2 %1654, %v1939_v19   ;;  %v2039_v48 = vpop.permute.xlu2 %419  ;;  %v2041_v49 = vpop.permute.xlu1 %369 }
  0xa5   : > { %836 = vperm.xlu0 %1662, %v1966_v26   ;;  %v2044_v50 = vpop.permute.xlu0 %364 }
  0xab   : > { %631 = vperm.xlu1 %1655, %v1954_v23  }
  0xac   : > { %1656 = vset.pattern.permute.xlu2 %v2756_v37  ;;  %v2048_v51 = vpop.permute.xlu2 %434  ;;  %v2050_v52 = vpop.permute.xlu1 %384 }
  0xad   : > { %2764 = vst [vmem:[#allocation7_spill] sm:$0xff] %v2048_v51  ;;  %800 = vperm.xlu2 %1656, %v1930_v17   ;;  %1674 = vset.pattern.permute.xlu0 %v2750_v33  ;;  %v2054_v53 = vpop.permute.xlu0 %379  ;;  %v2096_v17 = vperm.slane %v2071_v57, 1 }
  0xae   : > { %547 = vperm.xlu0 %1674, %v1885_v6  }
  0xb3   : > { %1658 = vset.pattern.permute.xlu1 %v2756_v37 }
  0xb4   : > { %v2058_v54 = vpop.permute.xlu2 %449  ;;  %804 = vperm.xlu1 %1658, %v1927_v16   ;;  %v2061_v55 = vpop.permute.xlu1 %399 }
  0xb5   : > { %1659 = vset.pattern.permute.xlu2 %v2752_v34  ;;  %v2064_v56 = vpop.permute.xlu0 %394 }
  0xb6   : > { %997 = vperm.xlu2 %1659, %v1927_v16   ;;  %567 = vperm.xlu0 %1674, %v1897_v9  }
  0xbc   : > { %v2073_v58 = vpop.permute.xlu2 %464  ;;  %v2075_v59 = vpop.permute.xlu1 %414  ;;  %736 = vperm.xlu1 %1658, %v1873_v3  }
  0xbd   : > { %2765 = vst [vmem:[#allocation8_spill] sm:$0xff] %v2073_v58  ;;  %v2078_v60 = vpop.permute.xlu0 %409 }
  0xbe   : > { %929 = vperm.xlu2 %1659, %v1873_v3   ;;  %579 = vperm.xlu0 %1674, %v1909_v12  }
  0xc4   : > { %v2092_v16 = vpop.permute.xlu1 %429  ;;  %1660 = vset.pattern.permute.xlu1 %v2752_v34  ;;  %v481_v34 = vmul.f32 %v2081_v61, %v335_v43  ;;  %v483_v43 = vmul.f32 %v2081_v61, %v2006_v36  ;;  %v1169_v36 = vld [vmem:[%s2745_s3 + $0x78] sm:$0xff] }
  0xc5   : > { %v2098_v33 = vpop.permute.xlu0 %424  ;;  %1001 = vperm.xlu1 %1660, %v1945_v21   ;;  %v544_v3 = vpop.permute.xlu2 %543  ;;  %1574 = vmatpush.msra.mxu2 %v1169_v36 }
  0xc6   : > { %1661 = vset.pattern.permute.xlu2 %v2756_v37  ;;  %v671_v41 = vmul.f32 %v2096_v17, %v544_v3  ;;  %591 = vperm.xlu0 %1674, %v1921_v15   ;;  %v513_v37 = vadd.f32 %v2089_v63, %v481_v34 }
  0xc7   : > { %740 = vperm.xlu2 %1661, %v1885_v6   ;;  %1173 = vmatpush.msra.mxu0 %v1169_v36 }
  0xc8   : > { %v2105_v62 = vadd.f32 %v671_v41, %v510_v0 }
  0xcc   : > { %v2108_v58 = vpop.permute.xlu1 %444 }
  0xcd   : > { %2766 = vst [vmem:[#allocation9_spill] sm:$0xff] %v2108_v58  ;;  %v2110_v51 = vpop.permute.xlu0 %439  ;;  %933 = vperm.xlu1 %1660, %v1885_v6   ;;  %v2767_v58 = vmov 2  }
  0xce   : > { %v556_v32 = vpop.permute.xlu2 %555  ;;  %603 = vperm.xlu0 %1674, %v1933_v18   ;;  %v515_v18 = vadd.f32 %v2089_v63, %v483_v43 }
  0xcf   : > { %v674_v3 = vmul.f32 %v2096_v17, %v556_v32  ;;  %812 = vperm.xlu2 %1661, %v1942_v20   ;;  %v2768_v32 = vmov 3  }
  0xd1   : > { %v2117_v28 = vadd.f32 %v674_v3, %v513_v37  ;;  %v486_v37 = vmul.f32 %v2081_v61, %v2011_v38  ;;  %v1166_v38 = vld [vmem:[%s2745_s3 + $0x60] sm:$0xff] }
  0xd4   : > { %v2121_v0 = vpop.permute.xlu1 %459 }
  0xd5   : > { %v2123_v41 = vpop.permute.xlu0 %454  ;;  %1663 = vset.pattern.permute.xlu1 %v2767_v58 }
  0xd6   : > { %v564_v6 = vpop.permute.xlu2 %563  ;;  %615 = vperm.xlu0 %1674, %v1945_v21   ;;  %744 = vperm.xlu1 %1663, %v1870_v2   ;;  %v1168_v21 = vld [vmem:[%s2745_s3 + $0x70] sm:$0xff] }
  0xd7   : > { %v676_v20 = vmul.f32 %v2096_v17, %v564_v6  ;;  %1664 = vset.pattern.permute.xlu2 %v2768_v32  ;;  %1575 = vmatpush.msra.mxu2 %v1168_v21 }
  0xd8   : > { %937 = vperm.xlu2 %1664, %v1870_v2   ;;  %v1167_v2 = vld [vmem:[%s2745_s3 + $0x68] sm:$0xff]  ;;  %1174 = vmatpush.msra.mxu0 %v1168_v21  ;;  %v1165_v21 = vld [vmem:[%s2745_s3 + $0x58] sm:$0xff] }
  0xd9   : > { %v2132_v34 = vadd.f32 %v676_v20, %v515_v18  ;;  %v518_v18 = vadd.f32 %v2089_v63, %v486_v37  ;;  %1576 = vmatpush.msra.mxu2 %v1167_v2  ;;  %v480_v37 = vmul.f32 %v2081_v61, %v2018_v40 }
  0xda   : > { %1175 = vmatpush.msra.mxu0 %v1167_v2  ;;  %v1164_v2 = vld [vmem:[%s2745_s3 + $0x50] sm:$0xff] }
  0xdb   : > { %1577 = vmatpush.msra.mxu2 %v1166_v38 }
  0xdc   : > { %v2142_v3 = vpop.permute.xlu1 %474  ;;  %1176 = vmatpush.msra.mxu0 %v1166_v38 }
  0xdd   : > { %2769 = vst [vmem:[#allocation10_spill] sm:$0xff] %v2142_v3  ;;  %v2147_v43 = vpop.permute.xlu0 %469  ;;  %1578 = vmatpush.msra.mxu2 %v1165_v21 }
  0xde   : > { %2770 = vst [vmem:[#allocation11_spill] sm:$0xff] %v2147_v43  ;;  %v576_v6 = vpop.permute.xlu2 %575  ;;  %627 = vperm.xlu0 %1674, %v1957_v24   ;;  %816 = vperm.xlu1 %1663, %v1939_v19  }
  0xdf   : > { %v679_v20 = vmul.f32 %v2096_v17, %v576_v6  ;;  %v489_v6 = vmul.f32 %v2081_v61, %v2016_v39  ;;  %1177 = vmatpush.msra.mxu0 %v1165_v21  ;;  %1579 = vmatpush.msra.mxu2 %v1164_v2 }
  0xe0   : > { %1009 = vperm.xlu2 %1664, %v1939_v19   ;;  %v1163_v19 = vld [vmem:[%s2745_s3 + $0x48] sm:$0xff] }
  0xe1   : > { %v2157_v36 = vadd.f32 %v679_v20, %v518_v18  ;;  %1178 = vmatpush.msra.mxu0 %v1164_v2  ;;  %v512_v20 = vadd.f32 %v2089_v63, %v480_v37  ;;  %v521_v21 = vadd.f32 %v2089_v63, %v489_v6  ;;  %1580 = vmatpush.msra.mxu2 %v1163_v19  ;;  %v1162_v37 = vld [vmem:[%s2745_s3 + $0x40] sm:$0xff] }
  0xe2   : > { %v492_v6 = vmul.f32 %v2081_v61, %v2023_v42 }
  0xe3   : > { %1179 = vmatpush.msra.mxu0 %v1163_v19  ;;  %1581 = vmatpush.msra.mxu2 %v1162_v37 }
  0xe5   : > { %v552_v18 = vpop.permute.xlu1 %551  ;;  %1180 = vmatpush.msra.mxu0 %v1162_v37 }
  0xe6   : > { %v673_v40 = vmul.f32 %v2096_v17, %v552_v18  ;;  %v588_v38 = vpop.permute.xlu2 %587  ;;  %647 = vperm.xlu0 %1674, %v1963_v25   ;;  %1665 = vset.pattern.permute.xlu1 %v2768_v32  ;;  %v2176_v39 = vpop.permute.xlu0 %993  ;;  %v1161_v18 = vld [vmem:[%s2745_s3 + $0x38] sm:$0xff] }
  0xe7   : > { %v682_v3 = vmul.f32 %v2096_v17, %v588_v38  ;;  %941 = vperm.xlu1 %1665, %v1882_v5   ;;  %v482_v5 = vmul.f32 %v2081_v61, %v2001_v35  ;;  %1582 = vmatpush.msra.mxu2 %v1161_v18 }
  0xe8   : > { %v2184_v2 = vadd.f32 %v673_v40, %v512_v20  ;;  %1666 = vset.pattern.permute.xlu2 %v2767_v58  ;;  %v1160_v20 = vld [vmem:[%s2745_s3 + $0x30] sm:$0xff]  ;;  %1181 = vmatpush.msra.mxu0 %v1161_v18  ;;  %v1158_v18 = vld [vmem:[%s2745_s3 + $0x20] sm:$0xff] }
  0xe9   : > { %v2190_v43 = vadd.f32 %v682_v3, %v521_v21  ;;  %820 = vperm.xlu2 %1666, %v1957_v24   ;;  %v1159_v3 = vld [vmem:[%s2745_s3 + $0x28] sm:$0xff]  ;;  %1583 = vmatpush.msra.mxu2 %v1160_v20  ;;  %v514_v40 = vadd.f32 %v2089_v63, %v482_v5  ;;  %v524_v21 = vadd.f32 %v2089_v63, %v492_v6  ;;  %v1157_v6 = vld [vmem:[%s2745_s3 + $0x18] sm:$0xff] }
  0xea   : > { %1182 = vmatpush.msra.mxu0 %v1160_v20  ;;  %v1156_v20 = vld [vmem:[%s2745_s3 + $0x10] sm:$0xff] }
  0xeb   : > { %2771 = vst [vmem:[#allocation12_spill] sm:$0xff] %v2190_v43  ;;  %1584 = vmatpush.msra.mxu2 %v1159_v3 }
  0xec   : > { %1183 = vmatpush.msra.mxu0 %v1159_v3 }
  0xed   : > { %v560_v19 = vpop.permute.xlu1 %559  ;;  %1585 = vmatpush.msra.mxu2 %v1158_v18 }
  0xee   : > { %v675_v35 = vmul.f32 %v2096_v17, %v560_v19  ;;  %v600_v38 = vpop.permute.xlu2 %599  ;;  %651 = vperm.xlu0 %1674, %v1981_v30   ;;  %v2206_v42 = vpop.permute.xlu0 %1005  ;;  %1184 = vmatpush.msra.mxu0 %v1158_v18 }
  0xef   : > { %v685_v37 = vmul.f32 %v2096_v17, %v600_v38  ;;  %1013 = vperm.xlu1 %1665, %v1957_v24   ;;  %v485_v24 = vmul.f32 %v2081_v61, %v2032_v46  ;;  %1586 = vmatpush.msra.mxu2 %v1157_v6 }
  0xf0   : > { %v2214_v5 = vadd.f32 %v675_v35, %v514_v40  ;;  %1185 = vmatpush.msra.mxu0 %v1157_v6  ;;  %v1155_v40 = vld [vmem:[%s2745_s3 + $0x8] sm:$0xff]  ;;  %v488_v6 = vmul.f32 %v2081_v61, %v2041_v49 }
  0xf1   : > { %v2216_v19 = vadd.f32 %v685_v37, %v524_v21  ;;  %752 = vperm.xlu2 %1666, %v1867_v1   ;;  %1587 = vmatpush.msra.mxu2 %v1156_v20  ;;  %v517_v35 = vadd.f32 %v2089_v63, %v485_v24  ;;  %v1154_v37 = vld [vmem:[%s2745_s3] sm:$0xff]  ;;  %v2250_v24 = vperm.slane %v2071_v57, 2 }
  0xf2   : > { %1186 = vmatpush.msra.mxu0 %v1156_v20 }
  0xf3   : > { %2772 = vst [vmem:[#allocation13_spill] sm:$0xff] %v2216_v19  ;;  %1588 = vmatpush.msra.mxu2 %v1155_v40 }
  0xf4   : > { %1187 = vmatpush.msra.mxu0 %v1155_v40 }
  0xf5   : > { %v572_v3 = vpop.permute.xlu1 %571  ;;  %1589 = vmatpush.msra.mxu2 %v1154_v37 }
  0xf6   : > { %v678_v38 = vmul.f32 %v2096_v17, %v572_v3  ;;  %v2232_v21 = vpop.permute.xlu2 %611  ;;  %1677 = vset.pattern.permute.xlu0 %v2768_v32  ;;  %1188 = vmatpush.msra.mxu0 %v1154_v37  ;;  %v520_v3 = vadd.f32 %v2089_v63, %v488_v6  ;;  %v491_v6 = vmul.f32 %v2081_v61, %v2050_v52  ;;  %v2280_v52 = vperm.slane %v2071_v57, 3 }
  0xf7   : > { %945 = vperm.xlu0 %1677, %v1867_v1   ;;  %v2236_v46 = vpop.permute.xlu0 %808  ;;  %1667 = vset.pattern.permute.xlu1 %v2767_v58  ;;  %v498_v1 = vmul.f32 %v2081_v61, %v2039_v48 }
  0xf8   : > { %v710_v18 = vadd.f32 %v678_v38, %v517_v35  ;;  %824 = vperm.xlu1 %1667, %v1954_v23  }
  0xf9   : > { %1668 = vset.pattern.permute.xlu2 %v2768_v32  ;;  %v530_v40 = vadd.f32 %v2089_v63, %v498_v1  ;;  %v2774_v1 = vmov 1  }
  0xfa   : > { %1017 = vperm.xlu2 %1668, %v1954_v23  }
  0xfd   : > { %v584_v20 = vpop.permute.xlu1 %583 }
  0xfe   : > { %v681_v35 = vmul.f32 %v2096_v17, %v584_v20  ;;  %v624_v38 = vpop.permute.xlu2 %623 }
  0xff   : > { %v691_v49 = vmul.f32 %v2096_v17, %v624_v38  ;;  %949 = vperm.xlu0 %1677, %v1879_v4   ;;  %v749_v23 = vpop.permute.xlu0 %748 }
 0x100   : > { %v2257_v19 = vadd.f32 %v681_v35, %v520_v3  ;;  %v867_v48 = vmul.f32 %v2250_v24, %v749_v23  ;;  %756 = vperm.xlu1 %1667, %v1879_v4   ;;  %v523_v3 = vadd.f32 %v2089_v63, %v491_v6 }
 0x101   : > { %v2261_v37 = vadd.f32 %v691_v49, %v530_v40 }
 0x102   : > { %2773 = vst [vmem:[#allocation14_spill] sm:$0xff] %v2257_v19  ;;  %v2266_v20 = vadd.f32 %v867_v48, %v2117_v28  ;;  %1669 = vset.pattern.permute.xlu2 %v2774_v1  ;;  %v494_v28 = vmul.f32 %v2081_v61, %v2061_v55  ;;  %v1073_v55 = vmul.f32 %v2280_v52, %v2176_v39 }
 0x103   : > { %635 = vperm.xlu2 %1669, %v1951_v22  }
 0x104   : > { %v526_v48 = vadd.f32 %v2089_v63, %v494_v28 }
 0x105   : > { %v596_v38 = vpop.permute.xlu1 %595 }
 0x106   : > { %v684_v35 = vmul.f32 %v2096_v17, %v596_v38 }
 0x107   : > { %1037 = vperm.xlu0 %1677, %v1981_v30   ;;  %v761_v4 = vpop.permute.xlu0 %760  ;;  %v801_v40 = vpop.permute.xlu2 %800 }
 0x108   : > { %v2273_v49 = vadd.f32 %v684_v35, %v523_v3  ;;  %828 = vperm.xlu1 %1667, %v1951_v22   ;;  %v880_v6 = vmul.f32 %v2250_v24, %v801_v40 }
 0x10a   : > { %2775 = vst [vmem:[#allocation15_spill] sm:$0xff] %v2273_v49 }
 0x10b   : > { %1670 = vset.pattern.permute.xlu2 %v2768_v32 }
 0x10c   : > { %1021 = vperm.xlu2 %1670, %v1951_v22  }
 0x10d   : > { %v608_v23 = vpop.permute.xlu1 %607 }
 0x10e   : > { %v687_v38 = vmul.f32 %v2096_v17, %v608_v23 }
 0x10f   : > { %1041 = vperm.xlu0 %1677, %v1978_v29   ;;  %v765_v3 = vpop.permute.xlu0 %764 }
 0x110   : > { %v719_v35 = vadd.f32 %v687_v38, %v526_v48  ;;  %v871_v49 = vmul.f32 %v2250_v24, %v765_v3  ;;  %1671 = vset.pattern.permute.xlu1 %v2774_v1  ;;  %v998_v57 = vpop.permute.xlu2 %997  ;;  %v500_v48 = vmul.f32 %v2081_v61, %v2092_v16  ;;  %v495_v38 = vmul.f32 %v2081_v61, %v2030_v45 }
 0x111   : > { %639 = vperm.xlu1 %1671, %v1969_v27   ;;  %v497_v3 = vmul.f32 %v2081_v61, %v2075_v59 }
 0x112   : > { %v2292_v22 = vadd.f32 %v871_v49, %v710_v18  ;;  %v912_v28 = vadd.f32 %v880_v6, %v719_v35  ;;  %v484_v35 = vmul.f32 %v2081_v61, %v2035_v47 }
 0x114   : > { %953 = vperm.xlu2 %1670, %v1897_v9   ;;  %v1105_v40 = vadd.f32 %v1073_v55, %v912_v28  ;;  %v532_v9 = vadd.f32 %v2089_v63, %v500_v48  ;;  %v527_v55 = vadd.f32 %v2089_v63, %v495_v38  ;;  %v1074_v48 = vmul.f32 %v2280_v52, %v998_v57 }
 0x115   : > { %v620_v23 = vpop.permute.xlu1 %619 }
 0x116   : > { %v1137_v43 = vmax.f32 %v1105_v40, 0.0  ;;  %v690_v45 = vmul.f32 %v2096_v17, %v620_v23  ;;  %v1076_v23 = vmul.f32 %v2280_v52, %v2206_v42 }
 0x117   : > { %973 = vperm.xlu0 %1677, %v1903_v10   ;;  %v2296_v19 = vpop.permute.xlu0 %836 }
 0x118   : > { %v930_v39 = vpop.permute.xlu2 %929  ;;  %1237 = vmatmul.f32.vlgmr.msra.gmra.mxu2 %v1137_v43 }
 0x119   : > { %1672 = vset.pattern.permute.xlu1 %v2767_v58 }
 0x11a   : > { %832 = vperm.xlu1 %1672, %v1969_v27  }
 0x11c   : > { %1025 = vperm.xlu2 %1670, %v1969_v27   ;;  %v688_v27 = vmul.f32 %v2096_v17, %v2232_v21 }
 0x11d   : > { %v632_v18 = vpop.permute.xlu1 %631 }
 0x11e   : > { %v693_v49 = vmul.f32 %v2096_v17, %v632_v18  ;;  %v720_v40 = vadd.f32 %v688_v27, %v527_v55  ;;  %v529_v18 = vadd.f32 %v2089_v63, %v497_v3 }
 0x11f   : > { %1685 = vset.pattern.permute.xlu0 %v2767_v58 }
 0x120   : > { %v2306_v6 = vadd.f32 %v693_v49, %v532_v9  ;;  %784 = vperm.xlu0 %1685, %v1921_v15   ;;  %v548_v43 = vpop.permute.xlu0 %547  ;;  %v870_v9 = vmul.f32 %v2250_v24, %v761_v4  ;;  %v722_v27 = vadd.f32 %v690_v45, %v529_v18  ;;  %v487_v4 = vmul.f32 %v2081_v61, %v2044_v50 }
 0x121   : > { %v2311_v16 = vpop.permute.xlu2 %740 }
 0x122   : > { %1673 = vset.pattern.permute.xlu1 %v2774_v1 }
 0x123   : > { %643 = vperm.xlu1 %1673, %v1966_v26  }
 0x124   : > { %957 = vperm.xlu2 %1670, %v1894_v8   ;;  %v516_v8 = vadd.f32 %v2089_v63, %v484_v35 }
 0x126   : > { %v805_v28 = vpop.permute.xlu1 %804 }
 0x127   : > { %v881_v21 = vmul.f32 %v2250_v24, %v805_v28 }
 0x128   : > { %788 = vperm.xlu0 %1685, %v1918_v14   ;;  %v568_v59 = vpop.permute.xlu0 %567 }
 0x129   : > { %v913_v49 = vadd.f32 %v881_v21, %v720_v40  ;;  %v677_v47 = vmul.f32 %v2096_v17, %v568_v59  ;;  %v813_v38 = vpop.permute.xlu2 %812  ;;  %v519_v21 = vadd.f32 %v2089_v63, %v487_v4 }
 0x12a   : > { %v883_v57 = vmul.f32 %v2250_v24, %v813_v38 }
 0x12b   : > { %v709_v55 = vadd.f32 %v677_v47, %v516_v8  ;;  %1675 = vset.pattern.permute.xlu1 %v2768_v32  ;;  %v1106_v3 = vadd.f32 %v1074_v48, %v913_v49  ;;  %v490_v49 = vmul.f32 %v2081_v61, %v2054_v53  ;;  %v479_v47 = vmul.f32 %v2081_v61, %v2026_v44 }
 0x12c   : > { %v915_v14 = vadd.f32 %v883_v57, %v722_v27  ;;  %1676 = vset.pattern.permute.xlu2 %v2767_v58  ;;  %1029 = vperm.xlu1 %1675, %v1966_v26   ;;  %v1057_v26 = vmul.f32 %v2280_v52, %v930_v39  ;;  %v865_v44 = vmul.f32 %v2250_v24, %v2311_v16 }
 0x12d   : > { %768 = vperm.xlu2 %1676, %v1891_v7   ;;  %v1138_v35 = vmax.f32 %v1106_v3, 0.0  ;;  %v2340_v28 = vadd.f32 %v870_v9, %v709_v55  ;;  %v511_v53 = vadd.f32 %v2089_v63, %v479_v47 }
 0x12e   : > { %v737_v42 = vpop.permute.xlu1 %736  ;;  %v2342_v45 = vadd.f32 %v1076_v23, %v915_v14  ;;  %v522_v23 = vadd.f32 %v2089_v63, %v490_v49 }
 0x12f   : > { %v864_v40 = vmul.f32 %v2250_v24, %v737_v42  ;;  %1240 = vmatmul.f32.gmra.mxu2 %v1138_v35 }
 0x130   : > { %v580_v48 = vpop.permute.xlu0 %579  ;;  %860 = vperm.xlu0 %1685, %v1987_v31  }
 0x131   : > { %v896_v50 = vadd.f32 %v864_v40, %v2105_v62  ;;  %v680_v18 = vmul.f32 %v2096_v17, %v580_v48  ;;  %v672_v62 = vmul.f32 %v2096_v17, %v548_v43  ;;  %v493_v43 = vmul.f32 %v2081_v61, %v2064_v56 }
 0x132   : > { %v938_v59 = vpop.permute.xlu2 %937  ;;  %v496_v56 = vmul.f32 %v2081_v61, %v2078_v60 }
 0x133   : > { %v2350_v8 = vadd.f32 %v680_v18, %v519_v21  ;;  %v1089_v9 = vadd.f32 %v1057_v26, %v896_v50  ;;  %v704_v55 = vadd.f32 %v672_v62, %v511_v53  ;;  %v525_v35 = vadd.f32 %v2089_v63, %v493_v43 }
 0x134   : > { %961 = vperm.xlu1 %1675, %v1891_v7   ;;  %v528_v50 = vadd.f32 %v2089_v63, %v496_v56  ;;  %v1059_v18 = vmul.f32 %v2280_v52, %v938_v59  ;;  %v504_v53 = vmul.f32 %v2081_v61, %v2058_v54 }
 0x135   : > { %840 = vperm.xlu2 %1676, %v1963_v25   ;;  %v1121_v31 = vmax.f32 %v1089_v9, 0.0  ;;  %v897_v14 = vadd.f32 %v865_v44, %v704_v55 }
 0x136   : > { %v536_v44 = vadd.f32 %v2089_v63, %v504_v53 }
 0x137   : > { %v1002_v39 = vpop.permute.xlu1 %1001  ;;  %1189 = vmatmul.f32.vlgmr.msra.gmra.mxu0 %v1121_v31 }
 0x138   : > { %v592_v38 = vpop.permute.xlu0 %591  ;;  %1691 = vset.pattern.permute.xlu0 %v2768_v32 }
 0x139   : > { %v683_v7 = vmul.f32 %v2096_v17, %v592_v38  ;;  %985 = vperm.xlu0 %1691, %v1915_v13  }
 0x13a   : > { %v1010_v27 = vpop.permute.xlu2 %1009 }
 0x13b   : > { %v2364_v57 = vadd.f32 %v683_v7, %v522_v23 }
 0x13c   : > { %1033 = vperm.xlu1 %1675, %v1963_v25  }
 0x13d   : > { %772 = vperm.xlu2 %1676, %v1909_v12  }
 0x13f   : > { %v934_v3 = vpop.permute.xlu1 %933 }
 0x140   : > { %v1058_v13 = vmul.f32 %v2280_v52, %v934_v3  ;;  %v604_v4 = vpop.permute.xlu0 %603  ;;  %v499_v3 = vmul.f32 %v2081_v61, %v2098_v33 }
 0x141   : > { %v686_v42 = vmul.f32 %v2096_v17, %v604_v4  ;;  %v1140_v4 = vmax.f32 %v2342_v45, 0.0 }
 0x142   : > { %v1090_v40 = vadd.f32 %v1058_v13, %v897_v14  ;;  %v531_v33 = vadd.f32 %v2089_v63, %v499_v3 }
 0x143   : > { %v2375_v48 = vadd.f32 %v686_v42, %v525_v35  ;;  %v821_v16 = vpop.permute.xlu2 %820  ;;  %v1077_v42 = vmul.f32 %v2280_v52, %v1010_v27 }
 0x144   : > { %965 = vperm.xlu1 %1675, %v1909_v12   ;;  %v1122_v25 = vmax.f32 %v1090_v40, 0.0  ;;  %v882_v12 = vmul.f32 %v2250_v24, %v2236_v46  ;;  %v885_v27 = vmul.f32 %v2250_v24, %v821_v16 }
 0x145   : > { %844 = vperm.xlu2 %1676, %v1981_v30   ;;  %v1075_v30 = vmul.f32 %v2280_v52, %v1002_v39 }
 0x146   : > { %1192 = vmatmul.f32.gmra.mxu0 %v1122_v25 }
 0x148   : > { %v616_v21 = vpop.permute.xlu0 %615  ;;  %v745_v26 = vpop.permute.xlu1 %744 }
 0x149   : > { %v689_v9 = vmul.f32 %v2096_v17, %v616_v21  ;;  %v866_v49 = vmul.f32 %v2250_v24, %v745_v26  ;;  %v2776_v26 = vld [vmem:[#allocation5_spill] sm:$0xff] }
 0x14b   : > { %v721_v31 = vadd.f32 %v689_v9, %v528_v50  ;;  %v898_v47 = vadd.f32 %v866_v49, %v2184_v2  ;;  %v2388_v60 = vpop.permute.xlu2 %752  ;;  %v1334_v49 = vld [vmem:[%s2747_s5 + $0x78] sm:$0xff] }
 0x14c   : > { %1678 = vset.pattern.permute.xlu1 %v2767_v58  ;;  %1590 = vmatpush.msra.mxu3 %v1334_v49 }
 0x14d   : > { %1679 = vset.pattern.permute.xlu2 %v2774_v1  ;;  %776 = vperm.xlu1 %1678, %v1906_v11   ;;  %v1091_v59 = vadd.f32 %v1059_v18, %v898_v47  ;;  %v914_v62 = vadd.f32 %v882_v12, %v721_v31 }
 0x14e   : > { %655 = vperm.xlu2 %1679, %v1978_v29   ;;  %1338 = vmatpush.msra.mxu1 %v1334_v49 }
 0x14f   : > { %v1123_v38 = vmax.f32 %v1091_v59, 0.0  ;;  %v1107_v23 = vadd.f32 %v1075_v30, %v914_v62  ;;  %v1332_v30 = vld [vmem:[%s2747_s5 + $0x68] sm:$0xff]  ;;  %v868_v59 = vmul.f32 %v2250_v24, %v2388_v60  ;;  %v1330_v60 = vld [vmem:[%s2747_s5 + $0x58] sm:$0xff] }
 0x150   : > { %v628_v46 = vpop.permute.xlu0 %627  ;;  %v817_v7 = vpop.permute.xlu1 %816 }
 0x151   : > { %1195 = vmatmul.f32.gmra.mxu0 %v1123_v38  ;;  %v1139_v2 = vmax.f32 %v1107_v23, 0.0  ;;  %v884_v39 = vmul.f32 %v2250_v24, %v817_v7  ;;  %v1331_v38 = vld [vmem:[%s2747_s5 + $0x60] sm:$0xff]  ;;  %v900_v7 = vadd.f32 %v868_v59, %v2214_v5  ;;  %v1328_v5 = vld [vmem:[%s2747_s5 + $0x48] sm:$0xff] }
 0x153   : > { %1243 = vmatmul.f32.gmra.mxu2 %v1139_v2  ;;  %v916_v54 = vadd.f32 %v884_v39, %v2261_v37  ;;  %v505_v37 = vmul.f32 %v2081_v61, %v2123_v41  ;;  %v1329_v39 = vld [vmem:[%s2747_s5 + $0x50] sm:$0xff] }
 0x154   : > { %v2397_v55 = vpop.permute.xlu2 %1017 }
 0x155   : > { %1680 = vset.pattern.permute.xlu1 %v2768_v32  ;;  %v1109_v56 = vadd.f32 %v1077_v42, %v916_v54  ;;  %v537_v50 = vadd.f32 %v2089_v63, %v505_v37  ;;  %v1326_v42 = vld [vmem:[%s2747_s5 + $0x38] sm:$0xff] }
 0x156   : > { %1681 = vset.pattern.permute.xlu2 %v2767_v58  ;;  %969 = vperm.xlu1 %1680, %v1906_v11   ;;  %v692_v11 = vmul.f32 %v2096_v17, %v628_v46 }
 0x157   : > { %848 = vperm.xlu2 %1681, %v1978_v29   ;;  %v1141_v9 = vmax.f32 %v1109_v56, 0.0  ;;  %v1325_v56 = vld [vmem:[%s2747_s5 + $0x30] sm:$0xff] }
 0x158   : > { %v648_v43 = vpop.permute.xlu0 %647  ;;  %v724_v21 = vadd.f32 %v692_v11, %v531_v33 }
 0x159   : > { %v697_v14 = vmul.f32 %v2096_v17, %v648_v43  ;;  %v942_v13 = vpop.permute.xlu1 %941 }
 0x15a   : > { %v1060_v35 = vmul.f32 %v2280_v52, %v942_v13  ;;  %v917_v31 = vadd.f32 %v885_v27, %v724_v21  ;;  %v1324_v21 = vld [vmem:[%s2747_s5 + $0x28] sm:$0xff] }
 0x15b   : > { %v2413_v29 = vadd.f32 %v697_v14, %v536_v44  ;;  %1246 = vmatmul.f32.gmra.mxu2 %v1140_v4  ;;  %v1079_v44 = vmul.f32 %v2280_v52, %v2397_v55  ;;  %v1327_v55 = vld [vmem:[%s2747_s5 + $0x40] sm:$0xff] }
 0x15c   : > { %v1092_v40 = vadd.f32 %v1060_v35, %v2266_v20  ;;  %v2777_v35 = vld [vmem:[#allocation6_spill] sm:$0xff] }
 0x15d   : > { %v2419_v25 = vpop.permute.xlu2 %635 }
 0x15e   : > { %1682 = vset.pattern.permute.xlu1 %v2767_v58  ;;  %v1124_v45 = vmax.f32 %v1092_v40, 0.0 }
 0x15f   : > { %1683 = vset.pattern.permute.xlu2 %v2774_v1  ;;  %780 = vperm.xlu1 %1682, %v1903_v10   ;;  %v1333_v10 = vld [vmem:[%s2747_s5 + $0x70] sm:$0xff] }
 0x160   : > { %659 = vperm.xlu2 %1683, %v2776_v26   ;;  %v652_v20 = vpop.permute.xlu0 %651  ;;  %1198 = vmatmul.f32.gmra.mxu0 %v1124_v45 }
 0x161   : > { %v698_v41 = vmul.f32 %v2096_v17, %v652_v20  ;;  %v1014_v18 = vpop.permute.xlu1 %1013  ;;  %1591 = vmatpush.msra.mxu3 %v1333_v10  ;;  %1339 = vmatpush.msra.mxu1 %v1333_v10  ;;  %v694_v20 = vmul.f32 %v2096_v17, %v2419_v25  ;;  %v1322_v25 = vld [vmem:[%s2747_s5 + $0x18] sm:$0xff] }
 0x162   : > { %v1078_v16 = vmul.f32 %v2280_v52, %v1014_v18 }
 0x163   : > { %v2435_v12 = vadd.f32 %v698_v41, %v537_v50  ;;  %1249 = vmatmul.f32.gmra.mxu2 %v1141_v9  ;;  %1592 = vmatpush.msra.mxu3 %v1332_v30  ;;  %v1323_v41 = vld [vmem:[%s2747_s5 + $0x20] sm:$0xff] }
 0x164   : > { %v1110_v47 = vadd.f32 %v1078_v16, %v917_v31  ;;  %1340 = vmatpush.msra.mxu1 %v1332_v30 }
 0x165   : > { %1593 = vmatpush.msra.mxu3 %v1331_v38 }
 0x166   : > { %v2442_v62 = vpop.permute.xlu2 %1021  ;;  %v1142_v46 = vmax.f32 %v1110_v47, 0.0  ;;  %1341 = vmatpush.msra.mxu1 %v1331_v38  ;;  %v1321_v47 = vld [vmem:[%s2747_s5 + $0x10] sm:$0xff]  ;;  %v1320_v38 = vld [vmem:[%s2747_s5 + $0x8] sm:$0xff] }
 0x167   : > { %852 = vperm.xlu1 %1682, %v2776_v26   ;;  %1594 = vmatpush.msra.mxu3 %v1330_v60  ;;  %v1080_v10 = vmul.f32 %v2280_v52, %v2442_v62 }
 0x168   : > { %1684 = vset.pattern.permute.xlu2 %v2768_v32  ;;  %1342 = vmatpush.msra.mxu1 %v1330_v60 }
 0x169   : > { %1045 = vperm.xlu2 %1684, %v2776_v26   ;;  %v946_v23 = vpop.permute.xlu0 %945  ;;  %1595 = vmatpush.msra.mxu3 %v1329_v39 }
 0x16a   : > { %v1061_v2 = vmul.f32 %v2280_v52, %v946_v23  ;;  %v825_v53 = vpop.permute.xlu1 %824  ;;  %1343 = vmatpush.msra.mxu1 %v1329_v39 }
 0x16b   : > { %v886_v43 = vmul.f32 %v2250_v24, %v825_v53  ;;  %1252 = vmatmul.f32.gmra.mxu2 %v1142_v46  ;;  %1596 = vmatpush.msra.mxu3 %v1328_v5  ;;  %v1319_v46 = vld [vmem:[%s2747_s5] sm:$0xff]  ;;  %v1698_v53 = vld [vmem:[%s1864_s17 + $0xf8] sm:$0xff] }
 0x16c   : > { %v1093_v3 = vadd.f32 %v1061_v2, %v900_v7  ;;  %1344 = vmatpush.msra.mxu1 %v1328_v5  ;;  %v1697_v7 = vld [vmem:[%s1864_s17 + $0x68] sm:$0xff]  ;;  %v1699_v5 = vld [vmem:[%s1864_s17 + $0x70] sm:$0xff] }
 0x16d   : > { %v918_v54 = vadd.f32 %v886_v43, %v2306_v6  ;;  %1597 = vmatpush.msra.mxu3 %v1327_v55  ;;  %v502_v43 = vmul.f32 %v2081_v61, %v2110_v51 }
 0x16e   : > { %v954_v14 = vpop.permute.xlu2 %953  ;;  %v1125_v13 = vmax.f32 %v1093_v3, 0.0  ;;  %1345 = vmatpush.msra.mxu1 %v1327_v55 }
 0x16f   : > { %1686 = vset.pattern.permute.xlu1 %v2774_v1  ;;  %v1111_v4 = vadd.f32 %v1079_v44, %v918_v54  ;;  %1598 = vmatpush.msra.mxu3 %v1326_v42  ;;  %v1063_v18 = vmul.f32 %v2280_v52, %v954_v14  ;;  %v534_v14 = vadd.f32 %v2089_v63, %v502_v43 }
 0x170   : > { %1201 = vmatmul.f32.gmra.mxu0 %v1125_v13  ;;  %663 = vperm.xlu1 %1686, %v2777_v35  }
 0x171   : > { %977 = vperm.xlu2 %1684, %v1921_v15   ;;  %v1143_v6 = vmax.f32 %v1111_v4, 0.0  ;;  %v950_v11 = vpop.permute.xlu0 %949  ;;  %1346 = vmatpush.msra.mxu1 %v1326_v42  ;;  %v2778_v15 = vld [vmem:[#allocation7_spill] sm:$0xff]  ;;  %v1095_v59 = vadd.f32 %v1063_v18, %v2340_v28  ;;  %v2779_v42 = vld [vmem:[#allocation9_spill] sm:$0xff] }
 0x172   : > { %v757_v40 = vpop.permute.xlu1 %756  ;;  %v1062_v33 = vmul.f32 %v2280_v52, %v950_v11  ;;  %v501_v45 = vmul.f32 %v2081_v61, %v2778_v15  ;;  %1599 = vmatpush.msra.mxu3 %v1325_v56  ;;  %v503_v11 = vmul.f32 %v2081_v61, %v2779_v42 }
 0x173   : > { %v869_v37 = vmul.f32 %v2250_v24, %v757_v40  ;;  %1255 = vmatmul.f32.gmra.mxu2 %v1143_v6  ;;  %1347 = vmatpush.msra.mxu1 %v1325_v56  ;;  %v1127_v28 = vmax.f32 %v1095_v59, 0.0 }
 0x174   : > { %1600 = vmatpush.msra.mxu3 %v1324_v21  ;;  %v535_v56 = vadd.f32 %v2089_v63, %v503_v11 }
 0x175   : > { %v901_v27 = vadd.f32 %v869_v37, %v2132_v34  ;;  %1348 = vmatpush.msra.mxu1 %v1324_v21  ;;  %v533_v34 = vadd.f32 %v2089_v63, %v501_v45 }
 0x176   : > { %v1026_v26 = vpop.permute.xlu2 %1025  ;;  %1601 = vmatpush.msra.mxu3 %v1323_v41 }
 0x177   : > { %v1094_v50 = vadd.f32 %v1062_v33, %v901_v27  ;;  %1349 = vmatpush.msra.mxu1 %v1323_v41  ;;  %v726_v16 = vadd.f32 %v694_v20, %v533_v34  ;;  %v1081_v51 = vmul.f32 %v2280_v52, %v1026_v26  ;;  %v1700_v33 = vld [vmem:[%s1864_s17 + $0x78] sm:$0xff]  ;;  %v889_v27 = vmul.f32 %v2250_v24, %v2296_v19  ;;  %s1718_s17 = scalar_lea.hbm %s1717_s28, 256 }
 0x178   : > { %1687 = vset.pattern.permute.xlu1 %v2767_v58  ;;  %1602 = vmatpush.msra.mxu3 %v1322_v25  ;;  %p1719_p11 = scmp.ne.s32.totalorder %s1717_s28, %s1718_s17  ;;  %p1724_p1 = scmp.lt.s32.totalorder %s1722_s9, %s1718_s17 }
 0x179   : > { %1049 = vperm.xlu2 %1684, %v2777_v35   ;;  %856 = vperm.xlu1 %1687, %v2777_v35   ;;  %v1126_v9 = vmax.f32 %v1094_v50, 0.0 }
 0x17a   : > { %v829_v49 = vpop.permute.xlu1 %828  ;;  %1350 = vmatpush.msra.mxu1 %v1322_v25  ;;  %1603 = vmatpush.msra.mxu3 %v1321_v47  ;;  %p1720_p12 = pnand %p1719_p11, %p1850_p5  ;;  %p1725_p2 = por %p1724_p1, %p1723_p0 }
 0x17b   : > { %v887_v31 = vmul.f32 %v2250_v24, %v829_v49  ;;  %1204 = vmatmul.f32.gmra.mxu0 %v1126_v9 }
 0x17c   : > { %1351 = vmatpush.msra.mxu1 %v1321_v47  ;;  %1604 = vmatpush.msra.mxu3 %v1320_v38  ;;  %v1038_v47 = vpop.permute.xlu0 %1037  ;;  %p1721_p13 = pneg %p1720_p12 }
 0x17d   : > { %v919_v30 = vadd.f32 %v887_v31, %v726_v16 }
 0x17e   : > { %v958_v23 = vpop.permute.xlu2 %957  ;;  %1352 = vmatpush.msra.mxu1 %v1320_v38  ;;  %1605 = vmatpush.msra.mxu3 %v1319_v46  ;;  %p1726_p3 = pnand %p1725_p2, %p1721_p13 }
 0x17f   : > { %v1112_v62 = vadd.f32 %v1080_v10, %v919_v30  ;;  %v1064_v60 = vmul.f32 %v2280_v52, %v958_v23 }
 0x180   : > { %1353 = vmatpush.msra.mxu1 %v1319_v46 }
 0x181   : > { %981 = vperm.xlu2 %1684, %v1697_v7   ;;  %1688 = vset.pattern.permute.xlu1 %v2774_v1  ;;  %v1144_v2 = vmax.f32 %v1112_v62, 0.0  ;;  %v1096_v44 = vadd.f32 %v1064_v60, %v2292_v22 }
 0x182   : > { %667 = vperm.xlu1 %1688, %v1698_v53  }
 0x183   : > { %v640_v39 = vpop.permute.xlu1 %639  ;;  %1207 = vmatmul.f32.gmra.mxu0 %v1127_v28  ;;  %1258 = vmatmul.f32.gmra.mxu2 %v1144_v2  ;;  %v1128_v1 = vmax.f32 %v1096_v44, 0.0 }
 0x184   : > { %v695_v54 = vmul.f32 %v2096_v17, %v640_v39 }
 0x186   : > { %v727_v22 = vadd.f32 %v695_v54, %v534_v14 }
 0x187   : > { %v769_v3 = vpop.permute.xlu2 %768 }
 0x188   : > { %v872_v9 = vmul.f32 %v2250_v24, %v769_v3  ;;  %v1042_v3 = vpop.permute.xlu0 %1041 }
 0x189   : > { %1690 = vset.pattern.permute.xlu2 %v2767_v58  ;;  %v1085_v11 = vmul.f32 %v2280_v52, %v1042_v3 }
 0x18a   : > { %792 = vperm.xlu2 %1690, %v1699_v5   ;;  %1689 = vset.pattern.permute.xlu1 %v2768_v32  ;;  %v904_v49 = vadd.f32 %v872_v9, %v2157_v36  ;;  %v506_v36 = vmul.f32 %v2081_v61, %v2121_v0  ;;  %v2559_v0 = vld [vmem:[%s2744_s2] ss:$0 sm:$0xff] }
 0x18b   : > { %1053 = vperm.xlu1 %1689, %v1698_v53   ;;  %1210 = vmatmul.f32.gmra.mxu0 %v1128_v1  ;;  %v1084_v53 = vmul.f32 %v2280_v52, %v1038_v47 }
 0x18c   : > { %v833_v13 = vpop.permute.xlu1 %832  ;;  %v538_v14 = vadd.f32 %v2559_v0, %v506_v36 }
 0x18d   : > { %v888_v4 = vmul.f32 %v2250_v24, %v833_v13 }
 0x18f   : > { %v920_v55 = vadd.f32 %v888_v4, %v727_v22  ;;  %v841_v35 = vpop.permute.xlu2 %840 }
 0x190   : > { %v890_v30 = vmul.f32 %v2250_v24, %v841_v35 }
 0x191   : > { %v1113_v6 = vadd.f32 %v1081_v51, %v920_v55 }
 0x192   : > { %1693 = vset.pattern.permute.xlu2 %v2768_v32  ;;  %v2537_v32 = vld [vmem:[%s2746_s4] ss:$0 sm:$0xff]  ;;  %v922_v23 = vadd.f32 %v890_v30, %v2413_v29 }
 0x193   : > { %1692 = vset.pattern.permute.xlu1 %v2767_v58  ;;  %v1145_v40 = vmax.f32 %v1113_v6, 0.0  ;;  %989 = vperm.xlu2 %1693, %v1700_v33  }
 0x194   : > { %796 = vperm.xlu1 %1692, %v1700_v33  }
 0x195   : > { %v644_v37 = vpop.permute.xlu1 %643  ;;  %1261 = vmatmul.f32.gmra.mxu2 %v1145_v40 }
 0x196   : > { %v696_v15 = vmul.f32 %v2096_v17, %v644_v37 }
 0x197   : > { %v773_v45 = vpop.permute.xlu2 %772 }
 0x198   : > { %v728_v21 = vadd.f32 %v696_v15, %v535_v56  ;;  %v873_v28 = vmul.f32 %v2250_v24, %v773_v45 }
 0x19a   : > { %v921_v58 = vadd.f32 %v889_v27, %v728_v21 }
 0x19b   : > { %v1238_v26 = vpop.f32.mrf.mxu2 }
 0x19c   : > { %v1239_v20 = vadd.f32 %v2537_v32, %v1238_v26 }
 0x19e   : > { %v1302_v50 = vmax.f32 %v1239_v20, 0.0  ;;  %v1030_v41 = vpop.permute.xlu1 %1029 }
 0x19f   : > { %v1082_v63 = vmul.f32 %v2280_v52, %v1030_v41  ;;  %v845_v34 = vpop.permute.xlu2 %844 }
 0x1a0   : > { %1402 = vmatmul.f32.vlgmr.msra.gmra.mxu3 %v1302_v50  ;;  %v891_v62 = vmul.f32 %v2250_v24, %v845_v34 }
 0x1a1   : > { %v1114_v18 = vadd.f32 %v1082_v63, %v921_v58  ;;  %v2780_v63 = vld [vmem:[#allocation14_spill] sm:$0xff] }
 0x1a2   : > { %v923_v39 = vadd.f32 %v891_v62, %v2435_v12  ;;  %v905_v12 = vadd.f32 %v873_v28, %v2350_v8  ;;  %v974_v8 = vpop.permute.xlu0 %973 }
 0x1a3   : > { %v1146_v19 = vmax.f32 %v1114_v18, 0.0  ;;  %v1068_v62 = vmul.f32 %v2280_v52, %v974_v8 }
 0x1a4   : > { %v1116_v55 = vadd.f32 %v1084_v53, %v923_v39 }
 0x1a5   : > { %1264 = vmatmul.f32.gmra.mxu2 %v1146_v19 }
 0x1a6   : > { %v962_v25 = vpop.permute.xlu1 %961  ;;  %v1148_v37 = vmax.f32 %v1116_v55, 0.0 }
 0x1a7   : > { %v1065_v16 = vmul.f32 %v2280_v52, %v962_v25 }
 0x1a8   : > { %v656_v10 = vpop.permute.xlu2 %655 }
 0x1a9   : > { %v1097_v31 = vadd.f32 %v1065_v16, %v904_v49  ;;  %v699_v54 = vmul.f32 %v2096_v17, %v656_v10 }
 0x1aa   : > { %v785_v41 = vpop.permute.xlu0 %784 }
 0x1ab   : > { %v1129_v59 = vmax.f32 %v1097_v31, 0.0  ;;  %v731_v35 = vadd.f32 %v699_v54, %v538_v14 }
 0x1ad   : > { %1213 = vmatmul.f32.gmra.mxu0 %v1129_v59 }
 0x1ae   : > { %v1034_v38 = vpop.permute.xlu1 %1033 }
 0x1af   : > { %v1083_v46 = vmul.f32 %v2280_v52, %v1034_v38  ;;  %v2781_v38 = vld [vmem:[#allocation8_spill] sm:$0xff] }
 0x1b1   : > { %v849_v60 = vpop.permute.xlu2 %848  ;;  %v1115_v7 = vadd.f32 %v1083_v46, %v922_v23  ;;  %v507_v23 = vmul.f32 %v2081_v61, %v2781_v38  ;;  %v2782_v46 = vld [vmem:[#allocation12_spill] sm:$0xff] }
 0x1b2   : > { %v1241_v2 = vpop.f32.mrf.mxu2  ;;  %v892_v22 = vmul.f32 %v2250_v24, %v849_v60  ;;  %v789_v30 = vpop.permute.xlu0 %788 }
 0x1b3   : > { %v1242_v44 = vadd.f32 %v2537_v32, %v1241_v2  ;;  %v1147_v43 = vmax.f32 %v1115_v7, 0.0  ;;  %v876_v7 = vmul.f32 %v2250_v24, %v785_v41  ;;  %v539_v39 = vadd.f32 %v2559_v0, %v507_v23 }
 0x1b4   : > { %v1190_v29 = vpop.f32.mrf.mxu0  ;;  %v924_v40 = vadd.f32 %v892_v22, %v731_v35  ;;  %v877_v55 = vmul.f32 %v2250_v24, %v789_v30 }
 0x1b5   : > { %v1303_v1 = vmax.f32 %v1242_v44, 0.0  ;;  %v1191_v5 = vadd.f32 %v2537_v32, %v1190_v29  ;;  %1267 = vmatmul.f32.gmra.mxu2 %v1147_v43  ;;  %v908_v54 = vadd.f32 %v876_v7, %v2364_v57 }
 0x1b6   : > { %v966_v13 = vpop.permute.xlu1 %965  ;;  %v1117_v15 = vadd.f32 %v1085_v11, %v924_v40 }
 0x1b7   : > { %v1286_v4 = vmax.f32 %v1191_v5, 0.0  ;;  %v1066_v51 = vmul.f32 %v2280_v52, %v966_v13  ;;  %1405 = vmatmul.f32.gmra.mxu3 %v1303_v1 }
 0x1b8   : > { %v1149_v21 = vmax.f32 %v1117_v15, 0.0 }
 0x1b9   : > { %1354 = vmatmul.f32.vlgmr.msra.gmra.mxu1 %v1286_v4  ;;  %v1098_v6 = vadd.f32 %v1066_v51, %v905_v12 }
 0x1ba   : > { %v660_v42 = vpop.permute.xlu2 %659  ;;  %v2584_v13 = vpop.permute.xlu0 %860 }
 0x1bb   : > { %v1130_v33 = vmax.f32 %v1098_v6, 0.0  ;;  %v700_v36 = vmul.f32 %v2096_v17, %v660_v42 }
 0x1bd   : > { %1216 = vmatmul.f32.gmra.mxu0 %v1130_v33  ;;  %1270 = vmatmul.f32.gmra.mxu2 %v1148_v37  ;;  %v732_v1 = vadd.f32 %v700_v36, %v539_v39 }
 0x1bf   : > { %v777_v56 = vpop.permute.xlu1 %776 }
 0x1c0   : > { %v874_v26 = vmul.f32 %v2250_v24, %v777_v56  ;;  %v2783_v56 = vld [vmem:[#allocation15_spill] sm:$0xff] }
 0x1c1   : > { %v909_v15 = vadd.f32 %v877_v55, %v2783_v56 }
 0x1c2   : > { %v906_v34 = vadd.f32 %v874_v26, %v2780_v63  ;;  %v986_v26 = vpop.permute.xlu0 %985 }
 0x1c3   : > { %v1046_v45 = vpop.permute.xlu2 %1045  ;;  %v1193_v27 = vpop.f32.mrf.mxu0 }
 0x1c4   : > { %v1194_v58 = vadd.f32 %v2537_v32, %v1193_v27  ;;  %v1086_v5 = vmul.f32 %v2280_v52, %v1046_v45 }
 0x1c5   : > { %1273 = vmatmul.f32.gmra.mxu2 %v1149_v21 }
 0x1c6   : > { %v1287_v20 = vmax.f32 %v1194_v58, 0.0 }
 0x1c8   : > { %v970_v50 = vpop.permute.xlu1 %969  ;;  %1357 = vmatmul.f32.gmra.mxu1 %v1287_v20  ;;  %v2784_v20 = vld [vmem:[#allocation11_spill] sm:$0xff] }
 0x1c9   : > { %v1067_v18 = vmul.f32 %v2280_v52, %v970_v50  ;;  %v508_v50 = vmul.f32 %v2081_v61, %v2784_v20 }
 0x1cb   : > { %v978_v9 = vpop.permute.xlu2 %977  ;;  %v1099_v19 = vadd.f32 %v1067_v18, %v906_v34  ;;  %v2785_v18 = vld [vmem:[#allocation13_spill] sm:$0xff] }
 0x1cc   : > { %v1069_v44 = vmul.f32 %v2280_v52, %v978_v9 }
 0x1cd   : > { %v1131_v25 = vmax.f32 %v1099_v19, 0.0  ;;  %v1071_v19 = vmul.f32 %v2280_v52, %v986_v26 }
 0x1ce   : > { %v1196_v49 = vpop.f32.mrf.mxu0  ;;  %v1101_v4 = vadd.f32 %v1069_v44, %v908_v54  ;;  %v2786_v44 = vld [vmem:[#allocation10_spill] sm:$0xff] }
 0x1cf   : > { %v1197_v16 = vadd.f32 %v2537_v32, %v1196_v49  ;;  %1219 = vmatmul.f32.gmra.mxu0 %v1131_v25 }
 0x1d0   : > { %v1133_v33 = vmax.f32 %v1101_v4, 0.0 }
 0x1d1   : > { %v1288_v10 = vmax.f32 %v1197_v16, 0.0  ;;  %v781_v31 = vpop.permute.xlu1 %780  ;;  %v540_v16 = vadd.f32 %v2559_v0, %v508_v50 }
 0x1d2   : > { %v875_v47 = vmul.f32 %v2250_v24, %v781_v31 }
 0x1d3   : > { %v1050_v59 = vpop.permute.xlu2 %1049  ;;  %1360 = vmatmul.f32.gmra.mxu1 %v1288_v10 }
 0x1d4   : > { %v907_v60 = vadd.f32 %v875_v47, %v2782_v46  ;;  %v1087_v23 = vmul.f32 %v2280_v52, %v1050_v59 }
 0x1d6   : > { %v1244_v28 = vpop.f32.mrf.mxu2  ;;  %v1100_v2 = vadd.f32 %v1068_v62, %v907_v60 }
 0x1d7   : > { %v1245_v53 = vadd.f32 %v2537_v32, %v1244_v28 }
 0x1d8   : > { %v1132_v43 = vmax.f32 %v1100_v2, 0.0 }
 0x1d9   : > { %v1304_v29 = vmax.f32 %v1245_v53, 0.0  ;;  %v853_v3 = vpop.permute.xlu1 %852 }
 0x1da   : > { %v893_v14 = vmul.f32 %v2250_v24, %v853_v3  ;;  %1222 = vmatmul.f32.gmra.mxu0 %v1132_v43  ;;  %v509_v43 = vmul.f32 %v2081_v61, %v2786_v44 }
 0x1db   : > { %v982_v12 = vpop.permute.xlu2 %981  ;;  %1408 = vmatmul.f32.gmra.mxu3 %v1304_v29 }
 0x1dc   : > { %v925_v22 = vadd.f32 %v893_v14, %v732_v1  ;;  %v1070_v11 = vmul.f32 %v2280_v52, %v982_v12  ;;  %v541_v1 = vadd.f32 %v2559_v0, %v509_v43 }
 0x1dd   : > { %v1199_v51 = vpop.f32.mrf.mxu0 }
 0x1de   : > { %v1200_v35 = vadd.f32 %v2537_v32, %v1199_v51  ;;  %v1247_v6 = vpop.f32.mrf.mxu2  ;;  %v1118_v42 = vadd.f32 %v1086_v5, %v925_v22  ;;  %v1102_v21 = vadd.f32 %v1070_v11, %v909_v15  ;;  %v895_v51 = vmul.f32 %v2250_v24, %v2584_v13 }
 0x1df   : > { %v1248_v57 = vadd.f32 %v2537_v32, %v1247_v6 }
 0x1e0   : > { %v1289_v40 = vmax.f32 %v1200_v35, 0.0  ;;  %v1150_v37 = vmax.f32 %v1118_v42, 0.0  ;;  %v1134_v25 = vmax.f32 %v1102_v21, 0.0 }
 0x1e1   : > { %v1305_v8 = vmax.f32 %v1248_v57, 0.0 }
 0x1e2   : > { %v664_v45 = vpop.permute.xlu1 %663  ;;  %1225 = vmatmul.f32.gmra.mxu0 %v1133_v33  ;;  %1276 = vmatmul.f32.gmra.mxu2 %v1150_v37 }
 0x1e3   : > { %1363 = vmatmul.f32.gmra.mxu1 %v1289_v40  ;;  %1411 = vmatmul.f32.gmra.mxu3 %v1305_v8  ;;  %v701_v34 = vmul.f32 %v2096_v17, %v664_v45 }
 0x1e4   : > { %v793_v27 = vpop.permute.xlu2 %792 }
 0x1e5   : > { %v878_v58 = vmul.f32 %v2250_v24, %v793_v27  ;;  %v733_v31 = vadd.f32 %v701_v34, %v540_v16 }
 0x1e6   : > { %v1250_v41 = vpop.f32.mrf.mxu2 }
 0x1e7   : > { %v1251_v63 = vadd.f32 %v2537_v32, %v1250_v41  ;;  %v910_v9 = vadd.f32 %v878_v58, %v2785_v18 }
 0x1e9   : > { %v1306_v49 = vmax.f32 %v1251_v63, 0.0  ;;  %v1103_v30 = vadd.f32 %v1071_v19, %v910_v9 }
 0x1ea   : > { %1228 = vmatmul.f32.gmra.mxu0 %v1134_v25 }
 0x1eb   : > { %1414 = vmatmul.f32.gmra.mxu3 %v1306_v49  ;;  %v857_v10 = vpop.permute.xlu1 %856  ;;  %v1135_v28 = vmax.f32 %v1103_v30, 0.0 }
 0x1ec   : > { %v894_v47 = vmul.f32 %v2250_v24, %v857_v10 }
 0x1ed   : > { %v1202_v38 = vpop.f32.mrf.mxu0  ;;  %v990_v11 = vpop.permute.xlu2 %989 }
 0x1ee   : > { %v926_v62 = vadd.f32 %v894_v47, %v733_v31  ;;  %v1203_v46 = vadd.f32 %v2537_v32, %v1202_v38  ;;  %v1253_v60 = vpop.f32.mrf.mxu2  ;;  %v1072_v8 = vmul.f32 %v2280_v52, %v990_v11 }
 0x1ef   : > { %v1254_v7 = vadd.f32 %v2537_v32, %v1253_v60 }
 0x1f0   : > { %v1290_v36 = vmax.f32 %v1203_v46, 0.0  ;;  %v1119_v2 = vadd.f32 %v1087_v23, %v926_v62 }
 0x1f1   : > { %v1307_v53 = vmax.f32 %v1254_v7, 0.0 }
 0x1f2   : > { %1366 = vmatmul.f32.gmra.mxu1 %v1290_v36  ;;  %1231 = vmatmul.f32.gmra.mxu0 %v1135_v28  ;;  %v1151_v39 = vmax.f32 %v1119_v2, 0.0 }
 0x1f3   : > { %1417 = vmatmul.f32.gmra.mxu3 %v1307_v53 }
 0x1f4   : > { %v668_v29 = vpop.permute.xlu1 %667  ;;  %1279 = vmatmul.f32.gmra.mxu2 %v1151_v39 }
 0x1f5   : > { %v702_v59 = vmul.f32 %v2096_v17, %v668_v29 }
 0x1f6   : > { %v1256_v3 = vpop.f32.mrf.mxu2 }
 0x1f7   : > { %v1257_v54 = vadd.f32 %v2537_v32, %v1256_v3  ;;  %v734_v22 = vadd.f32 %v702_v59, %v541_v1 }
 0x1f8   : > { %v1205_v5 = vpop.f32.mrf.mxu0 }
 0x1f9   : > { %v1308_v14 = vmax.f32 %v1257_v54, 0.0  ;;  %v1206_v12 = vadd.f32 %v2537_v32, %v1205_v5  ;;  %v927_v17 = vadd.f32 %v895_v51, %v734_v22 }
 0x1fb   : > { %v1291_v4 = vmax.f32 %v1206_v12, 0.0  ;;  %1420 = vmatmul.f32.gmra.mxu3 %v1308_v14 }
 0x1fd   : > { %v1054_v61 = vpop.permute.xlu1 %1053  ;;  %1369 = vmatmul.f32.gmra.mxu1 %v1291_v4 }
 0x1fe   : > { %v1088_v55 = vmul.f32 %v2280_v52, %v1054_v61  ;;  %v2625_v52 = vld [vmem:[%s2748_s6] ss:$0 sm:$0xff] }
 0x200   : > { %v1208_v35 = vpop.f32.mrf.mxu0  ;;  %v1120_v6 = vadd.f32 %v1088_v55, %v927_v17 }
 0x201   : > { %v1209_v42 = vadd.f32 %v2537_v32, %v1208_v35 }
 0x202   : > { %v1152_v0 = vmax.f32 %v1120_v6, 0.0 }
 0x203   : > { %v1292_v57 = vmax.f32 %v1209_v42, 0.0 }
 0x204   : > { %1282 = vmatmul.f32.gmra.mxu2 %v1152_v0 }
 0x205   : > { %1372 = vmatmul.f32.gmra.mxu1 %v1292_v57 }
 0x206   : > { %v797_v40 = vpop.permute.xlu1 %796  ;;  %v1259_v33 = vpop.f32.mrf.mxu2 }
 0x207   : > { %v879_v37 = vmul.f32 %v2250_v24, %v797_v40  ;;  %v1260_v13 = vadd.f32 %v2537_v32, %v1259_v33 }
 0x208   : > { %v1211_v56 = vpop.f32.mrf.mxu0 }
 0x209   : > { %v911_v15 = vadd.f32 %v879_v37, %v2375_v48  ;;  %v1309_v45 = vmax.f32 %v1260_v13, 0.0  ;;  %v1212_v27 = vadd.f32 %v2537_v32, %v1211_v56 }
 0x20b   : > { %v1293_v21 = vmax.f32 %v1212_v27, 0.0  ;;  %1423 = vmatmul.f32.gmra.mxu3 %v1309_v45  ;;  %v1104_v58 = vadd.f32 %v1072_v8, %v911_v15 }
 0x20d   : > { %1375 = vmatmul.f32.gmra.mxu1 %v1293_v21  ;;  %v1136_v26 = vmax.f32 %v1104_v58, 0.0 }
 0x20f   : > { %1234 = vmatmul.f32.gmra.mxu0 %v1136_v26 }
 0x218   : > { %v1262_v20 = vpop.f32.mrf.mxu2 }
 0x219   : > { %v1263_v24 = vadd.f32 %v2537_v32, %v1262_v20 }
 0x21b   : > { %v1310_v50 = vmax.f32 %v1263_v24, 0.0 }
 0x21d   : > { %1426 = vmatmul.f32.gmra.mxu3 %v1310_v50 }
 0x223   : > { %v1403_v48 = vpop.f32.mrf.mxu3 }
 0x224   : > { %v1404_v41 = vadd.f32 %v2625_v52, %v1403_v48 }
 0x226   : > { %1467 = vst [vmem:[%s2628_s14 + $0x80] sm:$0xff] %v1404_v41 }
 0x228   : > { %v1265_v63 = vpop.f32.mrf.mxu2 }
 0x229   : > { %v1266_v34 = vadd.f32 %v2537_v32, %v1265_v63 }
 0x22a   : > { %v1214_v18 = vpop.f32.mrf.mxu0 }
 0x22b   : > { %v1311_v9 = vmax.f32 %v1266_v34, 0.0  ;;  %v1215_v19 = vadd.f32 %v2537_v32, %v1214_v18 }
 0x22d   : > { %v1294_v25 = vmax.f32 %v1215_v19, 0.0  ;;  %1429 = vmatmul.f32.gmra.mxu3 %v1311_v9 }
 0x22f   : > { %1378 = vmatmul.f32.gmra.mxu1 %v1294_v25 }
 0x236   : > { %v1355_v49 = vpop.f32.mrf.mxu1 }
 0x237   : > { %v1356_v16 = vadd.f32 %v2625_v52, %v1355_v49 }
 0x238   : > { %v1268_v10 = vpop.f32.mrf.mxu2 }
 0x239   : > { %1451 = vst [vmem:[%s2628_s14] sm:$0xff] %v1356_v16  ;;  %v1269_v31 = vadd.f32 %v2537_v32, %v1268_v10 }
 0x23a   : > { %v1217_v47 = vpop.f32.mrf.mxu0  ;;  %v1406_v30 = vpop.f32.mrf.mxu3 }
 0x23b   : > { %v1312_v38 = vmax.f32 %v1269_v31, 0.0  ;;  %v1218_v23 = vadd.f32 %v2537_v32, %v1217_v47  ;;  %v1407_v62 = vadd.f32 %v2625_v52, %v1406_v30 }
 0x23d   : > { %v1295_v46 = vmax.f32 %v1218_v23, 0.0  ;;  %1468 = vst [vmem:[%s2628_s14 + $0x88] sm:$0xff] %v1407_v62  ;;  %1432 = vmatmul.f32.gmra.mxu3 %v1312_v38 }
 0x23f   : > { %1381 = vmatmul.f32.gmra.mxu1 %v1295_v46 }
 0x240   : > { %v1271_v60 = vpop.f32.mrf.mxu2 }
 0x241   : > { %v1272_v7 = vadd.f32 %v2537_v32, %v1271_v60 }
 0x243   : > { %v1313_v36 = vmax.f32 %v1272_v7, 0.0 }
 0x245   : > { %v1358_v28 = vpop.f32.mrf.mxu1  ;;  %1435 = vmatmul.f32.gmra.mxu3 %v1313_v36 }
 0x246   : > { %v1359_v2 = vadd.f32 %v2625_v52, %v1358_v28 }
 0x248   : > { %1452 = vst [vmem:[%s2628_s14 + $0x8] sm:$0xff] %v1359_v2  ;;  %v1274_v53 = vpop.f32.mrf.mxu2 }
 0x249   : > { %v1275_v39 = vadd.f32 %v2537_v32, %v1274_v53 }
 0x24b   : > { %v1314_v44 = vmax.f32 %v1275_v39, 0.0 }
 0x24c   : > { %v1220_v43 = vpop.f32.mrf.mxu0 }
 0x24d   : > { %v1221_v29 = vadd.f32 %v2537_v32, %v1220_v43  ;;  %1438 = vmatmul.f32.gmra.mxu3 %v1314_v44 }
 0x24f   : > { %v1296_v59 = vmax.f32 %v1221_v29, 0.0 }
 0x250   : > { %v1361_v3 = vpop.f32.mrf.mxu1 }
 0x251   : > { %v1362_v54 = vadd.f32 %v2625_v52, %v1361_v3  ;;  %1384 = vmatmul.f32.gmra.mxu1 %v1296_v59 }
 0x253   : > { %1453 = vst [vmem:[%s2628_s14 + $0x10] sm:$0xff] %v1362_v54 }
 0x257   : > { %v1223_v1 = vpop.f32.mrf.mxu0 }
 0x258   : > { %v1224_v5 = vadd.f32 %v2537_v32, %v1223_v1 }
 0x25a   : > { %v1297_v14 = vmax.f32 %v1224_v5, 0.0 }
 0x25c   : > { %1387 = vmatmul.f32.gmra.mxu1 %v1297_v14 }
 0x25e   : > { %v1409_v12 = vpop.f32.mrf.mxu3 }
 0x25f   : > { %v1410_v22 = vadd.f32 %v2625_v52, %v1409_v12  ;;  %v1226_v4 = vpop.f32.mrf.mxu0 }
 0x260   : > { %v1227_v51 = vadd.f32 %v2537_v32, %v1226_v4  ;;  %v1364_v61 = vpop.f32.mrf.mxu1 }
 0x261   : > { %1469 = vst [vmem:[%s2628_s14 + $0x90] sm:$0xff] %v1410_v22  ;;  %v1365_v55 = vadd.f32 %v2625_v52, %v1364_v61 }
 0x262   : > { %v1298_v17 = vmax.f32 %v1227_v51, 0.0 }
 0x263   : > { %1454 = vst [vmem:[%s2628_s14 + $0x18] sm:$0xff] %v1365_v55 }
 0x264   : > { %1390 = vmatmul.f32.gmra.mxu1 %v1298_v17 }
 0x265   : > { %v1277_v35 = vpop.f32.mrf.mxu2 }
 0x266   : > { %v1278_v6 = vadd.f32 %v2537_v32, %v1277_v35  ;;  %v1412_v42 = vpop.f32.mrf.mxu3 }
 0x267   : > { %v1413_v0 = vadd.f32 %v2625_v52, %v1412_v42  ;;  %v1229_v57 = vpop.f32.mrf.mxu0 }
 0x268   : > { %v1315_v11 = vmax.f32 %v1278_v6, 0.0  ;;  %v1230_v40 = vadd.f32 %v2537_v32, %v1229_v57 }
 0x269   : > { %1470 = vst [vmem:[%s2628_s14 + $0x98] sm:$0xff] %v1413_v0 }
 0x26a   : > { %v1299_v33 = vmax.f32 %v1230_v40, 0.0  ;;  %1441 = vmatmul.f32.gmra.mxu3 %v1315_v11 }
 0x26c   : > { %1393 = vmatmul.f32.gmra.mxu1 %v1299_v33 }
 0x26e   : > { %v1415_v37 = vpop.f32.mrf.mxu3 }
 0x26f   : > { %v1416_v13 = vadd.f32 %v2625_v52, %v1415_v37  ;;  %v1367_v8 = vpop.f32.mrf.mxu1  ;;  %v1232_v56 = vpop.f32.mrf.mxu0 }
 0x270   : > { %v1368_v15 = vadd.f32 %v2625_v52, %v1367_v8  ;;  %v1233_v45 = vadd.f32 %v2537_v32, %v1232_v56 }
 0x271   : > { %1471 = vst [vmem:[%s2628_s14 + $0xa0] sm:$0xff] %v1416_v13 }
 0x272   : > { %1455 = vst [vmem:[%s2628_s14 + $0x20] sm:$0xff] %v1368_v15  ;;  %v1300_v27 = vmax.f32 %v1233_v45, 0.0 }
 0x274   : > { %1396 = vmatmul.f32.gmra.mxu1 %v1300_v27 }
 0x276   : > { %v1418_v21 = vpop.f32.mrf.mxu3 }
 0x277   : > { %v1419_v58 = vadd.f32 %v2625_v52, %v1418_v21  ;;  %v1280_v26 = vpop.f32.mrf.mxu2 }
 0x278   : > { %v1281_v20 = vadd.f32 %v2537_v32, %v1280_v26 }
 0x279   : > { %1472 = vst [vmem:[%s2628_s14 + $0xa8] sm:$0xff] %v1419_v58 }
 0x27a   : > { %v1316_v24 = vmax.f32 %v1281_v20, 0.0  ;;  %v1370_v50 = vpop.f32.mrf.mxu1 }
 0x27b   : > { %v1371_v48 = vadd.f32 %v2625_v52, %v1370_v50 }
 0x27c   : > { %1444 = vmatmul.f32.gmra.mxu3 %v1316_v24 }
 0x27d   : > { %1456 = vst [vmem:[%s2628_s14 + $0x28] sm:$0xff] %v1371_v48 }
 0x27e   : > { %v1421_v41 = vpop.f32.mrf.mxu3 }
 0x27f   : > { %v1422_v63 = vadd.f32 %v2625_v52, %v1421_v41 }
 0x281   : > { %1473 = vst [vmem:[%s2628_s14 + $0xb0] sm:$0xff] %v1422_v63 }
 0x282   : > { %v1373_v34 = vpop.f32.mrf.mxu1 }
 0x283   : > { %v1374_v18 = vadd.f32 %v2625_v52, %v1373_v34 }
 0x285   : > { %1457 = vst [vmem:[%s2628_s14 + $0x30] sm:$0xff] %v1374_v18 }
 0x287   : > { %v1283_v9 = vpop.f32.mrf.mxu2 }
 0x288   : > { %v1284_v19 = vadd.f32 %v2537_v32, %v1283_v9 }
 0x28a   : > { %v1317_v25 = vmax.f32 %v1284_v19, 0.0  ;;  %v1376_v49 = vpop.f32.mrf.mxu1 }
 0x28b   : > { %v1377_v16 = vadd.f32 %v2625_v52, %v1376_v49 }
 0x28c   : > { %v1235_v10 = vpop.f32.mrf.mxu0  ;;  %1447 = vmatmul.f32.gmra.mxu3 %v1317_v25 }
 0x28d   : > { %1458 = vst [vmem:[%s2628_s14 + $0x38] sm:$0xff] %v1377_v16  ;;  %v1236_v31 = vadd.f32 %v2537_v32, %v1235_v10 }
 0x28e   : > { %v1424_v47 = vpop.f32.mrf.mxu3 }
 0x28f   : > { %v1301_v30 = vmax.f32 %v1236_v31, 0.0  ;;  %v1425_v38 = vadd.f32 %v2625_v52, %v1424_v47 }
 0x291   : > { %1474 = vst [vmem:[%s2628_s14 + $0xb8] sm:$0xff] %v1425_v38  ;;  %1399 = vmatmul.f32.gmra.mxu1 %v1301_v30 }
 0x2a0   : > { %v1427_v23 = vpop.f32.mrf.mxu3 }
 0x2a1   : > { %v1428_v62 = vadd.f32 %v2625_v52, %v1427_v23 }
 0x2a3   : > { %1475 = vst [vmem:[%s2628_s14 + $0xc0] sm:$0xff] %v1428_v62 }
 0x2ac   : > { %v1379_v46 = vpop.f32.mrf.mxu1 }
 0x2ad   : > { %v1380_v60 = vadd.f32 %v2625_v52, %v1379_v46 }
 0x2af   : > { %1459 = vst [vmem:[%s2628_s14 + $0x40] sm:$0xff] %v1380_v60 }
 0x2b0   : > { %v1430_v7 = vpop.f32.mrf.mxu3 }
 0x2b1   : > { %v1431_v32 = vadd.f32 %v2625_v52, %v1430_v7 }
 0x2b3   : > { %1476 = vst [vmem:[%s2628_s14 + $0xc8] sm:$0xff] %v1431_v32 }
 0x2bc   : > { %v1382_v36 = vpop.f32.mrf.mxu1 }
 0x2bd   : > { %v1383_v28 = vadd.f32 %v2625_v52, %v1382_v36 }
 0x2bf   : > { %1460 = vst [vmem:[%s2628_s14 + $0x48] sm:$0xff] %v1383_v28 }
 0x2c0   : > { %v1433_v2 = vpop.f32.mrf.mxu3 }
 0x2c1   : > { %v1434_v53 = vadd.f32 %v2625_v52, %v1433_v2 }
 0x2c3   : > { %1477 = vst [vmem:[%s2628_s14 + $0xd0] sm:$0xff] %v1434_v53 }
 0x2c8   : > { %v1436_v39 = vpop.f32.mrf.mxu3 }
 0x2c9   : > { %v1437_v44 = vadd.f32 %v2625_v52, %v1436_v39 }
 0x2cb   : > { %1478 = vst [vmem:[%s2628_s14 + $0xd8] sm:$0xff] %v1437_v44 }
 0x2ce   : > { %v1385_v43 = vpop.f32.mrf.mxu1 }
 0x2cf   : > { %v1386_v29 = vadd.f32 %v2625_v52, %v1385_v43 }
 0x2d0   : > { %v1439_v59 = vpop.f32.mrf.mxu3 }
 0x2d1   : > { %1461 = vst [vmem:[%s2628_s14 + $0x50] sm:$0xff] %v1386_v29  ;;  %v1440_v3 = vadd.f32 %v2625_v52, %v1439_v59 }
 0x2d3   : > { %1479 = vst [vmem:[%s2628_s14 + $0xe0] sm:$0xff] %v1440_v3 }
 0x2d9   : > { %v1388_v54 = vpop.f32.mrf.mxu1 }
 0x2da   : > { %v1389_v1 = vadd.f32 %v2625_v52, %v1388_v54 }
 0x2dc   : > { %1462 = vst [vmem:[%s2628_s14 + $0x58] sm:$0xff] %v1389_v1 }
 0x2e1   : > { %v1391_v5 = vpop.f32.mrf.mxu1 }
 0x2e2   : > { %v1392_v14 = vadd.f32 %v2625_v52, %v1391_v5 }
 0x2e4   : > { %1463 = vst [vmem:[%s2628_s14 + $0x60] sm:$0xff] %v1392_v14 }
 0x2e9   : > { %v1394_v12 = vpop.f32.mrf.mxu1 }
 0x2ea   : > { %v1395_v22 = vadd.f32 %v2625_v52, %v1394_v12 }
 0x2ec   : > { %1464 = vst [vmem:[%s2628_s14 + $0x68] sm:$0xff] %v1395_v22 }
 0x2ed   : > { %v1442_v4 = vpop.f32.mrf.mxu3 }
 0x2ee   : > { %v1443_v51 = vadd.f32 %v2625_v52, %v1442_v4 }
 0x2f0   : > { %1480 = vst [vmem:[%s2628_s14 + $0xe8] sm:$0xff] %v1443_v51 }
 0x2f1   : > { %v1397_v61 = vpop.f32.mrf.mxu1 }
 0x2f2   : > { %v1398_v55 = vadd.f32 %v2625_v52, %v1397_v61 }
 0x2f4   : > { %1465 = vst [vmem:[%s2628_s14 + $0x70] sm:$0xff] %v1398_v55 }
 0x2ff   : > { %v1445_v17 = vpop.f32.mrf.mxu3 }
 0x300   : > { %v1446_v35 = vadd.f32 %v2625_v52, %v1445_v17 }
 0x302   : > { %1481 = vst [vmem:[%s2628_s14 + $0xf0] sm:$0xff] %v1446_v35 }
 0x30e   : > { %v1400_v6 = vpop.f32.mrf.mxu1 }
 0x30f   : > { %v1401_v42 = vadd.f32 %v2625_v52, %v1400_v6  ;;  %v1448_v0 = vpop.f32.mrf.mxu3 }
 0x310   : > { %v1449_v57 = vadd.f32 %v2625_v52, %v1448_v0 }
 0x311   : > { %1466 = vst [vmem:[%s2628_s14 + $0x78] sm:$0xff] %v1401_v42 }
 0x312   : > { %1482 = vst [vmem:[%s2628_s14 + $0xf8] sm:$0xff] %v1449_v57 }
 0x313   : > { %1729 = shalt.err (!%p1726_p3)
}
 0x314   : > { %s1770_s29 = smov 128   ;;  %s1771_s14 = smov 8  }
 0x315   : > { %1606 = dma.vmem_to_hbm [thread:$0]  (%p1850_p5), %s1497_s20, 4096, %s1499_s21, %s1484_s22, %s1770_s29, %s1770_s29, %s1771_s14  }
 0x316 PF: > { %p1612_p4 = scmp.ge.s32.totalorder %s1764_s27, 2  ;;  %s1513_s16 = sand.u32 1, %s1752_s24  }
 0x317   : > { %s1514_s18 = scalar_lea.sflag [#allocation3], %s1513_s16 }
 0x318   : > { %p1609_p7 = pnand %p1612_p4, %p1854_p6 }
 0x31a   : > { %p1610_p8 = pneg %p1609_p7 }
 0x31c   : > { %1747 = dma.done.wait (%p1610_p8), %s1514_s18, 4096  }
 0x31d   : > { %1749 = vsyncadd (%p1610_p8), %s1514_s18, 4294963200  ;;  %p17_p9 = scmp.ge.s32.totalorder %s1837_s30, 4   ;;  %s2787_s24 = smov %s1756_s25 }
 0x31e   : > { %s2788_s25 = smov %s1760_s26  ;;  %s2789_s26 = smov %s1848_s10 }
 0x31f   : > { %s2790_s27 = smov %s1837_s30  ;;  %19 = sbr.rel (!%p17_p9) target bundleno = 3 (0x3), region = 83 }
 0x324   :  { %1520 = vsyncpa [#allocation3], 1 }
 0x325   :  { %1522 = vsyncpa [#allocation3 + $0x1], 1 }

// kernel: tpu_custom_call.1
= control target key start
LH: loop header
LB: loop body
LE: loop exit
PB: predicated region body
PF: predicated region fallthrough
CT: control target
= control target key end

     0   :  { %12 = vsyncpa [#allocation3], 0  ;;  %s2742_s0 = inlined_call_operand.vmem [shape: f32[512,4], index: 0, kind: input, shape index: {}]   ;;  %s2743_s1 = inlined_call_operand.vmem [shape: f32[4,128], index: 1, kind: input, shape index: {}]   ;;  %s2744_s2 = inlined_call_operand.vmem [shape: f32[1,128], index: 2, kind: input, shape index: {}]   ;;  %s2745_s3 = inlined_call_operand.vmem [shape: f32[128,128], index: 3, kind: input, shape index: {}]   ;;  %s2746_s4 = inlined_call_operand.vmem [shape: f32[1,128], index: 4, kind: input, shape index: {}]   ;;  %s2747_s5 = inlined_call_operand.vmem [shape: f32[128,128], index: 5, kind: input, shape index: {}]   ;;  %s2748_s6 = inlined_call_operand.vmem [shape: f32[1,128], index: 6, kind: input, shape index: {}]   ;;  %s2749_s7 = inlined_call_operand.hbm [shape: f32[512,128], index: 7, kind: output, shape index: {}]  }
   0x1   :  { %14 = vsyncpa [#allocation3 + $0x1], 0  ;;  %s1812_s24 = smov 0   ;;  %s1814_s25 = smov 0  }
   0x2   :  { %s1816_s26 = smov 0   ;;  %s1818_s27 = smov 0  }
   0x3 LB: > { %s1833_s28 = sadd.s32 4294967295, %s1764_s27   ;;  %s1561_s29 = sadd.s32 4294967294, %s1764_s27   ;;  %s1764_s27 = sphi %s1818_s27, %s2790_s27   ;;  %s1760_s26 = sphi %s1816_s26, %s2789_s26   ;;  %s1756_s25 = sphi %s1814_s25, %s2788_s25   ;;  %s1752_s24 = sphi %s1812_s24, %s2787_s24  }
   0x4   : > { %s1837_s30 = sadd.s32 1, %s1764_s27   ;;  %s179_s8 = sadd.s32 1, %s1760_s26 }
   0x5   : > { %s176_s9 = ssub.s32 %s1764_s27, %s1837_s30  ;;  %p189_p0 = scmp.ne.s32.totalorder %s1760_s26, %s1756_s25 }
   0x6   : > { %p177_p1 = scmp.eq.s32.totalorder %s176_s9, 0  ;;  %p190_p2 = scmp.eq.s32.totalorder %s1833_s28, 1 }
   0x7   : > { %p195_p3 = scmp.ne.s32.totalorder %s1756_s25, %s1752_s24  ;;  %p196_p4 = scmp.eq.s32.totalorder %s1561_s29, 1 }
   0x8   : > { %s1848_s10 = scalar_select %p177_p1, %s1760_s26, %s179_s8  }
   0x9   : > { %p1850_p5 = por %p190_p2, %p189_p0  ;;  %p1854_p6 = por %p196_p4, %p195_p3 }
   0xa   : > { %p1564_p7 = scmp.ge.s32.totalorder %s1764_s27, 1  ;;  %p241_p8 = scmp.lt.s32.totalorder %s1764_s27, 3 }
   0xc   : > { %p242_p9 = pnand %p1564_p7, %p241_p8 }
   0xe   : > { %245 = sbr.rel (%p242_p9) target bundleno = 790 (0x316), region = 48 }
  0x13   : > { %s1566_s13 = sshll.u32 %s1833_s28, 5  ;;  %v1766_v0 = vmov 0   ;;  %v2750_v33 = vmov 1   ;;  %v2752_v34 = vmov 3   ;;  %v2756_v37 = vmov 2   ;;  %s270_s29 = sand.u32 1, %s1756_s25  }
  0x14   : > { %1653 = vset.pattern.permute.xlu2 %v1766_v0  ;;  %1652 = vset.pattern.permute.xlu1 %v1766_v0  ;;  %p274_p10 = scmp.lt.s32.totalorder %s1566_s13, 63  ;;  %v2071_v57 = vld [vmem:[%s2743_s1] sm:$0xf]  ;;  %s1565_s8 = sshll.u32 %s270_s29, 8 }
  0x15   : > { %1651 = vset.pattern.permute.xlu0 %v1766_v0  ;;  %v2081_v61 = vperm.slane %v2071_v57, 0  ;;  %v2089_v63 = vld [vmem:[%s2744_s2] ss:$0 sm:$0xff]  ;;  %s1573_s15 = sshll.u32 %s1833_s28, 8  ;;  %s1484_s22 = scalar_lea.sflag [#allocation3], %s270_s29 }
  0x16   : > { %s2792_s13 = smov (!%p274_p10, %s1566_s13), 63  ;;  %s1495_s19 = scalar_lea.hbm %s2749_s7, %s1573_s15 }
  0x17   : > { %s1567_s14 = sshll.u32 %s2792_s13, 3  ;;  %s1498_s21 = sshll.u32 %s1495_s19, 4  ;;  %s1499_s21 = int_to_ptr.hbm [resolvable:$true] %s1498_s21 }
  0x18   : > { %s1864_s17 = scalar_lea.vmem %s2742_s0, %s1567_s14  ;;  %s2628_s14 = scalar_lea.vmem [#allocation2], %s1565_s8 }
  0x19   : > { %v1867_v1 = vld [vmem:[%s1864_s17 + $0x20] sm:$0xff]  ;;  %v1870_v2 = vld [vmem:[%s1864_s17 + $0x10] sm:$0xff]  ;;  %v1879_v4 = vld [vmem:[%s1864_s17 + $0x28] sm:$0xff]  ;;  %s1496_s20 = sshll.u32 %s2628_s14, 4  ;;  %s1716_s28 = sshra.s32 %s1499_s21, 4  ;;  %s1497_s20 = int_to_ptr.vmem [resolvable:$true] %s1496_s20  ;;  %s1717_s28 = int_to_ptr.hbm [resolvable:$true] %s1716_s28 }
  0x1a   : > { %v1873_v3 = vld [vmem:[%s1864_s17] sm:$0xff]  ;;  %339 = vperm.xlu2 %1653, %v1867_v1   ;;  %329 = vperm.xlu1 %1652, %v1870_v2   ;;  %v1882_v5 = vld [vmem:[%s1864_s17 + $0x18] sm:$0xff]  ;;  %v1885_v6 = vld [vmem:[%s1864_s17 + $0x8] sm:$0xff]  ;;  %s1722_s9 = scalar_lea.hbm %s2749_s7, 512  ;;  %p1723_p0 = scmp.lt.s32.totalorder %s1717_s28, %s2749_s7 }
  0x1b   : > { %319 = vperm.xlu0 %1651, %v1873_v3   ;;  %v1891_v7 = vld [vmem:[%s1864_s17 + $0x40] sm:$0xff]  ;;  %v1894_v8 = vld [vmem:[%s1864_s17 + $0x38] sm:$0xff]  ;;  %v1897_v9 = vld [vmem:[%s1864_s17 + $0x30] sm:$0xff] }
  0x1c   : > { %v1903_v10 = vld [vmem:[%s1864_s17 + $0x58] sm:$0xff]  ;;  %v1906_v11 = vld [vmem:[%s1864_s17 + $0x50] sm:$0xff]  ;;  %v1909_v12 = vld [vmem:[%s1864_s17 + $0x48] sm:$0xff] }
  0x1d   : > { %v1915_v13 = vld [vmem:[%s1864_s17 + $0x70] sm:$0xff]  ;;  %v1918_v14 = vld [vmem:[%s1864_s17 + $0x68] sm:$0xff]  ;;  %v1921_v15 = vld [vmem:[%s1864_s17 + $0x60] sm:$0xff] }
  0x1e   : > { %v1927_v16 = vld [vmem:[%s1864_s17 + $0x88] sm:$0xff]  ;;  %v1930_v17 = vld [vmem:[%s1864_s17 + $0x80] sm:$0xff]  ;;  %v1933_v18 = vld [vmem:[%s1864_s17 + $0x78] sm:$0xff] }
  0x1f   : > { %v1939_v19 = vld [vmem:[%s1864_s17 + $0xa0] sm:$0xff]  ;;  %v1942_v20 = vld [vmem:[%s1864_s17 + $0x98] sm:$0xff]  ;;  %v1945_v21 = vld [vmem:[%s1864_s17 + $0x90] sm:$0xff] }
  0x20   : > { %v1951_v22 = vld [vmem:[%s1864_s17 + $0xb8] sm:$0xff]  ;;  %v1954_v23 = vld [vmem:[%s1864_s17 + $0xb0] sm:$0xff]  ;;  %v1957_v24 = vld [vmem:[%s1864_s17 + $0xa8] sm:$0xff] }
  0x21   : > { %v1963_v25 = vld [vmem:[%s1864_s17 + $0xd0] sm:$0xff]  ;;  %v1966_v26 = vld [vmem:[%s1864_s17 + $0xc8] sm:$0xff]  ;;  %v1969_v27 = vld [vmem:[%s1864_s17 + $0xc0] sm:$0xff] }
  0x22   : > { %344 = vperm.xlu2 %1653, %v1879_v4   ;;  %334 = vperm.xlu1 %1652, %v1882_v5   ;;  %v1975_v28 = vld [vmem:[%s1864_s17 + $0xe8] sm:$0xff]  ;;  %v1978_v29 = vld [vmem:[%s1864_s17 + $0xe0] sm:$0xff]  ;;  %v1981_v30 = vld [vmem:[%s1864_s17 + $0xd8] sm:$0xff] }
  0x23   : > { %324 = vperm.xlu0 %1651, %v1885_v6   ;;  %2762 = vst [vmem:[#allocation5_spill] sm:$0xff] %v1975_v28  ;;  %v1987_v31 = vld [vmem:[%s1864_s17 + $0xf8] sm:$0xff]  ;;  %v1990_v32 = vld [vmem:[%s1864_s17 + $0xf0] sm:$0xff] }
  0x24   : > { %2763 = vst [vmem:[#allocation6_spill] sm:$0xff] %v1990_v32 }
  0x2a   : > { %359 = vperm.xlu2 %1653, %v1891_v7   ;;  %354 = vperm.xlu1 %1652, %v1894_v8  }
  0x2b   : > { %349 = vperm.xlu0 %1651, %v1897_v9  }
  0x32   : > { %374 = vperm.xlu2 %1653, %v1903_v10   ;;  %369 = vperm.xlu1 %1652, %v1906_v11  }
  0x33   : > { %364 = vperm.xlu0 %1651, %v1909_v12  }
  0x3a   : > { %389 = vperm.xlu2 %1653, %v1915_v13   ;;  %384 = vperm.xlu1 %1652, %v1918_v14  }
  0x3b   : > { %379 = vperm.xlu0 %1651, %v1921_v15  }
  0x42   : > { %404 = vperm.xlu2 %1653, %v1927_v16   ;;  %399 = vperm.xlu1 %1652, %v1930_v17  }
  0x43   : > { %394 = vperm.xlu0 %1651, %v1933_v18  }
  0x4a   : > { %419 = vperm.xlu2 %1653, %v1939_v19   ;;  %414 = vperm.xlu1 %1652, %v1942_v20  }
  0x4b   : > { %409 = vperm.xlu0 %1651, %v1945_v21  }
  0x52   : > { %434 = vperm.xlu2 %1653, %v1951_v22   ;;  %429 = vperm.xlu1 %1652, %v1954_v23  }
  0x53   : > { %424 = vperm.xlu0 %1651, %v1957_v24  }
  0x5a   : > { %449 = vperm.xlu2 %1653, %v1963_v25   ;;  %444 = vperm.xlu1 %1652, %v1966_v26  }
  0x5b   : > { %439 = vperm.xlu0 %1651, %v1969_v27  }
  0x62   : > { %464 = vperm.xlu2 %1653, %v1975_v28   ;;  %459 = vperm.xlu1 %1652, %v1978_v29  }
  0x63   : > { %454 = vperm.xlu0 %1651, %v1981_v30  }
  0x6a   : > { %1654 = vset.pattern.permute.xlu2 %v2750_v33  ;;  %474 = vperm.xlu1 %1652, %v1987_v31  }
  0x6b   : > { %469 = vperm.xlu0 %1651, %v1990_v32   ;;  %543 = vperm.xlu2 %1654, %v1873_v3  }
  0x72   : > { %1655 = vset.pattern.permute.xlu1 %v2750_v33 }
  0x73   : > { %1657 = vset.pattern.permute.xlu0 %v2752_v34  ;;  %551 = vperm.xlu1 %1655, %v1870_v2  }
  0x74   : > { %555 = vperm.xlu2 %1654, %v1882_v5   ;;  %993 = vperm.xlu0 %1657, %v1930_v17   ;;  %v2001_v35 = vpop.permute.xlu2 %339 }
  0x7b   : > { %559 = vperm.xlu1 %1655, %v1867_v1  }
  0x7c   : > { %563 = vperm.xlu2 %1654, %v1879_v4   ;;  %1005 = vperm.xlu0 %1657, %v1942_v20   ;;  %v2006_v36 = vpop.permute.xlu2 %344 }
  0x83   : > { %571 = vperm.xlu1 %1655, %v1894_v8  }
  0x84   : > { %575 = vperm.xlu2 %1654, %v1891_v7   ;;  %1662 = vset.pattern.permute.xlu0 %v2756_v37  ;;  %v2011_v38 = vpop.permute.xlu2 %359 }
  0x85   : > { %808 = vperm.xlu0 %1662, %v1945_v21  }
  0x8b   : > { %583 = vperm.xlu1 %1655, %v1906_v11  }
  0x8c   : > { %587 = vperm.xlu2 %1654, %v1903_v10   ;;  %v2016_v39 = vpop.permute.xlu2 %374  ;;  %v2018_v40 = vpop.permute.xlu1 %329 }
  0x8d   : > { %748 = vperm.xlu0 %1662, %v1882_v5   ;;  %v320_v41 = vpop.permute.xlu0 %319 }
  0x8e   : > { %v478_v62 = vmul.f32 %v2081_v61, %v320_v41 }
  0x90   : > { %v510_v0 = vadd.f32 %v2089_v63, %v478_v62 }
  0x93   : > { %595 = vperm.xlu1 %1655, %v1918_v14  }
  0x94   : > { %599 = vperm.xlu2 %1654, %v1915_v13   ;;  %v2023_v42 = vpop.permute.xlu2 %389  ;;  %v335_v43 = vpop.permute.xlu1 %334 }
  0x95   : > { %760 = vperm.xlu0 %1662, %v1897_v9   ;;  %v2026_v44 = vpop.permute.xlu0 %324 }
  0x9b   : > { %607 = vperm.xlu1 %1655, %v1930_v17  }
  0x9c   : > { %611 = vperm.xlu2 %1654, %v1927_v16   ;;  %v2030_v45 = vpop.permute.xlu2 %404  ;;  %v2032_v46 = vpop.permute.xlu1 %354 }
  0x9d   : > { %764 = vperm.xlu0 %1662, %v1894_v8   ;;  %v2035_v47 = vpop.permute.xlu0 %349 }
  0xa3   : > { %619 = vperm.xlu1 %1655, %v1942_v20  }
  0xa4   : > { %623 = vperm.xlu2 %1654, %v1939_v19   ;;  %v2039_v48 = vpop.permute.xlu2 %419  ;;  %v2041_v49 = vpop.permute.xlu1 %369 }
  0xa5   : > { %836 = vperm.xlu0 %1662, %v1966_v26   ;;  %v2044_v50 = vpop.permute.xlu0 %364 }
  0xab   : > { %631 = vperm.xlu1 %1655, %v1954_v23  }
  0xac   : > { %1656 = vset.pattern.permute.xlu2 %v2756_v37  ;;  %v2048_v51 = vpop.permute.xlu2 %434  ;;  %v2050_v52 = vpop.permute.xlu1 %384 }
  0xad   : > { %2764 = vst [vmem:[#allocation7_spill] sm:$0xff] %v2048_v51  ;;  %800 = vperm.xlu2 %1656, %v1930_v17   ;;  %1674 = vset.pattern.permute.xlu0 %v2750_v33  ;;  %v2054_v53 = vpop.permute.xlu0 %379  ;;  %v2096_v17 = vperm.slane %v2071_v57, 1 }
  0xae   : > { %547 = vperm.xlu0 %1674, %v1885_v6  }
  0xb3   : > { %1658 = vset.pattern.permute.xlu1 %v2756_v37 }
  0xb4   : > { %v2058_v54 = vpop.permute.xlu2 %449  ;;  %804 = vperm.xlu1 %1658, %v1927_v16   ;;  %v2061_v55 = vpop.permute.xlu1 %399 }
  0xb5   : > { %1659 = vset.pattern.permute.xlu2 %v2752_v34  ;;  %v2064_v56 = vpop.permute.xlu0 %394 }
  0xb6   : > { %997 = vperm.xlu2 %1659, %v1927_v16   ;;  %567 = vperm.xlu0 %1674, %v1897_v9  }
  0xbc   : > { %v2073_v58 = vpop.permute.xlu2 %464  ;;  %v2075_v59 = vpop.permute.xlu1 %414  ;;  %736 = vperm.xlu1 %1658, %v1873_v3  }
  0xbd   : > { %2765 = vst [vmem:[#allocation8_spill] sm:$0xff] %v2073_v58  ;;  %v2078_v60 = vpop.permute.xlu0 %409 }
  0xbe   : > { %929 = vperm.xlu2 %1659, %v1873_v3   ;;  %579 = vperm.xlu0 %1674, %v1909_v12  }
  0xc4   : > { %v2092_v16 = vpop.permute.xlu1 %429  ;;  %1660 = vset.pattern.permute.xlu1 %v2752_v34  ;;  %v481_v34 = vmul.f32 %v2081_v61, %v335_v43  ;;  %v483_v43 = vmul.f32 %v2081_v61, %v2006_v36  ;;  %v1169_v36 = vld [vmem:[%s2745_s3 + $0x78] sm:$0xff] }
  0xc5   : > { %v2098_v33 = vpop.permute.xlu0 %424  ;;  %1001 = vperm.xlu1 %1660, %v1945_v21   ;;  %v544_v3 = vpop.permute.xlu2 %543  ;;  %1574 = vmatpush.msra.mxu2 %v1169_v36 }
  0xc6   : > { %1661 = vset.pattern.permute.xlu2 %v2756_v37  ;;  %v671_v41 = vmul.f32 %v2096_v17, %v544_v3  ;;  %591 = vperm.xlu0 %1674, %v1921_v15   ;;  %v513_v37 = vadd.f32 %v2089_v63, %v481_v34 }
  0xc7   : > { %740 = vperm.xlu2 %1661, %v1885_v6   ;;  %1173 = vmatpush.msra.mxu0 %v1169_v36 }
  0xc8   : > { %v2105_v62 = vadd.f32 %v671_v41, %v510_v0 }
  0xcc   : > { %v2108_v58 = vpop.permute.xlu1 %444 }
  0xcd   : > { %2766 = vst [vmem:[#allocation9_spill] sm:$0xff] %v2108_v58  ;;  %v2110_v51 = vpop.permute.xlu0 %439  ;;  %933 = vperm.xlu1 %1660, %v1885_v6   ;;  %v2767_v58 = vmov 2  }
  0xce   : > { %v556_v32 = vpop.permute.xlu2 %555  ;;  %603 = vperm.xlu0 %1674, %v1933_v18   ;;  %v515_v18 = vadd.f32 %v2089_v63, %v483_v43 }
  0xcf   : > { %v674_v3 = vmul.f32 %v2096_v17, %v556_v32  ;;  %812 = vperm.xlu2 %1661, %v1942_v20   ;;  %v2768_v32 = vmov 3  }
  0xd1   : > { %v2117_v28 = vadd.f32 %v674_v3, %v513_v37  ;;  %v486_v37 = vmul.f32 %v2081_v61, %v2011_v38  ;;  %v1166_v38 = vld [vmem:[%s2745_s3 + $0x60] sm:$0xff] }
  0xd4   : > { %v2121_v0 = vpop.permute.xlu1 %459 }
  0xd5   : > { %v2123_v41 = vpop.permute.xlu0 %454  ;;  %1663 = vset.pattern.permute.xlu1 %v2767_v58 }
  0xd6   : > { %v564_v6 = vpop.permute.xlu2 %563  ;;  %615 = vperm.xlu0 %1674, %v1945_v21   ;;  %744 = vperm.xlu1 %1663, %v1870_v2   ;;  %v1168_v21 = vld [vmem:[%s2745_s3 + $0x70] sm:$0xff] }
  0xd7   : > { %v676_v20 = vmul.f32 %v2096_v17, %v564_v6  ;;  %1664 = vset.pattern.permute.xlu2 %v2768_v32  ;;  %1575 = vmatpush.msra.mxu2 %v1168_v21 }
  0xd8   : > { %937 = vperm.xlu2 %1664, %v1870_v2   ;;  %v1167_v2 = vld [vmem:[%s2745_s3 + $0x68] sm:$0xff]  ;;  %1174 = vmatpush.msra.mxu0 %v1168_v21  ;;  %v1165_v21 = vld [vmem:[%s2745_s3 + $0x58] sm:$0xff] }
  0xd9   : > { %v2132_v34 = vadd.f32 %v676_v20, %v515_v18  ;;  %v518_v18 = vadd.f32 %v2089_v63, %v486_v37  ;;  %1576 = vmatpush.msra.mxu2 %v1167_v2  ;;  %v480_v37 = vmul.f32 %v2081_v61, %v2018_v40 }
  0xda   : > { %1175 = vmatpush.msra.mxu0 %v1167_v2  ;;  %v1164_v2 = vld [vmem:[%s2745_s3 + $0x50] sm:$0xff] }
  0xdb   : > { %1577 = vmatpush.msra.mxu2 %v1166_v38 }
  0xdc   : > { %v2142_v3 = vpop.permute.xlu1 %474  ;;  %1176 = vmatpush.msra.mxu0 %v1166_v38 }
  0xdd   : > { %2769 = vst [vmem:[#allocation10_spill] sm:$0xff] %v2142_v3  ;;  %v2147_v43 = vpop.permute.xlu0 %469  ;;  %1578 = vmatpush.msra.mxu2 %v1165_v21 }
  0xde   : > { %2770 = vst [vmem:[#allocation11_spill] sm:$0xff] %v2147_v43  ;;  %v576_v6 = vpop.permute.xlu2 %575  ;;  %627 = vperm.xlu0 %1674, %v1957_v24   ;;  %816 = vperm.xlu1 %1663, %v1939_v19  }
  0xdf   : > { %v679_v20 = vmul.f32 %v2096_v17, %v576_v6  ;;  %v489_v6 = vmul.f32 %v2081_v61, %v2016_v39  ;;  %1177 = vmatpush.msra.mxu0 %v1165_v21  ;;  %1579 = vmatpush.msra.mxu2 %v1164_v2 }
  0xe0   : > { %1009 = vperm.xlu2 %1664, %v1939_v19   ;;  %v1163_v19 = vld [vmem:[%s2745_s3 + $0x48] sm:$0xff] }
  0xe1   : > { %v2157_v36 = vadd.f32 %v679_v20, %v518_v18  ;;  %1178 = vmatpush.msra.mxu0 %v1164_v2  ;;  %v512_v20 = vadd.f32 %v2089_v63, %v480_v37  ;;  %v521_v21 = vadd.f32 %v2089_v63, %v489_v6  ;;  %1580 = vmatpush.msra.mxu2 %v1163_v19  ;;  %v1162_v37 = vld [vmem:[%s2745_s3 + $0x40] sm:$0xff] }
  0xe2   : > { %v492_v6 = vmul.f32 %v2081_v61, %v2023_v42 }
  0xe3   : > { %1179 = vmatpush.msra.mxu0 %v1163_v19  ;;  %1581 = vmatpush.msra.mxu2 %v1162_v37 }
  0xe5   : > { %v552_v18 = vpop.permute.xlu1 %551  ;;  %1180 = vmatpush.msra.mxu0 %v1162_v37 }
  0xe6   : > { %v673_v40 = vmul.f32 %v2096_v17, %v552_v18  ;;  %v588_v38 = vpop.permute.xlu2 %587  ;;  %647 = vperm.xlu0 %1674, %v1963_v25   ;;  %1665 = vset.pattern.permute.xlu1 %v2768_v32  ;;  %v2176_v39 = vpop.permute.xlu0 %993  ;;  %v1161_v18 = vld [vmem:[%s2745_s3 + $0x38] sm:$0xff] }
  0xe7   : > { %v682_v3 = vmul.f32 %v2096_v17, %v588_v38  ;;  %941 = vperm.xlu1 %1665, %v1882_v5   ;;  %v482_v5 = vmul.f32 %v2081_v61, %v2001_v35  ;;  %1582 = vmatpush.msra.mxu2 %v1161_v18 }
  0xe8   : > { %v2184_v2 = vadd.f32 %v673_v40, %v512_v20  ;;  %1666 = vset.pattern.permute.xlu2 %v2767_v58  ;;  %v1160_v20 = vld [vmem:[%s2745_s3 + $0x30] sm:$0xff]  ;;  %1181 = vmatpush.msra.mxu0 %v1161_v18  ;;  %v1158_v18 = vld [vmem:[%s2745_s3 + $0x20] sm:$0xff] }
  0xe9   : > { %v2190_v43 = vadd.f32 %v682_v3, %v521_v21  ;;  %820 = vperm.xlu2 %1666, %v1957_v24   ;;  %v1159_v3 = vld [vmem:[%s2745_s3 + $0x28] sm:$0xff]  ;;  %1583 = vmatpush.msra.mxu2 %v1160_v20  ;;  %v514_v40 = vadd.f32 %v2089_v63, %v482_v5  ;;  %v524_v21 = vadd.f32 %v2089_v63, %v492_v6  ;;  %v1157_v6 = vld [vmem:[%s2745_s3 + $0x18] sm:$0xff] }
  0xea   : > { %1182 = vmatpush.msra.mxu0 %v1160_v20  ;;  %v1156_v20 = vld [vmem:[%s2745_s3 + $0x10] sm:$0xff] }
  0xeb   : > { %2771 = vst [vmem:[#allocation12_spill] sm:$0xff] %v2190_v43  ;;  %1584 = vmatpush.msra.mxu2 %v1159_v3 }
  0xec   : > { %1183 = vmatpush.msra.mxu0 %v1159_v3 }
  0xed   : > { %v560_v19 = vpop.permute.xlu1 %559  ;;  %1585 = vmatpush.msra.mxu2 %v1158_v18 }
  0xee   : > { %v675_v35 = vmul.f32 %v2096_v17, %v560_v19  ;;  %v600_v38 = vpop.permute.xlu2 %599  ;;  %651 = vperm.xlu0 %1674, %v1981_v30   ;;  %v2206_v42 = vpop.permute.xlu0 %1005  ;;  %1184 = vmatpush.msra.mxu0 %v1158_v18 }
  0xef   : > { %v685_v37 = vmul.f32 %v2096_v17, %v600_v38  ;;  %1013 = vperm.xlu1 %1665, %v1957_v24   ;;  %v485_v24 = vmul.f32 %v2081_v61, %v2032_v46  ;;  %1586 = vmatpush.msra.mxu2 %v1157_v6 }
  0xf0   : > { %v2214_v5 = vadd.f32 %v675_v35, %v514_v40  ;;  %1185 = vmatpush.msra.mxu0 %v1157_v6  ;;  %v1155_v40 = vld [vmem:[%s2745_s3 + $0x8] sm:$0xff]  ;;  %v488_v6 = vmul.f32 %v2081_v61, %v2041_v49 }
  0xf1   : > { %v2216_v19 = vadd.f32 %v685_v37, %v524_v21  ;;  %752 = vperm.xlu2 %1666, %v1867_v1   ;;  %1587 = vmatpush.msra.mxu2 %v1156_v20  ;;  %v517_v35 = vadd.f32 %v2089_v63, %v485_v24  ;;  %v1154_v37 = vld [vmem:[%s2745_s3] sm:$0xff]  ;;  %v2250_v24 = vperm.slane %v2071_v57, 2 }
  0xf2   : > { %1186 = vmatpush.msra.mxu0 %v1156_v20 }
  0xf3   : > { %2772 = vst [vmem:[#allocation13_spill] sm:$0xff] %v2216_v19  ;;  %1588 = vmatpush.msra.mxu2 %v1155_v40 }
  0xf4   : > { %1187 = vmatpush.msra.mxu0 %v1155_v40 }
  0xf5   : > { %v572_v3 = vpop.permute.xlu1 %571  ;;  %1589 = vmatpush.msra.mxu2 %v1154_v37 }
  0xf6   : > { %v678_v38 = vmul.f32 %v2096_v17, %v572_v3  ;;  %v2232_v21 = vpop.permute.xlu2 %611  ;;  %1677 = vset.pattern.permute.xlu0 %v2768_v32  ;;  %1188 = vmatpush.msra.mxu0 %v1154_v37  ;;  %v520_v3 = vadd.f32 %v2089_v63, %v488_v6  ;;  %v491_v6 = vmul.f32 %v2081_v61, %v2050_v52  ;;  %v2280_v52 = vperm.slane %v2071_v57, 3 }
  0xf7   : > { %945 = vperm.xlu0 %1677, %v1867_v1   ;;  %v2236_v46 = vpop.permute.xlu0 %808  ;;  %1667 = vset.pattern.permute.xlu1 %v2767_v58  ;;  %v498_v1 = vmul.f32 %v2081_v61, %v2039_v48 }
  0xf8   : > { %v710_v18 = vadd.f32 %v678_v38, %v517_v35  ;;  %824 = vperm.xlu1 %1667, %v1954_v23  }
  0xf9   : > { %1668 = vset.pattern.permute.xlu2 %v2768_v32  ;;  %v530_v40 = vadd.f32 %v2089_v63, %v498_v1  ;;  %v2774_v1 = vmov 1  }
  0xfa   : > { %1017 = vperm.xlu2 %1668, %v1954_v23  }
  0xfd   : > { %v584_v20 = vpop.permute.xlu1 %583 }
  0xfe   : > { %v681_v35 = vmul.f32 %v2096_v17, %v584_v20  ;;  %v624_v38 = vpop.permute.xlu2 %623 }
  0xff   : > { %v691_v49 = vmul.f32 %v2096_v17, %v624_v38  ;;  %949 = vperm.xlu0 %1677, %v1879_v4   ;;  %v749_v23 = vpop.permute.xlu0 %748 }
 0x100   : > { %v2257_v19 = vadd.f32 %v681_v35, %v520_v3  ;;  %v867_v48 = vmul.f32 %v2250_v24, %v749_v23  ;;  %756 = vperm.xlu1 %1667, %v1879_v4   ;;  %v523_v3 = vadd.f32 %v2089_v63, %v491_v6 }
 0x101   : > { %v2261_v37 = vadd.f32 %v691_v49, %v530_v40 }
 0x102   : > { %2773 = vst [vmem:[#allocation14_spill] sm:$0xff] %v2257_v19  ;;  %v2266_v20 = vadd.f32 %v867_v48, %v2117_v28  ;;  %1669 = vset.pattern.permute.xlu2 %v2774_v1  ;;  %v494_v28 = vmul.f32 %v2081_v61, %v2061_v55  ;;  %v1073_v55 = vmul.f32 %v2280_v52, %v2176_v39 }
 0x103   : > { %635 = vperm.xlu2 %1669, %v1951_v22  }
 0x104   : > { %v526_v48 = vadd.f32 %v2089_v63, %v494_v28 }
 0x105   : > { %v596_v38 = vpop.permute.xlu1 %595 }
 0x106   : > { %v684_v35 = vmul.f32 %v2096_v17, %v596_v38 }
 0x107   : > { %1037 = vperm.xlu0 %1677, %v1981_v30   ;;  %v761_v4 = vpop.permute.xlu0 %760  ;;  %v801_v40 = vpop.permute.xlu2 %800 }
 0x108   : > { %v2273_v49 = vadd.f32 %v684_v35, %v523_v3  ;;  %828 = vperm.xlu1 %1667, %v1951_v22   ;;  %v880_v6 = vmul.f32 %v2250_v24, %v801_v40 }
 0x10a   : > { %2775 = vst [vmem:[#allocation15_spill] sm:$0xff] %v2273_v49 }
 0x10b   : > { %1670 = vset.pattern.permute.xlu2 %v2768_v32 }
 0x10c   : > { %1021 = vperm.xlu2 %1670, %v1951_v22  }
 0x10d   : > { %v608_v23 = vpop.permute.xlu1 %607 }
 0x10e   : > { %v687_v38 = vmul.f32 %v2096_v17, %v608_v23 }
 0x10f   : > { %1041 = vperm.xlu0 %1677, %v1978_v29   ;;  %v765_v3 = vpop.permute.xlu0 %764 }
 0x110   : > { %v719_v35 = vadd.f32 %v687_v38, %v526_v48  ;;  %v871_v49 = vmul.f32 %v2250_v24, %v765_v3  ;;  %1671 = vset.pattern.permute.xlu1 %v2774_v1  ;;  %v998_v57 = vpop.permute.xlu2 %997  ;;  %v500_v48 = vmul.f32 %v2081_v61, %v2092_v16  ;;  %v495_v38 = vmul.f32 %v2081_v61, %v2030_v45 }
 0x111   : > { %639 = vperm.xlu1 %1671, %v1969_v27   ;;  %v497_v3 = vmul.f32 %v2081_v61, %v2075_v59 }
 0x112   : > { %v2292_v22 = vadd.f32 %v871_v49, %v710_v18  ;;  %v912_v28 = vadd.f32 %v880_v6, %v719_v35  ;;  %v484_v35 = vmul.f32 %v2081_v61, %v2035_v47 }
 0x114   : > { %953 = vperm.xlu2 %1670, %v1897_v9   ;;  %v1105_v40 = vadd.f32 %v1073_v55, %v912_v28  ;;  %v532_v9 = vadd.f32 %v2089_v63, %v500_v48  ;;  %v527_v55 = vadd.f32 %v2089_v63, %v495_v38  ;;  %v1074_v48 = vmul.f32 %v2280_v52, %v998_v57 }
 0x115   : > { %v620_v23 = vpop.permute.xlu1 %619 }
 0x116   : > { %v1137_v43 = vmax.f32 %v1105_v40, 0.0  ;;  %v690_v45 = vmul.f32 %v2096_v17, %v620_v23  ;;  %v1076_v23 = vmul.f32 %v2280_v52, %v2206_v42 }
 0x117   : > { %973 = vperm.xlu0 %1677, %v1903_v10   ;;  %v2296_v19 = vpop.permute.xlu0 %836 }
 0x118   : > { %v930_v39 = vpop.permute.xlu2 %929  ;;  %1237 = vmatmul.f32.vlgmr.msra.gmra.mxu2 %v1137_v43 }
 0x119   : > { %1672 = vset.pattern.permute.xlu1 %v2767_v58 }
 0x11a   : > { %832 = vperm.xlu1 %1672, %v1969_v27  }
 0x11c   : > { %1025 = vperm.xlu2 %1670, %v1969_v27   ;;  %v688_v27 = vmul.f32 %v2096_v17, %v2232_v21 }
 0x11d   : > { %v632_v18 = vpop.permute.xlu1 %631 }
 0x11e   : > { %v693_v49 = vmul.f32 %v2096_v17, %v632_v18  ;;  %v720_v40 = vadd.f32 %v688_v27, %v527_v55  ;;  %v529_v18 = vadd.f32 %v2089_v63, %v497_v3 }
 0x11f   : > { %1685 = vset.pattern.permute.xlu0 %v2767_v58 }
 0x120   : > { %v2306_v6 = vadd.f32 %v693_v49, %v532_v9  ;;  %784 = vperm.xlu0 %1685, %v1921_v15   ;;  %v548_v43 = vpop.permute.xlu0 %547  ;;  %v870_v9 = vmul.f32 %v2250_v24, %v761_v4  ;;  %v722_v27 = vadd.f32 %v690_v45, %v529_v18  ;;  %v487_v4 = vmul.f32 %v2081_v61, %v2044_v50 }
 0x121   : > { %v2311_v16 = vpop.permute.xlu2 %740 }
 0x122   : > { %1673 = vset.pattern.permute.xlu1 %v2774_v1 }
 0x123   : > { %643 = vperm.xlu1 %1673, %v1966_v26  }
 0x124   : > { %957 = vperm.xlu2 %1670, %v1894_v8   ;;  %v516_v8 = vadd.f32 %v2089_v63, %v484_v35 }
 0x126   : > { %v805_v28 = vpop.permute.xlu1 %804 }
 0x127   : > { %v881_v21 = vmul.f32 %v2250_v24, %v805_v28 }
 0x128   : > { %788 = vperm.xlu0 %1685, %v1918_v14   ;;  %v568_v59 = vpop.permute.xlu0 %567 }
 0x129   : > { %v913_v49 = vadd.f32 %v881_v21, %v720_v40  ;;  %v677_v47 = vmul.f32 %v2096_v17, %v568_v59  ;;  %v813_v38 = vpop.permute.xlu2 %812  ;;  %v519_v21 = vadd.f32 %v2089_v63, %v487_v4 }
 0x12a   : > { %v883_v57 = vmul.f32 %v2250_v24, %v813_v38 }
 0x12b   : > { %v709_v55 = vadd.f32 %v677_v47, %v516_v8  ;;  %1675 = vset.pattern.permute.xlu1 %v2768_v32  ;;  %v1106_v3 = vadd.f32 %v1074_v48, %v913_v49  ;;  %v490_v49 = vmul.f32 %v2081_v61, %v2054_v53  ;;  %v479_v47 = vmul.f32 %v2081_v61, %v2026_v44 }
 0x12c   : > { %v915_v14 = vadd.f32 %v883_v57, %v722_v27  ;;  %1676 = vset.pattern.permute.xlu2 %v2767_v58  ;;  %1029 = vperm.xlu1 %1675, %v1966_v26   ;;  %v1057_v26 = vmul.f32 %v2280_v52, %v930_v39  ;;  %v865_v44 = vmul.f32 %v2250_v24, %v2311_v16 }
 0x12d   : > { %768 = vperm.xlu2 %1676, %v1891_v7   ;;  %v1138_v35 = vmax.f32 %v1106_v3, 0.0  ;;  %v2340_v28 = vadd.f32 %v870_v9, %v709_v55  ;;  %v511_v53 = vadd.f32 %v2089_v63, %v479_v47 }
 0x12e   : > { %v737_v42 = vpop.permute.xlu1 %736  ;;  %v2342_v45 = vadd.f32 %v1076_v23, %v915_v14  ;;  %v522_v23 = vadd.f32 %v2089_v63, %v490_v49 }
 0x12f   : > { %v864_v40 = vmul.f32 %v2250_v24, %v737_v42  ;;  %1240 = vmatmul.f32.gmra.mxu2 %v1138_v35 }
 0x130   : > { %v580_v48 = vpop.permute.xlu0 %579  ;;  %860 = vperm.xlu0 %1685, %v1987_v31  }
 0x131   : > { %v896_v50 = vadd.f32 %v864_v40, %v2105_v62  ;;  %v680_v18 = vmul.f32 %v2096_v17, %v580_v48  ;;  %v672_v62 = vmul.f32 %v2096_v17, %v548_v43  ;;  %v493_v43 = vmul.f32 %v2081_v61, %v2064_v56 }
 0x132   : > { %v938_v59 = vpop.permute.xlu2 %937  ;;  %v496_v56 = vmul.f32 %v2081_v61, %v2078_v60 }
 0x133   : > { %v2350_v8 = vadd.f32 %v680_v18, %v519_v21  ;;  %v1089_v9 = vadd.f32 %v1057_v26, %v896_v50  ;;  %v704_v55 = vadd.f32 %v672_v62, %v511_v53  ;;  %v525_v35 = vadd.f32 %v2089_v63, %v493_v43 }
 0x134   : > { %961 = vperm.xlu1 %1675, %v1891_v7   ;;  %v528_v50 = vadd.f32 %v2089_v63, %v496_v56  ;;  %v1059_v18 = vmul.f32 %v2280_v52, %v938_v59  ;;  %v504_v53 = vmul.f32 %v2081_v61, %v2058_v54 }
 0x135   : > { %840 = vperm.xlu2 %1676, %v1963_v25   ;;  %v1121_v31 = vmax.f32 %v1089_v9, 0.0  ;;  %v897_v14 = vadd.f32 %v865_v44, %v704_v55 }
 0x136   : > { %v536_v44 = vadd.f32 %v2089_v63, %v504_v53 }
 0x137   : > { %v1002_v39 = vpop.permute.xlu1 %1001  ;;  %1189 = vmatmul.f32.vlgmr.msra.gmra.mxu0 %v1121_v31 }
 0x138   : > { %v592_v38 = vpop.permute.xlu0 %591  ;;  %1691 = vset.pattern.permute.xlu0 %v2768_v32 }
 0x139   : > { %v683_v7 = vmul.f32 %v2096_v17, %v592_v38  ;;  %985 = vperm.xlu0 %1691, %v1915_v13  }
 0x13a   : > { %v1010_v27 = vpop.permute.xlu2 %1009 }
 0x13b   : > { %v2364_v57 = vadd.f32 %v683_v7, %v522_v23 }
 0x13c   : > { %1033 = vperm.xlu1 %1675, %v1963_v25  }
 0x13d   : > { %772 = vperm.xlu2 %1676, %v1909_v12  }
 0x13f   : > { %v934_v3 = vpop.permute.xlu1 %933 }
 0x140   : > { %v1058_v13 = vmul.f32 %v2280_v52, %v934_v3  ;;  %v604_v4 = vpop.permute.xlu0 %603  ;;  %v499_v3 = vmul.f32 %v2081_v61, %v2098_v33 }
 0x141   : > { %v686_v42 = vmul.f32 %v2096_v17, %v604_v4  ;;  %v1140_v4 = vmax.f32 %v2342_v45, 0.0 }
 0x142   : > { %v1090_v40 = vadd.f32 %v1058_v13, %v897_v14  ;;  %v531_v33 = vadd.f32 %v2089_v63, %v499_v3 }
 0x143   : > { %v2375_v48 = vadd.f32 %v686_v42, %v525_v35  ;;  %v821_v16 = vpop.permute.xlu2 %820  ;;  %v1077_v42 = vmul.f32 %v2280_v52, %v1010_v27 }
 0x144   : > { %965 = vperm.xlu1 %1675, %v1909_v12   ;;  %v1122_v25 = vmax.f32 %v1090_v40, 0.0  ;;  %v882_v12 = vmul.f32 %v2250_v24, %v2236_v46  ;;  %v885_v27 = vmul.f32 %v2250_v24, %v821_v16 }
 0x145   : > { %844 = vperm.xlu2 %1676, %v1981_v30   ;;  %v1075_v30 = vmul.f32 %v2280_v52, %v1002_v39 }
 0x146   : > { %1192 = vmatmul.f32.gmra.mxu0 %v1122_v25 }
 0x148   : > { %v616_v21 = vpop.permute.xlu0 %615  ;;  %v745_v26 = vpop.permute.xlu1 %744 }
 0x149   : > { %v689_v9 = vmul.f32 %v2096_v17, %v616_v21  ;;  %v866_v49 = vmul.f32 %v2250_v24, %v745_v26  ;;  %v2776_v26 = vld [vmem:[#allocation5_spill] sm:$0xff] }
 0x14b   : > { %v721_v31 = vadd.f32 %v689_v9, %v528_v50  ;;  %v898_v47 = vadd.f32 %v866_v49, %v2184_v2  ;;  %v2388_v60 = vpop.permute.xlu2 %752  ;;  %v1334_v49 = vld [vmem:[%s2747_s5 + $0x78] sm:$0xff] }
 0x14c   : > { %1678 = vset.pattern.permute.xlu1 %v2767_v58  ;;  %1590 = vmatpush.msra.mxu3 %v1334_v49 }
 0x14d   : > { %1679 = vset.pattern.permute.xlu2 %v2774_v1  ;;  %776 = vperm.xlu1 %1678, %v1906_v11   ;;  %v1091_v59 = vadd.f32 %v1059_v18, %v898_v47  ;;  %v914_v62 = vadd.f32 %v882_v12, %v721_v31 }
 0x14e   : > { %655 = vperm.xlu2 %1679, %v1978_v29   ;;  %1338 = vmatpush.msra.mxu1 %v1334_v49 }
 0x14f   : > { %v1123_v38 = vmax.f32 %v1091_v59, 0.0  ;;  %v1107_v23 = vadd.f32 %v1075_v30, %v914_v62  ;;  %v1332_v30 = vld [vmem:[%s2747_s5 + $0x68] sm:$0xff]  ;;  %v868_v59 = vmul.f32 %v2250_v24, %v2388_v60  ;;  %v1330_v60 = vld [vmem:[%s2747_s5 + $0x58] sm:$0xff] }
 0x150   : > { %v628_v46 = vpop.permute.xlu0 %627  ;;  %v817_v7 = vpop.permute.xlu1 %816 }
 0x151   : > { %1195 = vmatmul.f32.gmra.mxu0 %v1123_v38  ;;  %v1139_v2 = vmax.f32 %v1107_v23, 0.0  ;;  %v884_v39 = vmul.f32 %v2250_v24, %v817_v7  ;;  %v1331_v38 = vld [vmem:[%s2747_s5 + $0x60] sm:$0xff]  ;;  %v900_v7 = vadd.f32 %v868_v59, %v2214_v5  ;;  %v1328_v5 = vld [vmem:[%s2747_s5 + $0x48] sm:$0xff] }
 0x153   : > { %1243 = vmatmul.f32.gmra.mxu2 %v1139_v2  ;;  %v916_v54 = vadd.f32 %v884_v39, %v2261_v37  ;;  %v505_v37 = vmul.f32 %v2081_v61, %v2123_v41  ;;  %v1329_v39 = vld [vmem:[%s2747_s5 + $0x50] sm:$0xff] }
 0x154   : > { %v2397_v55 = vpop.permute.xlu2 %1017 }
 0x155   : > { %1680 = vset.pattern.permute.xlu1 %v2768_v32  ;;  %v1109_v56 = vadd.f32 %v1077_v42, %v916_v54  ;;  %v537_v50 = vadd.f32 %v2089_v63, %v505_v37  ;;  %v1326_v42 = vld [vmem:[%s2747_s5 + $0x38] sm:$0xff] }
 0x156   : > { %1681 = vset.pattern.permute.xlu2 %v2767_v58  ;;  %969 = vperm.xlu1 %1680, %v1906_v11   ;;  %v692_v11 = vmul.f32 %v2096_v17, %v628_v46 }
 0x157   : > { %848 = vperm.xlu2 %1681, %v1978_v29   ;;  %v1141_v9 = vmax.f32 %v1109_v56, 0.0  ;;  %v1325_v56 = vld [vmem:[%s2747_s5 + $0x30] sm:$0xff] }
 0x158   : > { %v648_v43 = vpop.permute.xlu0 %647  ;;  %v724_v21 = vadd.f32 %v692_v11, %v531_v33 }
 0x159   : > { %v697_v14 = vmul.f32 %v2096_v17, %v648_v43  ;;  %v942_v13 = vpop.permute.xlu1 %941 }
 0x15a   : > { %v1060_v35 = vmul.f32 %v2280_v52, %v942_v13  ;;  %v917_v31 = vadd.f32 %v885_v27, %v724_v21  ;;  %v1324_v21 = vld [vmem:[%s2747_s5 + $0x28] sm:$0xff] }
 0x15b   : > { %v2413_v29 = vadd.f32 %v697_v14, %v536_v44  ;;  %1246 = vmatmul.f32.gmra.mxu2 %v1140_v4  ;;  %v1079_v44 = vmul.f32 %v2280_v52, %v2397_v55  ;;  %v1327_v55 = vld [vmem:[%s2747_s5 + $0x40] sm:$0xff] }
 0x15c   : > { %v1092_v40 = vadd.f32 %v1060_v35, %v2266_v20  ;;  %v2777_v35 = vld [vmem:[#allocation6_spill] sm:$0xff] }
 0x15d   : > { %v2419_v25 = vpop.permute.xlu2 %635 }
 0x15e   : > { %1682 = vset.pattern.permute.xlu1 %v2767_v58  ;;  %v1124_v45 = vmax.f32 %v1092_v40, 0.0 }
 0x15f   : > { %1683 = vset.pattern.permute.xlu2 %v2774_v1  ;;  %780 = vperm.xlu1 %1682, %v1903_v10   ;;  %v1333_v10 = vld [vmem:[%s2747_s5 + $0x70] sm:$0xff] }
 0x160   : > { %659 = vperm.xlu2 %1683, %v2776_v26   ;;  %v652_v20 = vpop.permute.xlu0 %651  ;;  %1198 = vmatmul.f32.gmra.mxu0 %v1124_v45 }
 0x161   : > { %v698_v41 = vmul.f32 %v2096_v17, %v652_v20  ;;  %v1014_v18 = vpop.permute.xlu1 %1013  ;;  %1591 = vmatpush.msra.mxu3 %v1333_v10  ;;  %1339 = vmatpush.msra.mxu1 %v1333_v10  ;;  %v694_v20 = vmul.f32 %v2096_v17, %v2419_v25  ;;  %v1322_v25 = vld [vmem:[%s2747_s5 + $0x18] sm:$0xff] }
 0x162   : > { %v1078_v16 = vmul.f32 %v2280_v52, %v1014_v18 }
 0x163   : > { %v2435_v12 = vadd.f32 %v698_v41, %v537_v50  ;;  %1249 = vmatmul.f32.gmra.mxu2 %v1141_v9  ;;  %1592 = vmatpush.msra.mxu3 %v1332_v30  ;;  %v1323_v41 = vld [vmem:[%s2747_s5 + $0x20] sm:$0xff] }
 0x164   : > { %v1110_v47 = vadd.f32 %v1078_v16, %v917_v31  ;;  %1340 = vmatpush.msra.mxu1 %v1332_v30 }
 0x165   : > { %1593 = vmatpush.msra.mxu3 %v1331_v38 }
 0x166   : > { %v2442_v62 = vpop.permute.xlu2 %1021  ;;  %v1142_v46 = vmax.f32 %v1110_v47, 0.0  ;;  %1341 = vmatpush.msra.mxu1 %v1331_v38  ;;  %v1321_v47 = vld [vmem:[%s2747_s5 + $0x10] sm:$0xff]  ;;  %v1320_v38 = vld [vmem:[%s2747_s5 + $0x8] sm:$0xff] }
 0x167   : > { %852 = vperm.xlu1 %1682, %v2776_v26   ;;  %1594 = vmatpush.msra.mxu3 %v1330_v60  ;;  %v1080_v10 = vmul.f32 %v2280_v52, %v2442_v62 }
 0x168   : > { %1684 = vset.pattern.permute.xlu2 %v2768_v32  ;;  %1342 = vmatpush.msra.mxu1 %v1330_v60 }
 0x169   : > { %1045 = vperm.xlu2 %1684, %v2776_v26   ;;  %v946_v23 = vpop.permute.xlu0 %945  ;;  %1595 = vmatpush.msra.mxu3 %v1329_v39 }
 0x16a   : > { %v1061_v2 = vmul.f32 %v2280_v52, %v946_v23  ;;  %v825_v53 = vpop.permute.xlu1 %824  ;;  %1343 = vmatpush.msra.mxu1 %v1329_v39 }
 0x16b   : > { %v886_v43 = vmul.f32 %v2250_v24, %v825_v53  ;;  %1252 = vmatmul.f32.gmra.mxu2 %v1142_v46  ;;  %1596 = vmatpush.msra.mxu3 %v1328_v5  ;;  %v1319_v46 = vld [vmem:[%s2747_s5] sm:$0xff]  ;;  %v1698_v53 = vld [vmem:[%s1864_s17 + $0xf8] sm:$0xff] }
 0x16c   : > { %v1093_v3 = vadd.f32 %v1061_v2, %v900_v7  ;;  %1344 = vmatpush.msra.mxu1 %v1328_v5  ;;  %v1697_v7 = vld [vmem:[%s1864_s17 + $0x68] sm:$0xff]  ;;  %v1699_v5 = vld [vmem:[%s1864_s17 + $0x70] sm:$0xff] }
 0x16d   : > { %v918_v54 = vadd.f32 %v886_v43, %v2306_v6  ;;  %1597 = vmatpush.msra.mxu3 %v1327_v55  ;;  %v502_v43 = vmul.f32 %v2081_v61, %v2110_v51 }
 0x16e   : > { %v954_v14 = vpop.permute.xlu2 %953  ;;  %v1125_v13 = vmax.f32 %v1093_v3, 0.0  ;;  %1345 = vmatpush.msra.mxu1 %v1327_v55 }
 0x16f   : > { %1686 = vset.pattern.permute.xlu1 %v2774_v1  ;;  %v1111_v4 = vadd.f32 %v1079_v44, %v918_v54  ;;  %1598 = vmatpush.msra.mxu3 %v1326_v42  ;;  %v1063_v18 = vmul.f32 %v2280_v52, %v954_v14  ;;  %v534_v14 = vadd.f32 %v2089_v63, %v502_v43 }
 0x170   : > { %1201 = vmatmul.f32.gmra.mxu0 %v1125_v13  ;;  %663 = vperm.xlu1 %1686, %v2777_v35  }
 0x171   : > { %977 = vperm.xlu2 %1684, %v1921_v15   ;;  %v1143_v6 = vmax.f32 %v1111_v4, 0.0  ;;  %v950_v11 = vpop.permute.xlu0 %949  ;;  %1346 = vmatpush.msra.mxu1 %v1326_v42  ;;  %v2778_v15 = vld [vmem:[#allocation7_spill] sm:$0xff]  ;;  %v1095_v59 = vadd.f32 %v1063_v18, %v2340_v28  ;;  %v2779_v42 = vld [vmem:[#allocation9_spill] sm:$0xff] }
 0x172   : > { %v757_v40 = vpop.permute.xlu1 %756  ;;  %v1062_v33 = vmul.f32 %v2280_v52, %v950_v11  ;;  %v501_v45 = vmul.f32 %v2081_v61, %v2778_v15  ;;  %1599 = vmatpush.msra.mxu3 %v1325_v56  ;;  %v503_v11 = vmul.f32 %v2081_v61, %v2779_v42 }
 0x173   : > { %v869_v37 = vmul.f32 %v2250_v24, %v757_v40  ;;  %1255 = vmatmul.f32.gmra.mxu2 %v1143_v6  ;;  %1347 = vmatpush.msra.mxu1 %v1325_v56  ;;  %v1127_v28 = vmax.f32 %v1095_v59, 0.0 }
 0x174   : > { %1600 = vmatpush.msra.mxu3 %v1324_v21  ;;  %v535_v56 = vadd.f32 %v2089_v63, %v503_v11 }
 0x175   : > { %v901_v27 = vadd.f32 %v869_v37, %v2132_v34  ;;  %1348 = vmatpush.msra.mxu1 %v1324_v21  ;;  %v533_v34 = vadd.f32 %v2089_v63, %v501_v45 }
 0x176   : > { %v1026_v26 = vpop.permute.xlu2 %1025  ;;  %1601 = vmatpush.msra.mxu3 %v1323_v41 }
 0x177   : > { %v1094_v50 = vadd.f32 %v1062_v33, %v901_v27  ;;  %1349 = vmatpush.msra.mxu1 %v1323_v41  ;;  %v726_v16 = vadd.f32 %v694_v20, %v533_v34  ;;  %v1081_v51 = vmul.f32 %v2280_v52, %v1026_v26  ;;  %v1700_v33 = vld [vmem:[%s1864_s17 + $0x78] sm:$0xff]  ;;  %v889_v27 = vmul.f32 %v2250_v24, %v2296_v19  ;;  %s1718_s17 = scalar_lea.hbm %s1717_s28, 256 }
 0x178   : > { %1687 = vset.pattern.permute.xlu1 %v2767_v58  ;;  %1602 = vmatpush.msra.mxu3 %v1322_v25  ;;  %p1719_p11 = scmp.ne.s32.totalorder %s1717_s28, %s1718_s17  ;;  %p1724_p1 = scmp.lt.s32.totalorder %s1722_s9, %s1718_s17 }
 0x179   : > { %1049 = vperm.xlu2 %1684, %v2777_v35   ;;  %856 = vperm.xlu1 %1687, %v2777_v35   ;;  %v1126_v9 = vmax.f32 %v1094_v50, 0.0 }
 0x17a   : > { %v829_v49 = vpop.permute.xlu1 %828  ;;  %1350 = vmatpush.msra.mxu1 %v1322_v25  ;;  %1603 = vmatpush.msra.mxu3 %v1321_v47  ;;  %p1720_p12 = pnand %p1719_p11, %p1850_p5  ;;  %p1725_p2 = por %p1724_p1, %p1723_p0 }
 0x17b   : > { %v887_v31 = vmul.f32 %v2250_v24, %v829_v49  ;;  %1204 = vmatmul.f32.gmra.mxu0 %v1126_v9 }
 0x17c   : > { %1351 = vmatpush.msra.mxu1 %v1321_v47  ;;  %1604 = vmatpush.msra.mxu3 %v1320_v38  ;;  %v1038_v47 = vpop.permute.xlu0 %1037  ;;  %p1721_p13 = pneg %p1720_p12 }
 0x17d   : > { %v919_v30 = vadd.f32 %v887_v31, %v726_v16 }
 0x17e   : > { %v958_v23 = vpop.permute.xlu2 %957  ;;  %1352 = vmatpush.msra.mxu1 %v1320_v38  ;;  %1605 = vmatpush.msra.mxu3 %v1319_v46  ;;  %p1726_p3 = pnand %p1725_p2, %p1721_p13 }
 0x17f   : > { %v1112_v62 = vadd.f32 %v1080_v10, %v919_v30  ;;  %v1064_v60 = vmul.f32 %v2280_v52, %v958_v23 }
 0x180   : > { %1353 = vmatpush.msra.mxu1 %v1319_v46 }
 0x181   : > { %981 = vperm.xlu2 %1684, %v1697_v7   ;;  %1688 = vset.pattern.permute.xlu1 %v2774_v1  ;;  %v1144_v2 = vmax.f32 %v1112_v62, 0.0  ;;  %v1096_v44 = vadd.f32 %v1064_v60, %v2292_v22 }
 0x182   : > { %667 = vperm.xlu1 %1688, %v1698_v53  }
 0x183   : > { %v640_v39 = vpop.permute.xlu1 %639  ;;  %1207 = vmatmul.f32.gmra.mxu0 %v1127_v28  ;;  %1258 = vmatmul.f32.gmra.mxu2 %v1144_v2  ;;  %v1128_v1 = vmax.f32 %v1096_v44, 0.0 }
 0x184   : > { %v695_v54 = vmul.f32 %v2096_v17, %v640_v39 }
 0x186   : > { %v727_v22 = vadd.f32 %v695_v54, %v534_v14 }
 0x187   : > { %v769_v3 = vpop.permute.xlu2 %768 }
 0x188   : > { %v872_v9 = vmul.f32 %v2250_v24, %v769_v3  ;;  %v1042_v3 = vpop.permute.xlu0 %1041 }
 0x189   : > { %1690 = vset.pattern.permute.xlu2 %v2767_v58  ;;  %v1085_v11 = vmul.f32 %v2280_v52, %v1042_v3 }
 0x18a   : > { %792 = vperm.xlu2 %1690, %v1699_v5   ;;  %1689 = vset.pattern.permute.xlu1 %v2768_v32  ;;  %v904_v49 = vadd.f32 %v872_v9, %v2157_v36  ;;  %v506_v36 = vmul.f32 %v2081_v61, %v2121_v0  ;;  %v2559_v0 = vld [vmem:[%s2744_s2] ss:$0 sm:$0xff] }
 0x18b   : > { %1053 = vperm.xlu1 %1689, %v1698_v53   ;;  %1210 = vmatmul.f32.gmra.mxu0 %v1128_v1  ;;  %v1084_v53 = vmul.f32 %v2280_v52, %v1038_v47 }
 0x18c   : > { %v833_v13 = vpop.permute.xlu1 %832  ;;  %v538_v14 = vadd.f32 %v2559_v0, %v506_v36 }
 0x18d   : > { %v888_v4 = vmul.f32 %v2250_v24, %v833_v13 }
 0x18f   : > { %v920_v55 = vadd.f32 %v888_v4, %v727_v22  ;;  %v841_v35 = vpop.permute.xlu2 %840 }
 0x190   : > { %v890_v30 = vmul.f32 %v2250_v24, %v841_v35 }
 0x191   : > { %v1113_v6 = vadd.f32 %v1081_v51, %v920_v55 }
 0x192   : > { %1693 = vset.pattern.permute.xlu2 %v2768_v32  ;;  %v2537_v32 = vld [vmem:[%s2746_s4] ss:$0 sm:$0xff]  ;;  %v922_v23 = vadd.f32 %v890_v30, %v2413_v29 }
 0x193   : > { %1692 = vset.pattern.permute.xlu1 %v2767_v58  ;;  %v1145_v40 = vmax.f32 %v1113_v6, 0.0  ;;  %989 = vperm.xlu2 %1693, %v1700_v33  }
 0x194   : > { %796 = vperm.xlu1 %1692, %v1700_v33  }
 0x195   : > { %v644_v37 = vpop.permute.xlu1 %643  ;;  %1261 = vmatmul.f32.gmra.mxu2 %v1145_v40 }
 0x196   : > { %v696_v15 = vmul.f32 %v2096_v17, %v644_v37 }
 0x197   : > { %v773_v45 = vpop.permute.xlu2 %772 }
 0x198   : > { %v728_v21 = vadd.f32 %v696_v15, %v535_v56  ;;  %v873_v28 = vmul.f32 %v2250_v24, %v773_v45 }
 0x19a   : > { %v921_v58 = vadd.f32 %v889_v27, %v728_v21 }
 0x19b   : > { %v1238_v26 = vpop.f32.mrf.mxu2 }
 0x19c   : > { %v1239_v20 = vadd.f32 %v2537_v32, %v1238_v26 }
 0x19e   : > { %v1302_v50 = vmax.f32 %v1239_v20, 0.0  ;;  %v1030_v41 = vpop.permute.xlu1 %1029 }
 0x19f   : > { %v1082_v63 = vmul.f32 %v2280_v52, %v1030_v41  ;;  %v845_v34 = vpop.permute.xlu2 %844 }
 0x1a0   : > { %1402 = vmatmul.f32.vlgmr.msra.gmra.mxu3 %v1302_v50  ;;  %v891_v62 = vmul.f32 %v2250_v24, %v845_v34 }
 0x1a1   : > { %v1114_v18 = vadd.f32 %v1082_v63, %v921_v58  ;;  %v2780_v63 = vld [vmem:[#allocation14_spill] sm:$0xff] }
 0x1a2   : > { %v923_v39 = vadd.f32 %v891_v62, %v2435_v12  ;;  %v905_v12 = vadd.f32 %v873_v28, %v2350_v8  ;;  %v974_v8 = vpop.permute.xlu0 %973 }
 0x1a3   : > { %v1146_v19 = vmax.f32 %v1114_v18, 0.0  ;;  %v1068_v62 = vmul.f32 %v2280_v52, %v974_v8 }
 0x1a4   : > { %v1116_v55 = vadd.f32 %v1084_v53, %v923_v39 }
 0x1a5   : > { %1264 = vmatmul.f32.gmra.mxu2 %v1146_v19 }
 0x1a6   : > { %v962_v25 = vpop.permute.xlu1 %961  ;;  %v1148_v37 = vmax.f32 %v1116_v55, 0.0 }
 0x1a7   : > { %v1065_v16 = vmul.f32 %v2280_v52, %v962_v25 }
 0x1a8   : > { %v656_v10 = vpop.permute.xlu2 %655 }
 0x1a9   : > { %v1097_v31 = vadd.f32 %v1065_v16, %v904_v49  ;;  %v699_v54 = vmul.f32 %v2096_v17, %v656_v10 }
 0x1aa   : > { %v785_v41 = vpop.permute.xlu0 %784 }
 0x1ab   : > { %v1129_v59 = vmax.f32 %v1097_v31, 0.0  ;;  %v731_v35 = vadd.f32 %v699_v54, %v538_v14 }
 0x1ad   : > { %1213 = vmatmul.f32.gmra.mxu0 %v1129_v59 }
 0x1ae   : > { %v1034_v38 = vpop.permute.xlu1 %1033 }
 0x1af   : > { %v1083_v46 = vmul.f32 %v2280_v52, %v1034_v38  ;;  %v2781_v38 = vld [vmem:[#allocation8_spill] sm:$0xff] }
 0x1b1   : > { %v849_v60 = vpop.permute.xlu2 %848  ;;  %v1115_v7 = vadd.f32 %v1083_v46, %v922_v23  ;;  %v507_v23 = vmul.f32 %v2081_v61, %v2781_v38  ;;  %v2782_v46 = vld [vmem:[#allocation12_spill] sm:$0xff] }
 0x1b2   : > { %v1241_v2 = vpop.f32.mrf.mxu2  ;;  %v892_v22 = vmul.f32 %v2250_v24, %v849_v60  ;;  %v789_v30 = vpop.permute.xlu0 %788 }
 0x1b3   : > { %v1242_v44 = vadd.f32 %v2537_v32, %v1241_v2  ;;  %v1147_v43 = vmax.f32 %v1115_v7, 0.0  ;;  %v876_v7 = vmul.f32 %v2250_v24, %v785_v41  ;;  %v539_v39 = vadd.f32 %v2559_v0, %v507_v23 }
 0x1b4   : > { %v1190_v29 = vpop.f32.mrf.mxu0  ;;  %v924_v40 = vadd.f32 %v892_v22, %v731_v35  ;;  %v877_v55 = vmul.f32 %v2250_v24, %v789_v30 }
 0x1b5   : > { %v1303_v1 = vmax.f32 %v1242_v44, 0.0  ;;  %v1191_v5 = vadd.f32 %v2537_v32, %v1190_v29  ;;  %1267 = vmatmul.f32.gmra.mxu2 %v1147_v43  ;;  %v908_v54 = vadd.f32 %v876_v7, %v2364_v57 }
 0x1b6   : > { %v966_v13 = vpop.permute.xlu1 %965  ;;  %v1117_v15 = vadd.f32 %v1085_v11, %v924_v40 }
 0x1b7   : > { %v1286_v4 = vmax.f32 %v1191_v5, 0.0  ;;  %v1066_v51 = vmul.f32 %v2280_v52, %v966_v13  ;;  %1405 = vmatmul.f32.gmra.mxu3 %v1303_v1 }
 0x1b8   : > { %v1149_v21 = vmax.f32 %v1117_v15, 0.0 }
 0x1b9   : > { %1354 = vmatmul.f32.vlgmr.msra.gmra.mxu1 %v1286_v4  ;;  %v1098_v6 = vadd.f32 %v1066_v51, %v905_v12 }
 0x1ba   : > { %v660_v42 = vpop.permute.xlu2 %659  ;;  %v2584_v13 = vpop.permute.xlu0 %860 }
 0x1bb   : > { %v1130_v33 = vmax.f32 %v1098_v6, 0.0  ;;  %v700_v36 = vmul.f32 %v2096_v17, %v660_v42 }
 0x1bd   : > { %1216 = vmatmul.f32.gmra.mxu0 %v1130_v33  ;;  %1270 = vmatmul.f32.gmra.mxu2 %v1148_v37  ;;  %v732_v1 = vadd.f32 %v700_v36, %v539_v39 }
 0x1bf   : > { %v777_v56 = vpop.permute.xlu1 %776 }
 0x1c0   : > { %v874_v26 = vmul.f32 %v2250_v24, %v777_v56  ;;  %v2783_v56 = vld [vmem:[#allocation15_spill] sm:$0xff] }
 0x1c1   : > { %v909_v15 = vadd.f32 %v877_v55, %v2783_v56 }
 0x1c2   : > { %v906_v34 = vadd.f32 %v874_v26, %v2780_v63  ;;  %v986_v26 = vpop.permute.xlu0 %985 }
 0x1c3   : > { %v1046_v45 = vpop.permute.xlu2 %1045  ;;  %v1193_v27 = vpop.f32.mrf.mxu0 }
 0x1c4   : > { %v1194_v58 = vadd.f32 %v2537_v32, %v1193_v27  ;;  %v1086_v5 = vmul.f32 %v2280_v52, %v1046_v45 }
 0x1c5   : > { %1273 = vmatmul.f32.gmra.mxu2 %v1149_v21 }
 0x1c6   : > { %v1287_v20 = vmax.f32 %v1194_v58, 0.0 }
 0x1c8   : > { %v970_v50 = vpop.permute.xlu1 %969  ;;  %1357 = vmatmul.f32.gmra.mxu1 %v1287_v20  ;;  %v2784_v20 = vld [vmem:[#allocation11_spill] sm:$0xff] }
 0x1c9   : > { %v1067_v18 = vmul.f32 %v2280_v52, %v970_v50  ;;  %v508_v50 = vmul.f32 %v2081_v61, %v2784_v20 }
 0x1cb   : > { %v978_v9 = vpop.permute.xlu2 %977  ;;  %v1099_v19 = vadd.f32 %v1067_v18, %v906_v34  ;;  %v2785_v18 = vld [vmem:[#allocation13_spill] sm:$0xff] }
 0x1cc   : > { %v1069_v44 = vmul.f32 %v2280_v52, %v978_v9 }
 0x1cd   : > { %v1131_v25 = vmax.f32 %v1099_v19, 0.0  ;;  %v1071_v19 = vmul.f32 %v2280_v52, %v986_v26 }
 0x1ce   : > { %v1196_v49 = vpop.f32.mrf.mxu0  ;;  %v1101_v4 = vadd.f32 %v1069_v44, %v908_v54  ;;  %v2786_v44 = vld [vmem:[#allocation10_spill] sm:$0xff] }
 0x1cf   : > { %v1197_v16 = vadd.f32 %v2537_v32, %v1196_v49  ;;  %1219 = vmatmul.f32.gmra.mxu0 %v1131_v25 }
 0x1d0   : > { %v1133_v33 = vmax.f32 %v1101_v4, 0.0 }
 0x1d1   : > { %v1288_v10 = vmax.f32 %v1197_v16, 0.0  ;;  %v781_v31 = vpop.permute.xlu1 %780  ;;  %v540_v16 = vadd.f32 %v2559_v0, %v508_v50 }
 0x1d2   : > { %v875_v47 = vmul.f32 %v2250_v24, %v781_v31 }
 0x1d3   : > { %v1050_v59 = vpop.permute.xlu2 %1049  ;;  %1360 = vmatmul.f32.gmra.mxu1 %v1288_v10 }
 0x1d4   : > { %v907_v60 = vadd.f32 %v875_v47, %v2782_v46  ;;  %v1087_v23 = vmul.f32 %v2280_v52, %v1050_v59 }
 0x1d6   : > { %v1244_v28 = vpop.f32.mrf.mxu2  ;;  %v1100_v2 = vadd.f32 %v1068_v62, %v907_v60 }
 0x1d7   : > { %v1245_v53 = vadd.f32 %v2537_v32, %v1244_v28 }
 0x1d8   : > { %v1132_v43 = vmax.f32 %v1100_v2, 0.0 }
 0x1d9   : > { %v1304_v29 = vmax.f32 %v1245_v53, 0.0  ;;  %v853_v3 = vpop.permute.xlu1 %852 }
 0x1da   : > { %v893_v14 = vmul.f32 %v2250_v24, %v853_v3  ;;  %1222 = vmatmul.f32.gmra.mxu0 %v1132_v43  ;;  %v509_v43 = vmul.f32 %v2081_v61, %v2786_v44 }
 0x1db   : > { %v982_v12 = vpop.permute.xlu2 %981  ;;  %1408 = vmatmul.f32.gmra.mxu3 %v1304_v29 }
 0x1dc   : > { %v925_v22 = vadd.f32 %v893_v14, %v732_v1  ;;  %v1070_v11 = vmul.f32 %v2280_v52, %v982_v12  ;;  %v541_v1 = vadd.f32 %v2559_v0, %v509_v43 }
 0x1dd   : > { %v1199_v51 = vpop.f32.mrf.mxu0 }
 0x1de   : > { %v1200_v35 = vadd.f32 %v2537_v32, %v1199_v51  ;;  %v1247_v6 = vpop.f32.mrf.mxu2  ;;  %v1118_v42 = vadd.f32 %v1086_v5, %v925_v22  ;;  %v1102_v21 = vadd.f32 %v1070_v11, %v909_v15  ;;  %v895_v51 = vmul.f32 %v2250_v24, %v2584_v13 }
 0x1df   : > { %v1248_v57 = vadd.f32 %v2537_v32, %v1247_v6 }
 0x1e0   : > { %v1289_v40 = vmax.f32 %v1200_v35, 0.0  ;;  %v1150_v37 = vmax.f32 %v1118_v42, 0.0  ;;  %v1134_v25 = vmax.f32 %v1102_v21, 0.0 }
 0x1e1   : > { %v1305_v8 = vmax.f32 %v1248_v57, 0.0 }
 0x1e2   : > { %v664_v45 = vpop.permute.xlu1 %663  ;;  %1225 = vmatmul.f32.gmra.mxu0 %v1133_v33  ;;  %1276 = vmatmul.f32.gmra.mxu2 %v1150_v37 }
 0x1e3   : > { %1363 = vmatmul.f32.gmra.mxu1 %v1289_v40  ;;  %1411 = vmatmul.f32.gmra.mxu3 %v1305_v8  ;;  %v701_v34 = vmul.f32 %v2096_v17, %v664_v45 }
 0x1e4   : > { %v793_v27 = vpop.permute.xlu2 %792 }
 0x1e5   : > { %v878_v58 = vmul.f32 %v2250_v24, %v793_v27  ;;  %v733_v31 = vadd.f32 %v701_v34, %v540_v16 }
 0x1e6   : > { %v1250_v41 = vpop.f32.mrf.mxu2 }
 0x1e7   : > { %v1251_v63 = vadd.f32 %v2537_v32, %v1250_v41  ;;  %v910_v9 = vadd.f32 %v878_v58, %v2785_v18 }
 0x1e9   : > { %v1306_v49 = vmax.f32 %v1251_v63, 0.0  ;;  %v1103_v30 = vadd.f32 %v1071_v19, %v910_v9 }
 0x1ea   : > { %1228 = vmatmul.f32.gmra.mxu0 %v1134_v25 }
 0x1eb   : > { %1414 = vmatmul.f32.gmra.mxu3 %v1306_v49  ;;  %v857_v10 = vpop.permute.xlu1 %856  ;;  %v1135_v28 = vmax.f32 %v1103_v30, 0.0 }
 0x1ec   : > { %v894_v47 = vmul.f32 %v2250_v24, %v857_v10 }
 0x1ed   : > { %v1202_v38 = vpop.f32.mrf.mxu0  ;;  %v990_v11 = vpop.permute.xlu2 %989 }
 0x1ee   : > { %v926_v62 = vadd.f32 %v894_v47, %v733_v31  ;;  %v1203_v46 = vadd.f32 %v2537_v32, %v1202_v38  ;;  %v1253_v60 = vpop.f32.mrf.mxu2  ;;  %v1072_v8 = vmul.f32 %v2280_v52, %v990_v11 }
 0x1ef   : > { %v1254_v7 = vadd.f32 %v2537_v32, %v1253_v60 }
 0x1f0   : > { %v1290_v36 = vmax.f32 %v1203_v46, 0.0  ;;  %v1119_v2 = vadd.f32 %v1087_v23, %v926_v62 }
 0x1f1   : > { %v1307_v53 = vmax.f32 %v1254_v7, 0.0 }
 0x1f2   : > { %1366 = vmatmul.f32.gmra.mxu1 %v1290_v36  ;;  %1231 = vmatmul.f32.gmra.mxu0 %v1135_v28  ;;  %v1151_v39 = vmax.f32 %v1119_v2, 0.0 }
 0x1f3   : > { %1417 = vmatmul.f32.gmra.mxu3 %v1307_v53 }
 0x1f4   : > { %v668_v29 = vpop.permute.xlu1 %667  ;;  %1279 = vmatmul.f32.gmra.mxu2 %v1151_v39 }
 0x1f5   : > { %v702_v59 = vmul.f32 %v2096_v17, %v668_v29 }
 0x1f6   : > { %v1256_v3 = vpop.f32.mrf.mxu2 }
 0x1f7   : > { %v1257_v54 = vadd.f32 %v2537_v32, %v1256_v3  ;;  %v734_v22 = vadd.f32 %v702_v59, %v541_v1 }
 0x1f8   : > { %v1205_v5 = vpop.f32.mrf.mxu0 }
 0x1f9   : > { %v1308_v14 = vmax.f32 %v1257_v54, 0.0  ;;  %v1206_v12 = vadd.f32 %v2537_v32, %v1205_v5  ;;  %v927_v17 = vadd.f32 %v895_v51, %v734_v22 }
 0x1fb   : > { %v1291_v4 = vmax.f32 %v1206_v12, 0.0  ;;  %1420 = vmatmul.f32.gmra.mxu3 %v1308_v14 }
 0x1fd   : > { %v1054_v61 = vpop.permute.xlu1 %1053  ;;  %1369 = vmatmul.f32.gmra.mxu1 %v1291_v4 }
 0x1fe   : > { %v1088_v55 = vmul.f32 %v2280_v52, %v1054_v61  ;;  %v2625_v52 = vld [vmem:[%s2748_s6] ss:$0 sm:$0xff] }
 0x200   : > { %v1208_v35 = vpop.f32.mrf.mxu0  ;;  %v1120_v6 = vadd.f32 %v1088_v55, %v927_v17 }
 0x201   : > { %v1209_v42 = vadd.f32 %v2537_v32, %v1208_v35 }
 0x202   : > { %v1152_v0 = vmax.f32 %v1120_v6, 0.0 }
 0x203   : > { %v1292_v57 = vmax.f32 %v1209_v42, 0.0 }
 0x204   : > { %1282 = vmatmul.f32.gmra.mxu2 %v1152_v0 }
 0x205   : > { %1372 = vmatmul.f32.gmra.mxu1 %v1292_v57 }
 0x206   : > { %v797_v40 = vpop.permute.xlu1 %796  ;;  %v1259_v33 = vpop.f32.mrf.mxu2 }
 0x207   : > { %v879_v37 = vmul.f32 %v2250_v24, %v797_v40  ;;  %v1260_v13 = vadd.f32 %v2537_v32, %v1259_v33 }
 0x208   : > { %v1211_v56 = vpop.f32.mrf.mxu0 }
 0x209   : > { %v911_v15 = vadd.f32 %v879_v37, %v2375_v48  ;;  %v1309_v45 = vmax.f32 %v1260_v13, 0.0  ;;  %v1212_v27 = vadd.f32 %v2537_v32, %v1211_v56 }
 0x20b   : > { %v1293_v21 = vmax.f32 %v1212_v27, 0.0  ;;  %1423 = vmatmul.f32.gmra.mxu3 %v1309_v45  ;;  %v1104_v58 = vadd.f32 %v1072_v8, %v911_v15 }
 0x20d   : > { %1375 = vmatmul.f32.gmra.mxu1 %v1293_v21  ;;  %v1136_v26 = vmax.f32 %v1104_v58, 0.0 }
 0x20f   : > { %1234 = vmatmul.f32.gmra.mxu0 %v1136_v26 }
 0x218   : > { %v1262_v20 = vpop.f32.mrf.mxu2 }
 0x219   : > { %v1263_v24 = vadd.f32 %v2537_v32, %v1262_v20 }
 0x21b   : > { %v1310_v50 = vmax.f32 %v1263_v24, 0.0 }
 0x21d   : > { %1426 = vmatmul.f32.gmra.mxu3 %v1310_v50 }
 0x223   : > { %v1403_v48 = vpop.f32.mrf.mxu3 }
 0x224   : > { %v1404_v41 = vadd.f32 %v2625_v52, %v1403_v48 }
 0x226   : > { %1467 = vst [vmem:[%s2628_s14 + $0x80] sm:$0xff] %v1404_v41 }
 0x228   : > { %v1265_v63 = vpop.f32.mrf.mxu2 }
 0x229   : > { %v1266_v34 = vadd.f32 %v2537_v32, %v1265_v63 }
 0x22a   : > { %v1214_v18 = vpop.f32.mrf.mxu0 }
 0x22b   : > { %v1311_v9 = vmax.f32 %v1266_v34, 0.0  ;;  %v1215_v19 = vadd.f32 %v2537_v32, %v1214_v18 }
 0x22d   : > { %v1294_v25 = vmax.f32 %v1215_v19, 0.0  ;;  %1429 = vmatmul.f32.gmra.mxu3 %v1311_v9 }
 0x22f   : > { %1378 = vmatmul.f32.gmra.mxu1 %v1294_v25 }
 0x236   : > { %v1355_v49 = vpop.f32.mrf.mxu1 }
 0x237   : > { %v1356_v16 = vadd.f32 %v2625_v52, %v1355_v49 }
 0x238   : > { %v1268_v10 = vpop.f32.mrf.mxu2 }
 0x239   : > { %1451 = vst [vmem:[%s2628_s14] sm:$0xff] %v1356_v16  ;;  %v1269_v31 = vadd.f32 %v2537_v32, %v1268_v10 }
 0x23a   : > { %v1217_v47 = vpop.f32.mrf.mxu0  ;;  %v1406_v30 = vpop.f32.mrf.mxu3 }
 0x23b   : > { %v1312_v38 = vmax.f32 %v1269_v31, 0.0  ;;  %v1218_v23 = vadd.f32 %v2537_v32, %v1217_v47  ;;  %v1407_v62 = vadd.f32 %v2625_v52, %v1406_v30 }
 0x23d   : > { %v1295_v46 = vmax.f32 %v1218_v23, 0.0  ;;  %1468 = vst [vmem:[%s2628_s14 + $0x88] sm:$0xff] %v1407_v62  ;;  %1432 = vmatmul.f32.gmra.mxu3 %v1312_v38 }
 0x23f   : > { %1381 = vmatmul.f32.gmra.mxu1 %v1295_v46 }
 0x240   : > { %v1271_v60 = vpop.f32.mrf.mxu2 }
 0x241   : > { %v1272_v7 = vadd.f32 %v2537_v32, %v1271_v60 }
 0x243   : > { %v1313_v36 = vmax.f32 %v1272_v7, 0.0 }
 0x245   : > { %v1358_v28 = vpop.f32.mrf.mxu1  ;;  %1435 = vmatmul.f32.gmra.mxu3 %v1313_v36 }
 0x246   : > { %v1359_v2 = vadd.f32 %v2625_v52, %v1358_v28 }
 0x248   : > { %1452 = vst [vmem:[%s2628_s14 + $0x8] sm:$0xff] %v1359_v2  ;;  %v1274_v53 = vpop.f32.mrf.mxu2 }
 0x249   : > { %v1275_v39 = vadd.f32 %v2537_v32, %v1274_v53 }
 0x24b   : > { %v1314_v44 = vmax.f32 %v1275_v39, 0.0 }
 0x24c   : > { %v1220_v43 = vpop.f32.mrf.mxu0 }
 0x24d   : > { %v1221_v29 = vadd.f32 %v2537_v32, %v1220_v43  ;;  %1438 = vmatmul.f32.gmra.mxu3 %v1314_v44 }
 0x24f   : > { %v1296_v59 = vmax.f32 %v1221_v29, 0.0 }
 0x250   : > { %v1361_v3 = vpop.f32.mrf.mxu1 }
 0x251   : > { %v1362_v54 = vadd.f32 %v2625_v52, %v1361_v3  ;;  %1384 = vmatmul.f32.gmra.mxu1 %v1296_v59 }
 0x253   : > { %1453 = vst [vmem:[%s2628_s14 + $0x10] sm:$0xff] %v1362_v54 }
 0x257   : > { %v1223_v1 = vpop.f32.mrf.mxu0 }
 0x258   : > { %v1224_v5 = vadd.f32 %v2537_v32, %v1223_v1 }
 0x25a   : > { %v1297_v14 = vmax.f32 %v1224_v5, 0.0 }
 0x25c   : > { %1387 = vmatmul.f32.gmra.mxu1 %v1297_v14 }
 0x25e   : > { %v1409_v12 = vpop.f32.mrf.mxu3 }
 0x25f   : > { %v1410_v22 = vadd.f32 %v2625_v52, %v1409_v12  ;;  %v1226_v4 = vpop.f32.mrf.mxu0 }
 0x260   : > { %v1227_v51 = vadd.f32 %v2537_v32, %v1226_v4  ;;  %v1364_v61 = vpop.f32.mrf.mxu1 }
 0x261   : > { %1469 = vst [vmem:[%s2628_s14 + $0x90] sm:$0xff] %v1410_v22  ;;  %v1365_v55 = vadd.f32 %v2625_v52, %v1364_v61 }
 0x262   : > { %v1298_v17 = vmax.f32 %v1227_v51, 0.0 }
 0x263   : > { %1454 = vst [vmem:[%s2628_s14 + $0x18] sm:$0xff] %v1365_v55 }
 0x264   : > { %1390 = vmatmul.f32.gmra.mxu1 %v1298_v17 }
 0x265   : > { %v1277_v35 = vpop.f32.mrf.mxu2 }
 0x266   : > { %v1278_v6 = vadd.f32 %v2537_v32, %v1277_v35  ;;  %v1412_v42 = vpop.f32.mrf.mxu3 }
 0x267   : > { %v1413_v0 = vadd.f32 %v2625_v52, %v1412_v42  ;;  %v1229_v57 = vpop.f32.mrf.mxu0 }
 0x268   : > { %v1315_v11 = vmax.f32 %v1278_v6, 0.0  ;;  %v1230_v40 = vadd.f32 %v2537_v32, %v1229_v57 }
 0x269   : > { %1470 = vst [vmem:[%s2628_s14 + $0x98] sm:$0xff] %v1413_v0 }
 0x26a   : > { %v1299_v33 = vmax.f32 %v1230_v40, 0.0  ;;  %1441 = vmatmul.f32.gmra.mxu3 %v1315_v11 }
 0x26c   : > { %1393 = vmatmul.f32.gmra.mxu1 %v1299_v33 }
 0x26e   : > { %v1415_v37 = vpop.f32.mrf.mxu3 }
 0x26f   : > { %v1416_v13 = vadd.f32 %v2625_v52, %v1415_v37  ;;  %v1367_v8 = vpop.f32.mrf.mxu1  ;;  %v1232_v56 = vpop.f32.mrf.mxu0 }
 0x270   : > { %v1368_v15 = vadd.f32 %v2625_v52, %v1367_v8  ;;  %v1233_v45 = vadd.f32 %v2537_v32, %v1232_v56 }
 0x271   : > { %1471 = vst [vmem:[%s2628_s14 + $0xa0] sm:$0xff] %v1416_v13 }
 0x272   : > { %1455 = vst [vmem:[%s2628_s14 + $0x20] sm:$0xff] %v1368_v15  ;;  %v1300_v27 = vmax.f32 %v1233_v45, 0.0 }
 0x274   : > { %1396 = vmatmul.f32.gmra.mxu1 %v1300_v27 }
 0x276   : > { %v1418_v21 = vpop.f32.mrf.mxu3 }
 0x277   : > { %v1419_v58 = vadd.f32 %v2625_v52, %v1418_v21  ;;  %v1280_v26 = vpop.f32.mrf.mxu2 }
 0x278   : > { %v1281_v20 = vadd.f32 %v2537_v32, %v1280_v26 }
 0x279   : > { %1472 = vst [vmem:[%s2628_s14 + $0xa8] sm:$0xff] %v1419_v58 }
 0x27a   : > { %v1316_v24 = vmax.f32 %v1281_v20, 0.0  ;;  %v1370_v50 = vpop.f32.mrf.mxu1 }
 0x27b   : > { %v1371_v48 = vadd.f32 %v2625_v52, %v1370_v50 }
 0x27c   : > { %1444 = vmatmul.f32.gmra.mxu3 %v1316_v24 }
 0x27d   : > { %1456 = vst [vmem:[%s2628_s14 + $0x28] sm:$0xff] %v1371_v48 }
 0x27e   : > { %v1421_v41 = vpop.f32.mrf.mxu3 }
 0x27f   : > { %v1422_v63 = vadd.f32 %v2625_v52, %v1421_v41 }
 0x281   : > { %1473 = vst [vmem:[%s2628_s14 + $0xb0] sm:$0xff] %v1422_v63 }
 0x282   : > { %v1373_v34 = vpop.f32.mrf.mxu1 }
 0x283   : > { %v1374_v18 = vadd.f32 %v2625_v52, %v1373_v34 }
 0x285   : > { %1457 = vst [vmem:[%s2628_s14 + $0x30] sm:$0xff] %v1374_v18 }
 0x287   : > { %v1283_v9 = vpop.f32.mrf.mxu2 }
 0x288   : > { %v1284_v19 = vadd.f32 %v2537_v32, %v1283_v9 }
 0x28a   : > { %v1317_v25 = vmax.f32 %v1284_v19, 0.0  ;;  %v1376_v49 = vpop.f32.mrf.mxu1 }
 0x28b   : > { %v1377_v16 = vadd.f32 %v2625_v52, %v1376_v49 }
 0x28c   : > { %v1235_v10 = vpop.f32.mrf.mxu0  ;;  %1447 = vmatmul.f32.gmra.mxu3 %v1317_v25 }
 0x28d   : > { %1458 = vst [vmem:[%s2628_s14 + $0x38] sm:$0xff] %v1377_v16  ;;  %v1236_v31 = vadd.f32 %v2537_v32, %v1235_v10 }
 0x28e   : > { %v1424_v47 = vpop.f32.mrf.mxu3 }
 0x28f   : > { %v1301_v30 = vmax.f32 %v1236_v31, 0.0  ;;  %v1425_v38 = vadd.f32 %v2625_v52, %v1424_v47 }
 0x291   : > { %1474 = vst [vmem:[%s2628_s14 + $0xb8] sm:$0xff] %v1425_v38  ;;  %1399 = vmatmul.f32.gmra.mxu1 %v1301_v30 }
 0x2a0   : > { %v1427_v23 = vpop.f32.mrf.mxu3 }
 0x2a1   : > { %v1428_v62 = vadd.f32 %v2625_v52, %v1427_v23 }
 0x2a3   : > { %1475 = vst [vmem:[%s2628_s14 + $0xc0] sm:$0xff] %v1428_v62 }
 0x2ac   : > { %v1379_v46 = vpop.f32.mrf.mxu1 }
 0x2ad   : > { %v1380_v60 = vadd.f32 %v2625_v52, %v1379_v46 }
 0x2af   : > { %1459 = vst [vmem:[%s2628_s14 + $0x40] sm:$0xff] %v1380_v60 }
 0x2b0   : > { %v1430_v7 = vpop.f32.mrf.mxu3 }
 0x2b1   : > { %v1431_v32 = vadd.f32 %v2625_v52, %v1430_v7 }
 0x2b3   : > { %1476 = vst [vmem:[%s2628_s14 + $0xc8] sm:$0xff] %v1431_v32 }
 0x2bc   : > { %v1382_v36 = vpop.f32.mrf.mxu1 }
 0x2bd   : > { %v1383_v28 = vadd.f32 %v2625_v52, %v1382_v36 }
 0x2bf   : > { %1460 = vst [vmem:[%s2628_s14 + $0x48] sm:$0xff] %v1383_v28 }
 0x2c0   : > { %v1433_v2 = vpop.f32.mrf.mxu3 }
 0x2c1   : > { %v1434_v53 = vadd.f32 %v2625_v52, %v1433_v2 }
 0x2c3   : > { %1477 = vst [vmem:[%s2628_s14 + $0xd0] sm:$0xff] %v1434_v53 }
 0x2c8   : > { %v1436_v39 = vpop.f32.mrf.mxu3 }
 0x2c9   : > { %v1437_v44 = vadd.f32 %v2625_v52, %v1436_v39 }
 0x2cb   : > { %1478 = vst [vmem:[%s2628_s14 + $0xd8] sm:$0xff] %v1437_v44 }
 0x2ce   : > { %v1385_v43 = vpop.f32.mrf.mxu1 }
 0x2cf   : > { %v1386_v29 = vadd.f32 %v2625_v52, %v1385_v43 }
 0x2d0   : > { %v1439_v59 = vpop.f32.mrf.mxu3 }
 0x2d1   : > { %1461 = vst [vmem:[%s2628_s14 + $0x50] sm:$0xff] %v1386_v29  ;;  %v1440_v3 = vadd.f32 %v2625_v52, %v1439_v59 }
 0x2d3   : > { %1479 = vst [vmem:[%s2628_s14 + $0xe0] sm:$0xff] %v1440_v3 }
 0x2d9   : > { %v1388_v54 = vpop.f32.mrf.mxu1 }
 0x2da   : > { %v1389_v1 = vadd.f32 %v2625_v52, %v1388_v54 }
 0x2dc   : > { %1462 = vst [vmem:[%s2628_s14 + $0x58] sm:$0xff] %v1389_v1 }
 0x2e1   : > { %v1391_v5 = vpop.f32.mrf.mxu1 }
 0x2e2   : > { %v1392_v14 = vadd.f32 %v2625_v52, %v1391_v5 }
 0x2e4   : > { %1463 = vst [vmem:[%s2628_s14 + $0x60] sm:$0xff] %v1392_v14 }
 0x2e9   : > { %v1394_v12 = vpop.f32.mrf.mxu1 }
 0x2ea   : > { %v1395_v22 = vadd.f32 %v2625_v52, %v1394_v12 }
 0x2ec   : > { %1464 = vst [vmem:[%s2628_s14 + $0x68] sm:$0xff] %v1395_v22 }
 0x2ed   : > { %v1442_v4 = vpop.f32.mrf.mxu3 }
 0x2ee   : > { %v1443_v51 = vadd.f32 %v2625_v52, %v1442_v4 }
 0x2f0   : > { %1480 = vst [vmem:[%s2628_s14 + $0xe8] sm:$0xff] %v1443_v51 }
 0x2f1   : > { %v1397_v61 = vpop.f32.mrf.mxu1 }
 0x2f2   : > { %v1398_v55 = vadd.f32 %v2625_v52, %v1397_v61 }
 0x2f4   : > { %1465 = vst [vmem:[%s2628_s14 + $0x70] sm:$0xff] %v1398_v55 }
 0x2ff   : > { %v1445_v17 = vpop.f32.mrf.mxu3 }
 0x300   : > { %v1446_v35 = vadd.f32 %v2625_v52, %v1445_v17 }
 0x302   : > { %1481 = vst [vmem:[%s2628_s14 + $0xf0] sm:$0xff] %v1446_v35 }
 0x30e   : > { %v1400_v6 = vpop.f32.mrf.mxu1 }
 0x30f   : > { %v1401_v42 = vadd.f32 %v2625_v52, %v1400_v6  ;;  %v1448_v0 = vpop.f32.mrf.mxu3 }
 0x310   : > { %v1449_v57 = vadd.f32 %v2625_v52, %v1448_v0 }
 0x311   : > { %1466 = vst [vmem:[%s2628_s14 + $0x78] sm:$0xff] %v1401_v42 }
 0x312   : > { %1482 = vst [vmem:[%s2628_s14 + $0xf8] sm:$0xff] %v1449_v57 }
 0x313   : > { %1729 = shalt.err (!%p1726_p3)
}
 0x314   : > { %s1770_s29 = smov 128   ;;  %s1771_s14 = smov 8  }
 0x315   : > { %1606 = dma.vmem_to_hbm [thread:$0]  (%p1850_p5), %s1497_s20, 4096, %s1499_s21, %s1484_s22, %s1770_s29, %s1770_s29, %s1771_s14  }
 0x316 PF: > { %p1612_p4 = scmp.ge.s32.totalorder %s1764_s27, 2  ;;  %s1513_s16 = sand.u32 1, %s1752_s24  }
 0x317   : > { %s1514_s18 = scalar_lea.sflag [#allocation3], %s1513_s16 }
 0x318   : > { %p1609_p7 = pnand %p1612_p4, %p1854_p6 }
 0x31a   : > { %p1610_p8 = pneg %p1609_p7 }
 0x31c   : > { %1747 = dma.done.wait (%p1610_p8), %s1514_s18, 4096  }
 0x31d   : > { %1749 = vsyncadd (%p1610_p8), %s1514_s18, 4294963200  ;;  %p17_p9 = scmp.ge.s32.totalorder %s1837_s30, 4   ;;  %s2787_s24 = smov %s1756_s25 }
 0x31e   : > { %s2788_s25 = smov %s1760_s26  ;;  %s2789_s26 = smov %s1848_s10 }
 0x31f   : > { %s2790_s27 = smov %s1837_s30  ;;  %19 = sbr.rel (!%p17_p9) target bundleno = 3 (0x3), region = 83 }
 0x324   :  { %1520 = vsyncpa [#allocation3], 1 }
 0x325   :  { %1522 = vsyncpa [#allocation3 + $0x1], 1 }

</bundles_post_ra>
